<compile_context>
chip_gen: v7x
topology: tpu7x:2x2x1
jax: 0.10.0
libtpu: 0.0.40
codegen_flags: <defaults>
</compile_context>

<pallas_src>
import functools

import jax
import jax.numpy as jnp
from jax import lax
from jax.experimental import pallas as pl
from jax.experimental.pallas import tpu as pltpu


def _round_up(x, m):
    return (x + m - 1) // m * m


# ----------------------------------------------------------------------------
# Fused power-iteration kernel
# ----------------------------------------------------------------------------
def _spectral_norm_kernel(x0_ref, tmat_ref, cmat_hbm_ref, norm_ref,
                          xa_ref, xb_ref, slab_a_ref, slab_b_ref,
                          cmat_vmem_ref, cmat_sem,
                          *, n_iter, K, sx, sxp, pad_a, pad_b, na_pad, nb_pad):
    """Entire power iteration with both activations resident in VMEM.

    x0_ref      : (Da, na_pad) f32  initial probe, already in the zero-padded
                                    lane-dense channels-last layout.
    tmat_ref    : (K*na_pad, nb_pad) bf16  stacked conv_transpose3d band matrix.
    cmat_hbm_ref: (K*nb_pad, na_pad) bf16  stacked conv3d band matrix (HBM).
    norm_ref    : (1, 1) f32 output = sqrt(sum(Wx^2) / sum(x^2)).
    xa_ref      : (Da, na_pad) f32  resident padded x.
    xb_ref      : (Db, nb_pad) f32  resident padded x_p.
    slab_a/b    : bf16 depth-im2col slabs (matmul LHS operands).
    """
    # Overlap the cmat HBM->VMEM DMA with the first conv_transpose matmul;
    # cmat is not needed until the first conv_step.
    cmat_copy = pltpu.make_async_copy(cmat_hbm_ref, cmat_vmem_ref, cmat_sem)
    cmat_copy.start()

    # Prologue: load probe; zero only the x_p halo rows (skipped when p == 0).
    xa_ref[...] = x0_ref[...]
    if pad_b > 0:
        xb_ref[0:pad_b, :] = jnp.zeros((pad_b, nb_pad), jnp.float32)
        xb_ref[pad_b + sxp:, :] = jnp.zeros((pad_b, nb_pad), jnp.float32)

    def conv_transpose_step():
        # depth-im2col: K shifted windows -> one lane-dense bf16 slab, then a
        # single MXU matmul with contraction depth K*na_pad.
        for kd in range(K):
            slab_a_ref[:, kd * na_pad:(kd + 1) * na_pad] = (
                xa_ref[kd:kd + sxp, :].astype(jnp.bfloat16))
        xb_ref[pad_b:pad_b + sxp, :] = jnp.dot(
            slab_a_ref[...], tmat_ref[...],
            preferred_element_type=jnp.float32)

    def conv_step():
        for kd in range(K):
            slab_b_ref[:, kd * nb_pad:(kd + 1) * nb_pad] = (
                xb_ref[kd:kd + sx, :].astype(jnp.bfloat16))
        xa_ref[pad_a:pad_a + sx, :] = jnp.dot(
            slab_b_ref[...], cmat_vmem_ref[...],
            preferred_element_type=jnp.float32)

    # torch loop: for i in range(n_iter): x_p = convT(x); x = conv(x_p);
    # Wx = convT(x).  Restructured as convT; n_iter x (conv; convT) so the
    # cmat DMA wait lands right after the first matmul.
    conv_transpose_step()
    cmat_copy.wait()
    if n_iter <= 4:
        for _ in range(n_iter):            # default iterations=1: unrolled
            conv_step()
            conv_transpose_step()
    else:                                  # bound code size / live ranges
        def body(_, carry):
            conv_step()
            conv_transpose_step()
            return carry
        lax.fori_loop(0, n_iter, body, None)

    # f32 epilogue: structural-zero lanes / halo rows contribute exactly 0.
    wx = xb_ref[...]
    x = xa_ref[...]
    s_wx = jnp.sum(wx * wx, keepdims=True)     # (1, 1)
    s_x = jnp.sum(x * x, keepdims=True)        # (1, 1)
    norm_ref[...] = jnp.sqrt(s_wx / s_x)


# ----------------------------------------------------------------------------
# Weight "im2col": per-depth-tap block-banded matrices (built once per forward)
# ----------------------------------------------------------------------------
def _band_matrices(wk, hin, win, hout, wout, out_pad):
    """Fold the (kh, kw, ci->co) taps of `wk` into per-kd band matrices.

    wk: (K, K, K, Cin, Cout) correlation kernel.
    Returns (K, hin*win*Cin, hog*wog*Cout) with hog = hout + 2*out_pad, so the
    matmul output lands directly in the next op's zero-padded 2D layout.
    """
    K = wk.shape[0]
    cin, cout = wk.shape[3], wk.shape[4]
    shift_h = jnp.stack(
        [jnp.eye(hout, hin, k=kh, dtype=wk.dtype) for kh in range(K)])
    shift_w = jnp.stack(
        [jnp.eye(wout, win, k=kw, dtype=wk.dtype) for kw in range(K)])
    # t[kd, hi, wi, ci, ho, wo, co] = wk[kd, hi-ho, wi-wo, ci, co]  (banded)
    # TODO(synk): at production in_size, order/generate this so the pad+reshape
    # is layout-preserving (or build tiles in-kernel) to avoid wrapper HBM cost.
    t = jnp.einsum('zabcd,apq,brs->zqscprd', wk, shift_h, shift_w)
    t = jnp.pad(t, ((0, 0), (0, 0), (0, 0), (0, 0),
                    (out_pad, out_pad), (out_pad, out_pad), (0, 0)))
    hog, wog = hout + 2 * out_pad, wout + 2 * out_pad
    return t.reshape(K, hin * win * cin, hog * wog * cout)


# ----------------------------------------------------------------------------
# torch-equivalent spectral norm (single fused pallas_call)
# ----------------------------------------------------------------------------
def spectral_norm_conv_transpose3d_2(w, input_size, ks, padding, stride, eps,
                                     max_iter, key):
    # TODO(synk): stride > 1 (zero-insertion transposed conv) not implemented;
    # the module default stride=1 is supported.  `ks`/`eps` are unused, exactly
    # as in the PyTorch reference.
    assert stride == 1, "only stride=1 implemented"
    K = int(w.shape[2])
    c_in, c_out = int(w.shape[0]), int(w.shape[1])
    p = int(padding)
    assert 0 <= p <= K - 1, "padding must be in [0, K-1]"
    pt = K - 1 - p                       # halo width of the padded-x buffer
    sx = int(input_size)                 # x spatial size
    sxp = sx + K - 1 - 2 * p             # x_p spatial size
    ha = sx + 2 * pt                     # padded-x depth
    hb = sxp + 2 * p                     # padded-x_p depth
    na = ha * ha * c_in                  # padded-x lane width (unpadded)
    nb = hb * hb * c_out                 # padded-x_p lane width (unpadded)
    na_pad = _round_up(na, 128)          # lane-dense widths (multiples of 128)
    nb_pad = _round_up(nb, 128)

    wf = w.astype(jnp.float32)
    # Effective correlation kernels in (kd, kh, kw, ci, co) layout.
    w_t = jnp.transpose(jnp.flip(wf, axis=(2, 3, 4)), (2, 3, 4, 0, 1))  # convT
    w_c = jnp.transpose(wf, (2, 3, 4, 1, 0))                            # conv

    tmat = _band_matrices(w_t, ha, ha, sxp, sxp, out_pad=p)    # (K, na, nb)
    cmat = _band_matrices(w_c, hb, hb, sx, sx, out_pad=pt)     # (K, nb, na)

    # Lane-pad with structural zeros, stack the K taps along the contraction
    # dim (one fused matmul per conv step), cast to bf16 (f32 accumulation in
    # the kernel).
    tmat = jnp.pad(tmat, ((0, 0), (0, na_pad - na), (0, nb_pad - nb)))
    cmat = jnp.pad(cmat, ((0, 0), (0, nb_pad - nb), (0, na_pad - na)))
    tmat = tmat.reshape(K * na_pad, nb_pad).astype(jnp.bfloat16)
    cmat = cmat.reshape(K * nb_pad, na_pad).astype(jnp.bfloat16)

    # torch.rand equivalent, embedded once into the zero-padded 2D layout.
    x0 = jax.random.uniform(key, (sx, sx, sx, c_in), dtype=jnp.float32)
    x0_pad = jnp.pad(x0, ((pt, pt), (pt, pt), (pt, pt), (0, 0)))
    x0_2d = jnp.pad(x0_pad.reshape(ha, na), ((0, 0), (0, na_pad - na)))

    kernel = functools.partial(_spectral_norm_kernel, n_iter=int(max_iter),
                               K=K, sx=sx, sxp=sxp, pad_a=pt, pad_b=p,
                               na_pad=na_pad, nb_pad=nb_pad)
    norm = pl.pallas_call(
        kernel,
        out_shape=jax.ShapeDtypeStruct((1, 1), jnp.float32),
        in_specs=[pl.BlockSpec(memory_space=pltpu.MemorySpace.VMEM),  # x0
                  pl.BlockSpec(memory_space=pltpu.MemorySpace.VMEM),  # tmat
                  pl.BlockSpec(memory_space=pl.ANY)],                 # cmat HBM
        out_specs=pl.BlockSpec(memory_space=pltpu.MemorySpace.VMEM),
        scratch_shapes=[
            pltpu.VMEM((ha, na_pad), jnp.float32),         # xa (resident x)
            pltpu.VMEM((hb, nb_pad), jnp.float32),         # xb (resident x_p)
            pltpu.VMEM((sxp, K * na_pad), jnp.bfloat16),   # slab_a (im2col)
            pltpu.VMEM((sx, K * nb_pad), jnp.bfloat16),    # slab_b (im2col)
            pltpu.VMEM((K * nb_pad, na_pad), jnp.bfloat16),  # cmat in VMEM
            pltpu.SemaphoreType.DMA(()),                   # cmat DMA sem
        ],
    )(x0_2d, tmat, cmat)
    return norm[0, 0]


class L2LipschitzConvTranspose3d:
    def __init__(self, in_size, ks, padding=0, stride=1, eps=1e-08,
                 iterations=1, max_lc=1.0):
        self.in_size = in_size
        self.padding = padding
        self.stride = stride
        self.ks = ks
        self.eps = eps
        self.iterations = iterations
        self.max_lc = max_lc

    def forward(self, w, key):
        norm = spectral_norm_conv_transpose3d_2(
            w, self.in_size, self.ks, self.padding, self.stride,
            self.eps, self.iterations, key)
        # Tiny 432-element rescale: plain jnp (no dedicated kernel launch).
        scale = 1.0 / jnp.maximum(1.0, norm / self.max_lc)
        return (w * scale).astype(w.dtype)


# ----------------------------------------------------------------------------
# Pure-XLA reference (for correctness checking only)
# ----------------------------------------------------------------------------
def _reference_norm(w, x0_dhwc, padding, iterations):
    K = w.shape[2]
    dn = ('NCDHW', 'OIDHW', 'NCDHW')
    x = jnp.transpose(x0_dhwc, (3, 0, 1, 2))[None]              # (1,C,D,H,W)
    w_t = jnp.transpose(jnp.flip(w, axis=(2, 3, 4)), (1, 0, 2, 3, 4))

    def conv_t(v):
        return lax.conv_general_dilated(
            v, w_t, (1, 1, 1), [(K - 1 - padding,) * 2] * 3,
            dimension_numbers=dn, precision=lax.Precision.HIGHEST)

    def conv(v):
        return lax.conv_general_dilated(
            v, w, (1, 1, 1), [(padding,) * 2] * 3,
            dimension_numbers=dn, precision=lax.Precision.HIGHEST)

    for _ in range(iterations):
        x = conv(conv_t(x))
    wx = conv_t(x)
    return jnp.sqrt(jnp.sum(wx * wx) / jnp.sum(x * x))


if __name__ == "__main__":
    key = jax.random.PRNGKey(0)
    k_w, k_x = jax.random.split(key)

    # Module-consistent small shapes:
    #   ConvTranspose3d weight (Cin, Cout, K, K, K) = (4, 4, 3, 3, 3)
    #   power-iteration probe x: (1, Cin, in_size^3) with in_size = 6
    c_in, c_out, K = 4, 4, 3
    in_size = 6
    w = jax.random.normal(k_w, (c_in, c_out, K, K, K), dtype=jnp.float32) * 0.5

    mod = L2LipschitzConvTranspose3d(in_size=in_size, ks=K, padding=0,
                                     stride=1, eps=1e-8, iterations=1,
                                     max_lc=1.0)

    fwd = jax.jit(mod.forward)
    out = jax.block_until_ready(fwd(w, k_x))
    assert out.shape == w.shape and out.dtype == w.dtype
    assert bool(jnp.all(jnp.isfinite(out)))

    # Correctness check of the fused bf16 kernel vs. a pure-XLA f32 reference.
    norm_pallas = spectral_norm_conv_transpose3d_2(
        w, in_size, K, mod.padding, mod.stride, mod.eps, mod.iterations, k_x)
    x0 = jax.random.uniform(k_x, (in_size, in_size, in_size, c_in),
                            dtype=jnp.float32)
    norm_ref = _reference_norm(w, x0, mod.padding, mod.iterations)
    err = abs(float(norm_pallas) - float(norm_ref))
    assert err <= 3e-2 * max(1.0, float(norm_ref)), (float(norm_pallas),
                                                     float(norm_ref))

    print("KERNEL_OK")
</pallas_src>

<mosaic_0001>
module attributes {stable_mosaic.version = 11 : i64} {
  func.func @_spectral_norm_kernel(%arg0: memref<10x512xf32, #tpu.memory_space<vmem>>, %arg1: memref<1536x256xbf16, #tpu.memory_space<vmem>>, %arg2: memref<768x512xbf16, #tpu.memory_space<any>>, %arg3: memref<1x1xf32, #tpu.memory_space<vmem>>, %arg4: memref<10x512xf32, #tpu.memory_space<vmem>>, %arg5: memref<8x256xf32, #tpu.memory_space<vmem>>, %arg6: memref<8x1536xbf16, #tpu.memory_space<vmem>>, %arg7: memref<6x768xbf16, #tpu.memory_space<vmem>>, %arg8: memref<768x512xbf16, #tpu.memory_space<vmem>>, %arg9: memref<!tpu.dma_semaphore, #tpu.memory_space<semaphore_mem>>) attributes {dimension_semantics = [], scalar_prefetch = 0 : i64, scratch_operands = 6 : i64, tpu.core_type = #tpu.core_type<tc>} {
    tpu.enqueue_dma source(%arg2 : memref<768x512xbf16, #tpu.memory_space<any>>) target(%arg8 : memref<768x512xbf16, #tpu.memory_space<vmem>>) target_semaphore(%arg9 : memref<!tpu.dma_semaphore, #tpu.memory_space<semaphore_mem>>)
    %c0 = arith.constant 0 : index
    %c0_0 = arith.constant 0 : index
    %0 = vector.load %arg0[%c0, %c0_0] : memref<10x512xf32, #tpu.memory_space<vmem>>, vector<10x512xf32>
    %c0_1 = arith.constant 0 : index
    %c0_2 = arith.constant 0 : index
    %1 = vector.load %arg4[%c0_1, %c0_2] : memref<10x512xf32, #tpu.memory_space<vmem>>, vector<10x512xf32>
    tpu.vector_store %arg4[%c0_1, %c0_2], %0 {strides = array<i32>} : memref<10x512xf32, #tpu.memory_space<vmem>>, vector<10x512xf32>,
    %c0_3 = arith.constant 0 : index
    %c0_4 = arith.constant 0 : index
    %2 = vector.load %arg4[%c0_3, %c0_4] : memref<10x512xf32, #tpu.memory_space<vmem>>, vector<8x512xf32>
    %3 = arith.truncf %2 : vector<8x512xf32> to vector<8x512xbf16>
    %c0_5 = arith.constant 0 : index
    %c0_6 = arith.constant 0 : index
    %4 = vector.load %arg6[%c0_5, %c0_6] : memref<8x1536xbf16, #tpu.memory_space<vmem>>, vector<8x512xbf16>
    tpu.vector_store %arg6[%c0_5, %c0_6], %3 {strides = array<i32>} : memref<8x1536xbf16, #tpu.memory_space<vmem>>, vector<8x512xbf16>,
    %c1 = arith.constant 1 : index
    %c0_7 = arith.constant 0 : index
    %5 = vector.load %arg4[%c1, %c0_7] : memref<10x512xf32, #tpu.memory_space<vmem>>, vector<8x512xf32>
    %6 = arith.truncf %5 : vector<8x512xf32> to vector<8x512xbf16>
    %c0_8 = arith.constant 0 : index
    %c512 = arith.constant 512 : index
    %7 = vector.load %arg6[%c0_8, %c512] : memref<8x1536xbf16, #tpu.memory_space<vmem>>, vector<8x512xbf16>
    tpu.vector_store %arg6[%c0_8, %c512], %6 {strides = array<i32>} : memref<8x1536xbf16, #tpu.memory_space<vmem>>, vector<8x512xbf16>,
    %c2 = arith.constant 2 : index
    %c0_9 = arith.constant 0 : index
    %8 = vector.load %arg4[%c2, %c0_9] : memref<10x512xf32, #tpu.memory_space<vmem>>, vector<8x512xf32>
    %9 = arith.truncf %8 : vector<8x512xf32> to vector<8x512xbf16>
    %c0_10 = arith.constant 0 : index
    %c1024 = arith.constant 1024 : index
    %10 = vector.load %arg6[%c0_10, %c1024] : memref<8x1536xbf16, #tpu.memory_space<vmem>>, vector<8x512xbf16>
    tpu.vector_store %arg6[%c0_10, %c1024], %9 {strides = array<i32>} : memref<8x1536xbf16, #tpu.memory_space<vmem>>, vector<8x512xbf16>,
    %c0_11 = arith.constant 0 : index
    %c0_12 = arith.constant 0 : index
    %11 = vector.load %arg6[%c0_11, %c0_12] : memref<8x1536xbf16, #tpu.memory_space<vmem>>, vector<8x1536xbf16>
    %c0_13 = arith.constant 0 : index
    %c0_14 = arith.constant 0 : index
    %12 = vector.load %arg1[%c0_13, %c0_14] : memref<1536x256xbf16, #tpu.memory_space<vmem>>, vector<1536x256xbf16>
    %cst = arith.constant dense<0.000000e+00> : vector<8x256xf32>
    %13 = tpu.matmul %11, %12, %cst {dimension_numbers = #tpu.dot_dimension_numbers<[1], [0], [0], [1], [0, 0, 1, 1], [], []>} : vector<8x1536xbf16>, vector<1536x256xbf16>, vector<8x256xf32> -> vector<8x256xf32>
    %c0_15 = arith.constant 0 : index
    %c0_16 = arith.constant 0 : index
    %14 = vector.load %arg5[%c0_15, %c0_16] : memref<8x256xf32, #tpu.memory_space<vmem>>, vector<8x256xf32>
    tpu.vector_store %arg5[%c0_15, %c0_16], %13 {strides = array<i32>} : memref<8x256xf32, #tpu.memory_space<vmem>>, vector<8x256xf32>,
    tpu.wait_dma2 semaphore(%arg9 : memref<!tpu.dma_semaphore, #tpu.memory_space<semaphore_mem>>) src(%arg2 : memref<768x512xbf16, #tpu.memory_space<any>>) dst(%arg8 : memref<768x512xbf16, #tpu.memory_space<vmem>>)
    %c0_17 = arith.constant 0 : index
    %c0_18 = arith.constant 0 : index
    %15 = vector.load %arg5[%c0_17, %c0_18] : memref<8x256xf32, #tpu.memory_space<vmem>>, vector<6x256xf32>
    %16 = arith.truncf %15 : vector<6x256xf32> to vector<6x256xbf16>
    %c0_19 = arith.constant 0 : index
    %c0_20 = arith.constant 0 : index
    %17 = vector.load %arg7[%c0_19, %c0_20] : memref<6x768xbf16, #tpu.memory_space<vmem>>, vector<6x256xbf16>
    tpu.vector_store %arg7[%c0_19, %c0_20], %16 {strides = array<i32>} : memref<6x768xbf16, #tpu.memory_space<vmem>>, vector<6x256xbf16>,
    %c1_21 = arith.constant 1 : index
    %c0_22 = arith.constant 0 : index
    %18 = vector.load %arg5[%c1_21, %c0_22] : memref<8x256xf32, #tpu.memory_space<vmem>>, vector<6x256xf32>
    %19 = arith.truncf %18 : vector<6x256xf32> to vector<6x256xbf16>
    %c0_23 = arith.constant 0 : index
    %c256 = arith.constant 256 : index
    %20 = vector.load %arg7[%c0_23, %c256] : memref<6x768xbf16, #tpu.memory_space<vmem>>, vector<6x256xbf16>
    tpu.vector_store %arg7[%c0_23, %c256], %19 {strides = array<i32>} : memref<6x768xbf16, #tpu.memory_space<vmem>>, vector<6x256xbf16>,
    %c2_24 = arith.constant 2 : index
    %c0_25 = arith.constant 0 : index
    %21 = vector.load %arg5[%c2_24, %c0_25] : memref<8x256xf32, #tpu.memory_space<vmem>>, vector<6x256xf32>
    %22 = arith.truncf %21 : vector<6x256xf32> to vector<6x256xbf16>
    %c0_26 = arith.constant 0 : index
    %c512_27 = arith.constant 512 : index
    %23 = vector.load %arg7[%c0_26, %c512_27] : memref<6x768xbf16, #tpu.memory_space<vmem>>, vector<6x256xbf16>
    tpu.vector_store %arg7[%c0_26, %c512_27], %22 {strides = array<i32>} : memref<6x768xbf16, #tpu.memory_space<vmem>>, vector<6x256xbf16>,
    %c0_28 = arith.constant 0 : index
    %c0_29 = arith.constant 0 : index
    %24 = vector.load %arg7[%c0_28, %c0_29] : memref<6x768xbf16, #tpu.memory_space<vmem>>, vector<6x768xbf16>
    %c0_30 = arith.constant 0 : index
    %c0_31 = arith.constant 0 : index
    %25 = vector.load %arg8[%c0_30, %c0_31] : memref<768x512xbf16, #tpu.memory_space<vmem>>, vector<768x512xbf16>
    %cst_32 = arith.constant dense<0.000000e+00> : vector<6x512xf32>
    %26 = tpu.matmul %24, %25, %cst_32 {dimension_numbers = #tpu.dot_dimension_numbers<[1], [0], [0], [1], [0, 0, 1, 1], [], []>} : vector<6x768xbf16>, vector<768x512xbf16>, vector<6x512xf32> -> vector<6x512xf32>
    %c2_33 = arith.constant 2 : index
    %c0_34 = arith.constant 0 : index
    %27 = vector.load %arg4[%c2_33, %c0_34] : memref<10x512xf32, #tpu.memory_space<vmem>>, vector<6x512xf32>
    tpu.vector_store %arg4[%c2_33, %c0_34], %26 {strides = array<i32>} : memref<10x512xf32, #tpu.memory_space<vmem>>, vector<6x512xf32>,
    %c0_35 = arith.constant 0 : index
    %c0_36 = arith.constant 0 : index
    %28 = vector.load %arg4[%c0_35, %c0_36] : memref<10x512xf32, #tpu.memory_space<vmem>>, vector<8x512xf32>
    %29 = arith.truncf %28 : vector<8x512xf32> to vector<8x512xbf16>
    %c0_37 = arith.constant 0 : index
    %c0_38 = arith.constant 0 : index
    %30 = vector.load %arg6[%c0_37, %c0_38] : memref<8x1536xbf16, #tpu.memory_space<vmem>>, vector<8x512xbf16>
    tpu.vector_store %arg6[%c0_37, %c0_38], %29 {strides = array<i32>} : memref<8x1536xbf16, #tpu.memory_space<vmem>>, vector<8x512xbf16>,
    %c1_39 = arith.constant 1 : index
    %c0_40 = arith.constant 0 : index
    %31 = vector.load %arg4[%c1_39, %c0_40] : memref<10x512xf32, #tpu.memory_space<vmem>>, vector<8x512xf32>
    %32 = arith.truncf %31 : vector<8x512xf32> to vector<8x512xbf16>
    %c0_41 = arith.constant 0 : index
    %c512_42 = arith.constant 512 : index
    %33 = vector.load %arg6[%c0_41, %c512_42] : memref<8x1536xbf16, #tpu.memory_space<vmem>>, vector<8x512xbf16>
    tpu.vector_store %arg6[%c0_41, %c512_42], %32 {strides = array<i32>} : memref<8x1536xbf16, #tpu.memory_space<vmem>>, vector<8x512xbf16>,
    %c2_43 = arith.constant 2 : index
    %c0_44 = arith.constant 0 : index
    %34 = vector.load %arg4[%c2_43, %c0_44] : memref<10x512xf32, #tpu.memory_space<vmem>>, vector<8x512xf32>
    %35 = arith.truncf %34 : vector<8x512xf32> to vector<8x512xbf16>
    %c0_45 = arith.constant 0 : index
    %c1024_46 = arith.constant 1024 : index
    %36 = vector.load %arg6[%c0_45, %c1024_46] : memref<8x1536xbf16, #tpu.memory_space<vmem>>, vector<8x512xbf16>
    tpu.vector_store %arg6[%c0_45, %c1024_46], %35 {strides = array<i32>} : memref<8x1536xbf16, #tpu.memory_space<vmem>>, vector<8x512xbf16>,
    %c0_47 = arith.constant 0 : index
    %c0_48 = arith.constant 0 : index
    %37 = vector.load %arg6[%c0_47, %c0_48] : memref<8x1536xbf16, #tpu.memory_space<vmem>>, vector<8x1536xbf16>
    %c0_49 = arith.constant 0 : index
    %c0_50 = arith.constant 0 : index
    %38 = vector.load %arg1[%c0_49, %c0_50] : memref<1536x256xbf16, #tpu.memory_space<vmem>>, vector<1536x256xbf16>
    %cst_51 = arith.constant dense<0.000000e+00> : vector<8x256xf32>
    %39 = tpu.matmul %37, %38, %cst_51 {dimension_numbers = #tpu.dot_dimension_numbers<[1], [0], [0], [1], [0, 0, 1, 1], [], []>} : vector<8x1536xbf16>, vector<1536x256xbf16>, vector<8x256xf32> -> vector<8x256xf32>
    %c0_52 = arith.constant 0 : index
    %c0_53 = arith.constant 0 : index
    %40 = vector.load %arg5[%c0_52, %c0_53] : memref<8x256xf32, #tpu.memory_space<vmem>>, vector<8x256xf32>
    tpu.vector_store %arg5[%c0_52, %c0_53], %39 {strides = array<i32>} : memref<8x256xf32, #tpu.memory_space<vmem>>, vector<8x256xf32>,
    %c0_54 = arith.constant 0 : index
    %c0_55 = arith.constant 0 : index
    %41 = vector.load %arg5[%c0_54, %c0_55] : memref<8x256xf32, #tpu.memory_space<vmem>>, vector<8x256xf32>
    %c0_56 = arith.constant 0 : index
    %c0_57 = arith.constant 0 : index
    %42 = vector.load %arg4[%c0_56, %c0_57] : memref<10x512xf32, #tpu.memory_space<vmem>>, vector<10x512xf32>
    %43 = arith.mulf %41, %41 : vector<8x256xf32>
    %44 = vector.shape_cast %43 : vector<8x256xf32> to vector<1x8x256xf32>
    %cst_58 = arith.constant dense<0.000000e+00> : vector<1xf32>
    %45 = vector.multi_reduction <add>, %44, %cst_58 [1, 2] : vector<1x8x256xf32> to vector<1xf32>
    %46 = vector.shape_cast %45 : vector<1xf32> to vector<1x1x1xf32>
    %47 = vector.extract %46[0, 0, 0] : f32 from vector<1x1x1xf32>
    %48 = vector.broadcast %47 : f32 to vector<1x1xf32>
    %49 = arith.mulf %42, %42 : vector<10x512xf32>
    %50 = vector.shape_cast %49 : vector<10x512xf32> to vector<1x10x512xf32>
    %cst_59 = arith.constant dense<0.000000e+00> : vector<1xf32>
    %51 = vector.multi_reduction <add>, %50, %cst_59 [1, 2] : vector<1x10x512xf32> to vector<1xf32>
    %52 = vector.shape_cast %51 : vector<1xf32> to vector<1x1x1xf32>
    %53 = vector.extract %52[0, 0, 0] : f32 from vector<1x1x1xf32>
    %54 = vector.broadcast %53 : f32 to vector<1x1xf32>
    %55 = arith.divf %48, %54 : vector<1x1xf32>
    %56 = math.sqrt %55 : vector<1x1xf32>
    %c0_60 = arith.constant 0 : index
    %c0_61 = arith.constant 0 : index
    %57 = vector.load %arg3[%c0_60, %c0_61] : memref<1x1xf32, #tpu.memory_space<vmem>>, vector<1x1xf32>
    tpu.vector_store %arg3[%c0_60, %c0_61], %56 {strides = array<i32>} : memref<1x1xf32, #tpu.memory_space<vmem>>, vector<1x1xf32>,
    return
  }
}

</mosaic_0001>

<bundles_post_ra>
// kernel: forward.1
= control target key start
LH: loop header
LB: loop body
LE: loop exit
PB: predicated region body
PF: predicated region fallthrough
CT: control target
= control target key end

     0   :  { %8 = vsyncpa [#allocation9], 0  ;;  %s8868_s0 = inlined_call_operand.vmem [shape: f32[10,512], index: 0, kind: input, shape index: {}]   ;;  %s8869_s1 = inlined_call_operand.vmem [shape: bf16[1536,256], index: 1, kind: input, shape index: {}]   ;;  %s8870_s2 = inlined_call_operand.vmem [shape: bf16[768,512], index: 2, kind: input, shape index: {}]   ;;  %s8871_s3 = inlined_call_operand.hbm [shape: f32[1,1], index: 3, kind: output, shape index: {}]  }
   0x1   :  { %v30_v0 = vld [vmem:[%s8870_s2] sm:$0xf]  ;;  %v32_v1 = vld [vmem:[%s8870_s2 + $0x10] sm:$0xf]  ;;  %v34_v2 = vld [vmem:[%s8870_s2 + $0x4] sm:$0xf] }
   0x2   :  { %31 = vst [vmem:[#allocation6] sm:$0xf] %v30_v0  ;;  %33 = vst [vmem:[#allocation6 + $0x4] sm:$0xf] %v32_v1  ;;  %v36_v3 = vld [vmem:[%s8870_s2 + $0x14] sm:$0xf] }
   0x3   :  { %v38_v4 = vld [vmem:[%s8870_s2 + $0x8] sm:$0xf]  ;;  %35 = vst [vmem:[#allocation6 + $0x8] sm:$0xf] %v34_v2  ;;  %37 = vst [vmem:[#allocation6 + $0xc] sm:$0xf] %v36_v3 }
   0x4   :  { %39 = vst [vmem:[#allocation6 + $0x10] sm:$0xf] %v38_v4  ;;  %v40_v5 = vld [vmem:[%s8870_s2 + $0x18] sm:$0xf]  ;;  %v42_v6 = vld [vmem:[%s8870_s2 + $0xc] sm:$0xf] }
   0x5   :  { %v44_v7 = vld [vmem:[%s8870_s2 + $0x1c] sm:$0xff]   ;;  %41 = vst [vmem:[#allocation6 + $0x14] sm:$0xf] %v40_v5  ;;  %43 = vst [vmem:[#allocation6 + $0x18] sm:$0xf] %v42_v6 }
   0x6   :  { %45 = vst [vmem:[#allocation6 + $0x1c] sm:$0xff] %v44_v7   ;;  %v48_v8 = vld [vmem:[%s8870_s2 + $0x30] sm:$0xf]  ;;  %v50_v9 = vld [vmem:[%s8870_s2 + $0x24] sm:$0xf]  ;;  %v60_v14 = vld [vmem:[%s8870_s2 + $0x3c] sm:$0xff]  }
   0x7   :  { %v52_v10 = vld [vmem:[%s8870_s2 + $0x34] sm:$0xf]  ;;  %49 = vst [vmem:[#allocation6 + $0x24] sm:$0xf] %v48_v8  ;;  %51 = vst [vmem:[#allocation6 + $0x28] sm:$0xf] %v50_v9 }
   0x8   :  { %53 = vst [vmem:[#allocation6 + $0x2c] sm:$0xf] %v52_v10  ;;  %v54_v11 = vld [vmem:[%s8870_s2 + $0x28] sm:$0xf]  ;;  %v56_v12 = vld [vmem:[%s8870_s2 + $0x38] sm:$0xf] }
   0x9   :  { %v58_v13 = vld [vmem:[%s8870_s2 + $0x2c] sm:$0xf]  ;;  %55 = vst [vmem:[#allocation6 + $0x30] sm:$0xf] %v54_v11  ;;  %57 = vst [vmem:[#allocation6 + $0x34] sm:$0xf] %v56_v12 }
   0xa   :  { %59 = vst [vmem:[#allocation6 + $0x38] sm:$0xf] %v58_v13  ;;  %v64_v15 = vld [vmem:[%s8870_s2 + $0x50] sm:$0xf]  ;;  %v66_v16 = vld [vmem:[%s8870_s2 + $0x44] sm:$0xf] }
   0xb   :  { %61 = vst [vmem:[#allocation6 + $0x3c] sm:$0xff] %v60_v14   ;;  %65 = vst [vmem:[#allocation6 + $0x44] sm:$0xf] %v64_v15  ;;  %v68_v17 = vld [vmem:[%s8870_s2 + $0x54] sm:$0xf]  ;;  %v76_v21 = vld [vmem:[%s8870_s2 + $0x5c] sm:$0xff]  }
   0xc   :  { %67 = vst [vmem:[#allocation6 + $0x48] sm:$0xf] %v66_v16  ;;  %v70_v18 = vld [vmem:[%s8870_s2 + $0x48] sm:$0xf]  ;;  %v72_v19 = vld [vmem:[%s8870_s2 + $0x58] sm:$0xf] }
   0xd   :  { %69 = vst [vmem:[#allocation6 + $0x4c] sm:$0xf] %v68_v17  ;;  %71 = vst [vmem:[#allocation6 + $0x50] sm:$0xf] %v70_v18  ;;  %v74_v20 = vld [vmem:[%s8870_s2 + $0x4c] sm:$0xf] }
   0xe   :  { %73 = vst [vmem:[#allocation6 + $0x54] sm:$0xf] %v72_v19  ;;  %v80_v22 = vld [vmem:[%s8870_s2 + $0x70] sm:$0xf]  ;;  %75 = vst [vmem:[#allocation6 + $0x58] sm:$0xf] %v74_v20 }
   0xf   :  { %77 = vst [vmem:[#allocation6 + $0x5c] sm:$0xff] %v76_v21   ;;  %81 = vst [vmem:[#allocation6 + $0x64] sm:$0xf] %v80_v22  ;;  %v82_v23 = vld [vmem:[%s8870_s2 + $0x64] sm:$0xf]  ;;  %v92_v28 = vld [vmem:[%s8870_s2 + $0x7c] sm:$0xff]  }
  0x10   :  { %v84_v24 = vld [vmem:[%s8870_s2 + $0x74] sm:$0xf]  ;;  %v86_v25 = vld [vmem:[%s8870_s2 + $0x68] sm:$0xf]  ;;  %83 = vst [vmem:[#allocation6 + $0x68] sm:$0xf] %v82_v23 }
  0x11   :  { %85 = vst [vmem:[#allocation6 + $0x6c] sm:$0xf] %v84_v24  ;;  %87 = vst [vmem:[#allocation6 + $0x70] sm:$0xf] %v86_v25  ;;  %v88_v26 = vld [vmem:[%s8870_s2 + $0x78] sm:$0xf] }
  0x12   :  { %v90_v27 = vld [vmem:[%s8870_s2 + $0x6c] sm:$0xf]  ;;  %89 = vst [vmem:[#allocation6 + $0x74] sm:$0xf] %v88_v26  ;;  %93 = vst [vmem:[#allocation6 + $0x7c] sm:$0xff] %v92_v28   ;;  %v108_v35 = vld [vmem:[%s8870_s2 + $0x9c] sm:$0xff]  }
  0x13   :  { %91 = vst [vmem:[#allocation6 + $0x78] sm:$0xf] %v90_v27  ;;  %v96_v29 = vld [vmem:[%s8870_s2 + $0x90] sm:$0xf]  ;;  %v98_v30 = vld [vmem:[%s8870_s2 + $0x84] sm:$0xf] }
  0x14   :  { %v100_v31 = vld [vmem:[%s8870_s2 + $0x94] sm:$0xf]  ;;  %97 = vst [vmem:[#allocation6 + $0x84] sm:$0xf] %v96_v29  ;;  %99 = vst [vmem:[#allocation6 + $0x88] sm:$0xf] %v98_v30 }
  0x15   :  { %101 = vst [vmem:[#allocation6 + $0x8c] sm:$0xf] %v100_v31  ;;  %v102_v32 = vld [vmem:[%s8870_s2 + $0x88] sm:$0xf]  ;;  %v104_v33 = vld [vmem:[%s8870_s2 + $0x98] sm:$0xf] }
  0x16   :  { %v106_v34 = vld [vmem:[%s8870_s2 + $0x8c] sm:$0xf]  ;;  %103 = vst [vmem:[#allocation6 + $0x90] sm:$0xf] %v102_v32  ;;  %105 = vst [vmem:[#allocation6 + $0x94] sm:$0xf] %v104_v33 }
  0x17   :  { %107 = vst [vmem:[#allocation6 + $0x98] sm:$0xf] %v106_v34  ;;  %v112_v36 = vld [vmem:[%s8870_s2 + $0xb0] sm:$0xf]  ;;  %v114_v37 = vld [vmem:[%s8870_s2 + $0xa4] sm:$0xf] }
  0x18   :  { %109 = vst [vmem:[#allocation6 + $0x9c] sm:$0xff] %v108_v35   ;;  %113 = vst [vmem:[#allocation6 + $0xa4] sm:$0xf] %v112_v36  ;;  %v116_v38 = vld [vmem:[%s8870_s2 + $0xb4] sm:$0xf]  ;;  %v124_v42 = vld [vmem:[%s8870_s2 + $0xbc] sm:$0xff]  }
  0x19   :  { %115 = vst [vmem:[#allocation6 + $0xa8] sm:$0xf] %v114_v37  ;;  %v118_v39 = vld [vmem:[%s8870_s2 + $0xa8] sm:$0xf]  ;;  %v120_v40 = vld [vmem:[%s8870_s2 + $0xb8] sm:$0xf] }
  0x1a   :  { %117 = vst [vmem:[#allocation6 + $0xac] sm:$0xf] %v116_v38  ;;  %119 = vst [vmem:[#allocation6 + $0xb0] sm:$0xf] %v118_v39  ;;  %v122_v41 = vld [vmem:[%s8870_s2 + $0xac] sm:$0xf] }
  0x1b   :  { %121 = vst [vmem:[#allocation6 + $0xb4] sm:$0xf] %v120_v40  ;;  %v128_v43 = vld [vmem:[%s8870_s2 + $0xd0] sm:$0xf]  ;;  %123 = vst [vmem:[#allocation6 + $0xb8] sm:$0xf] %v122_v41 }
  0x1c   :  { %125 = vst [vmem:[#allocation6 + $0xbc] sm:$0xff] %v124_v42   ;;  %129 = vst [vmem:[#allocation6 + $0xc4] sm:$0xf] %v128_v43  ;;  %v130_v44 = vld [vmem:[%s8870_s2 + $0xc4] sm:$0xf]  ;;  %v140_v49 = vld [vmem:[%s8870_s2 + $0xdc] sm:$0xff]  }
  0x1d   :  { %v132_v45 = vld [vmem:[%s8870_s2 + $0xd4] sm:$0xf]  ;;  %v134_v46 = vld [vmem:[%s8870_s2 + $0xc8] sm:$0xf]  ;;  %131 = vst [vmem:[#allocation6 + $0xc8] sm:$0xf] %v130_v44 }
  0x1e   :  { %133 = vst [vmem:[#allocation6 + $0xcc] sm:$0xf] %v132_v45  ;;  %135 = vst [vmem:[#allocation6 + $0xd0] sm:$0xf] %v134_v46  ;;  %v136_v47 = vld [vmem:[%s8870_s2 + $0xd8] sm:$0xf] }
  0x1f   :  { %v138_v48 = vld [vmem:[%s8870_s2 + $0xcc] sm:$0xf]  ;;  %137 = vst [vmem:[#allocation6 + $0xd4] sm:$0xf] %v136_v47  ;;  %141 = vst [vmem:[#allocation6 + $0xdc] sm:$0xff] %v140_v49   ;;  %v156_v56 = vld [vmem:[%s8870_s2 + $0xfc] sm:$0xff]  }
  0x20   :  { %139 = vst [vmem:[#allocation6 + $0xd8] sm:$0xf] %v138_v48  ;;  %v144_v50 = vld [vmem:[%s8870_s2 + $0xf0] sm:$0xf]  ;;  %v146_v51 = vld [vmem:[%s8870_s2 + $0xe4] sm:$0xf] }
  0x21   :  { %v148_v52 = vld [vmem:[%s8870_s2 + $0xf4] sm:$0xf]  ;;  %145 = vst [vmem:[#allocation6 + $0xe4] sm:$0xf] %v144_v50  ;;  %147 = vst [vmem:[#allocation6 + $0xe8] sm:$0xf] %v146_v51 }
  0x22   :  { %149 = vst [vmem:[#allocation6 + $0xec] sm:$0xf] %v148_v52  ;;  %v150_v53 = vld [vmem:[%s8870_s2 + $0xe8] sm:$0xf]  ;;  %v152_v54 = vld [vmem:[%s8870_s2 + $0xf8] sm:$0xf] }
  0x23   :  { %v154_v55 = vld [vmem:[%s8870_s2 + $0xec] sm:$0xf]  ;;  %151 = vst [vmem:[#allocation6 + $0xf0] sm:$0xf] %v150_v53  ;;  %153 = vst [vmem:[#allocation6 + $0xf4] sm:$0xf] %v152_v54 }
  0x24   :  { %155 = vst [vmem:[#allocation6 + $0xf8] sm:$0xf] %v154_v55  ;;  %v160_v57 = vld [vmem:[%s8870_s2 + $0x110] sm:$0xf]  ;;  %v162_v58 = vld [vmem:[%s8870_s2 + $0x104] sm:$0xf] }
  0x25   :  { %157 = vst [vmem:[#allocation6 + $0xfc] sm:$0xff] %v156_v56   ;;  %161 = vst [vmem:[#allocation6 + $0x104] sm:$0xf] %v160_v57  ;;  %v164_v59 = vld [vmem:[%s8870_s2 + $0x114] sm:$0xf]  ;;  %v172_v63 = vld [vmem:[%s8870_s2 + $0x11c] sm:$0xff]  }
  0x26   :  { %163 = vst [vmem:[#allocation6 + $0x108] sm:$0xf] %v162_v58  ;;  %v166_v60 = vld [vmem:[%s8870_s2 + $0x108] sm:$0xf]  ;;  %v168_v61 = vld [vmem:[%s8870_s2 + $0x118] sm:$0xf] }
  0x27   :  { %165 = vst [vmem:[#allocation6 + $0x10c] sm:$0xf] %v164_v59  ;;  %167 = vst [vmem:[#allocation6 + $0x110] sm:$0xf] %v166_v60  ;;  %v170_v62 = vld [vmem:[%s8870_s2 + $0x10c] sm:$0xf] }
  0x28   :  { %169 = vst [vmem:[#allocation6 + $0x114] sm:$0xf] %v168_v61  ;;  %v176_v0 = vld [vmem:[%s8870_s2 + $0x130] sm:$0xf]  ;;  %171 = vst [vmem:[#allocation6 + $0x118] sm:$0xf] %v170_v62 }
  0x29   :  { %173 = vst [vmem:[#allocation6 + $0x11c] sm:$0xff] %v172_v63   ;;  %177 = vst [vmem:[#allocation6 + $0x124] sm:$0xf] %v176_v0  ;;  %v178_v1 = vld [vmem:[%s8870_s2 + $0x124] sm:$0xf]  ;;  %v188_v6 = vld [vmem:[%s8870_s2 + $0x13c] sm:$0xff]  }
  0x2a   :  { %v180_v2 = vld [vmem:[%s8870_s2 + $0x134] sm:$0xf]  ;;  %v182_v3 = vld [vmem:[%s8870_s2 + $0x128] sm:$0xf]  ;;  %179 = vst [vmem:[#allocation6 + $0x128] sm:$0xf] %v178_v1 }
  0x2b   :  { %181 = vst [vmem:[#allocation6 + $0x12c] sm:$0xf] %v180_v2  ;;  %183 = vst [vmem:[#allocation6 + $0x130] sm:$0xf] %v182_v3  ;;  %v184_v4 = vld [vmem:[%s8870_s2 + $0x138] sm:$0xf] }
  0x2c   :  { %v186_v5 = vld [vmem:[%s8870_s2 + $0x12c] sm:$0xf]  ;;  %185 = vst [vmem:[#allocation6 + $0x134] sm:$0xf] %v184_v4  ;;  %189 = vst [vmem:[#allocation6 + $0x13c] sm:$0xff] %v188_v6   ;;  %v204_v13 = vld [vmem:[%s8870_s2 + $0x15c] sm:$0xff]  }
  0x2d   :  { %187 = vst [vmem:[#allocation6 + $0x138] sm:$0xf] %v186_v5  ;;  %v192_v7 = vld [vmem:[%s8870_s2 + $0x150] sm:$0xf]  ;;  %v194_v8 = vld [vmem:[%s8870_s2 + $0x144] sm:$0xf] }
  0x2e   :  { %v196_v9 = vld [vmem:[%s8870_s2 + $0x154] sm:$0xf]  ;;  %193 = vst [vmem:[#allocation6 + $0x144] sm:$0xf] %v192_v7  ;;  %195 = vst [vmem:[#allocation6 + $0x148] sm:$0xf] %v194_v8 }
  0x2f   :  { %197 = vst [vmem:[#allocation6 + $0x14c] sm:$0xf] %v196_v9  ;;  %v198_v10 = vld [vmem:[%s8870_s2 + $0x148] sm:$0xf]  ;;  %v200_v11 = vld [vmem:[%s8870_s2 + $0x158] sm:$0xf] }
  0x30   :  { %v202_v12 = vld [vmem:[%s8870_s2 + $0x14c] sm:$0xf]  ;;  %199 = vst [vmem:[#allocation6 + $0x150] sm:$0xf] %v198_v10  ;;  %201 = vst [vmem:[#allocation6 + $0x154] sm:$0xf] %v200_v11 }
  0x31   :  { %203 = vst [vmem:[#allocation6 + $0x158] sm:$0xf] %v202_v12  ;;  %v208_v14 = vld [vmem:[%s8870_s2 + $0x170] sm:$0xf]  ;;  %v210_v15 = vld [vmem:[%s8870_s2 + $0x164] sm:$0xf] }
  0x32   :  { %205 = vst [vmem:[#allocation6 + $0x15c] sm:$0xff] %v204_v13   ;;  %209 = vst [vmem:[#allocation6 + $0x164] sm:$0xf] %v208_v14  ;;  %v212_v16 = vld [vmem:[%s8870_s2 + $0x174] sm:$0xf]  ;;  %v220_v20 = vld [vmem:[%s8870_s2 + $0x17c] sm:$0xff]  }
  0x33   :  { %211 = vst [vmem:[#allocation6 + $0x168] sm:$0xf] %v210_v15  ;;  %v214_v17 = vld [vmem:[%s8870_s2 + $0x168] sm:$0xf]  ;;  %v216_v18 = vld [vmem:[%s8870_s2 + $0x178] sm:$0xf] }
  0x34   :  { %213 = vst [vmem:[#allocation6 + $0x16c] sm:$0xf] %v212_v16  ;;  %215 = vst [vmem:[#allocation6 + $0x170] sm:$0xf] %v214_v17  ;;  %v218_v19 = vld [vmem:[%s8870_s2 + $0x16c] sm:$0xf] }
  0x35   :  { %217 = vst [vmem:[#allocation6 + $0x174] sm:$0xf] %v216_v18  ;;  %v224_v21 = vld [vmem:[%s8870_s2 + $0x190] sm:$0xf]  ;;  %219 = vst [vmem:[#allocation6 + $0x178] sm:$0xf] %v218_v19 }
  0x36   :  { %221 = vst [vmem:[#allocation6 + $0x17c] sm:$0xff] %v220_v20   ;;  %225 = vst [vmem:[#allocation6 + $0x184] sm:$0xf] %v224_v21  ;;  %v226_v22 = vld [vmem:[%s8870_s2 + $0x184] sm:$0xf]  ;;  %v236_v27 = vld [vmem:[%s8870_s2 + $0x19c] sm:$0xff]  }
  0x37   :  { %v228_v23 = vld [vmem:[%s8870_s2 + $0x194] sm:$0xf]  ;;  %v230_v24 = vld [vmem:[%s8870_s2 + $0x188] sm:$0xf]  ;;  %227 = vst [vmem:[#allocation6 + $0x188] sm:$0xf] %v226_v22 }
  0x38   :  { %229 = vst [vmem:[#allocation6 + $0x18c] sm:$0xf] %v228_v23  ;;  %231 = vst [vmem:[#allocation6 + $0x190] sm:$0xf] %v230_v24  ;;  %v232_v25 = vld [vmem:[%s8870_s2 + $0x198] sm:$0xf] }
  0x39   :  { %v234_v26 = vld [vmem:[%s8870_s2 + $0x18c] sm:$0xf]  ;;  %233 = vst [vmem:[#allocation6 + $0x194] sm:$0xf] %v232_v25  ;;  %237 = vst [vmem:[#allocation6 + $0x19c] sm:$0xff] %v236_v27   ;;  %v252_v34 = vld [vmem:[%s8870_s2 + $0x1bc] sm:$0xff]  }
  0x3a   :  { %235 = vst [vmem:[#allocation6 + $0x198] sm:$0xf] %v234_v26  ;;  %v240_v28 = vld [vmem:[%s8870_s2 + $0x1b0] sm:$0xf]  ;;  %v242_v29 = vld [vmem:[%s8870_s2 + $0x1a4] sm:$0xf] }
  0x3b   :  { %v244_v30 = vld [vmem:[%s8870_s2 + $0x1b4] sm:$0xf]  ;;  %241 = vst [vmem:[#allocation6 + $0x1a4] sm:$0xf] %v240_v28  ;;  %243 = vst [vmem:[#allocation6 + $0x1a8] sm:$0xf] %v242_v29 }
  0x3c   :  { %245 = vst [vmem:[#allocation6 + $0x1ac] sm:$0xf] %v244_v30  ;;  %v246_v31 = vld [vmem:[%s8870_s2 + $0x1a8] sm:$0xf]  ;;  %v248_v32 = vld [vmem:[%s8870_s2 + $0x1b8] sm:$0xf] }
  0x3d   :  { %v250_v33 = vld [vmem:[%s8870_s2 + $0x1ac] sm:$0xf]  ;;  %247 = vst [vmem:[#allocation6 + $0x1b0] sm:$0xf] %v246_v31  ;;  %249 = vst [vmem:[#allocation6 + $0x1b4] sm:$0xf] %v248_v32 }
  0x3e   :  { %251 = vst [vmem:[#allocation6 + $0x1b8] sm:$0xf] %v250_v33  ;;  %v256_v35 = vld [vmem:[%s8870_s2 + $0x1d0] sm:$0xf]  ;;  %v258_v36 = vld [vmem:[%s8870_s2 + $0x1c4] sm:$0xf] }
  0x3f   :  { %253 = vst [vmem:[#allocation6 + $0x1bc] sm:$0xff] %v252_v34   ;;  %257 = vst [vmem:[#allocation6 + $0x1c4] sm:$0xf] %v256_v35  ;;  %v260_v37 = vld [vmem:[%s8870_s2 + $0x1d4] sm:$0xf]  ;;  %v268_v41 = vld [vmem:[%s8870_s2 + $0x1dc] sm:$0xff]  }
  0x40   :  { %259 = vst [vmem:[#allocation6 + $0x1c8] sm:$0xf] %v258_v36  ;;  %v262_v38 = vld [vmem:[%s8870_s2 + $0x1c8] sm:$0xf]  ;;  %v264_v39 = vld [vmem:[%s8870_s2 + $0x1d8] sm:$0xf] }
  0x41   :  { %261 = vst [vmem:[#allocation6 + $0x1cc] sm:$0xf] %v260_v37  ;;  %263 = vst [vmem:[#allocation6 + $0x1d0] sm:$0xf] %v262_v38  ;;  %v266_v40 = vld [vmem:[%s8870_s2 + $0x1cc] sm:$0xf] }
  0x42   :  { %265 = vst [vmem:[#allocation6 + $0x1d4] sm:$0xf] %v264_v39  ;;  %v272_v42 = vld [vmem:[%s8870_s2 + $0x1f0] sm:$0xf]  ;;  %267 = vst [vmem:[#allocation6 + $0x1d8] sm:$0xf] %v266_v40 }
  0x43   :  { %269 = vst [vmem:[#allocation6 + $0x1dc] sm:$0xff] %v268_v41   ;;  %273 = vst [vmem:[#allocation6 + $0x1e4] sm:$0xf] %v272_v42  ;;  %v274_v43 = vld [vmem:[%s8870_s2 + $0x1e4] sm:$0xf]  ;;  %v284_v48 = vld [vmem:[%s8870_s2 + $0x1fc] sm:$0xff]  }
  0x44   :  { %v276_v44 = vld [vmem:[%s8870_s2 + $0x1f4] sm:$0xf]  ;;  %v278_v45 = vld [vmem:[%s8870_s2 + $0x1e8] sm:$0xf]  ;;  %275 = vst [vmem:[#allocation6 + $0x1e8] sm:$0xf] %v274_v43 }
  0x45   :  { %277 = vst [vmem:[#allocation6 + $0x1ec] sm:$0xf] %v276_v44  ;;  %279 = vst [vmem:[#allocation6 + $0x1f0] sm:$0xf] %v278_v45  ;;  %v280_v46 = vld [vmem:[%s8870_s2 + $0x1f8] sm:$0xf] }
  0x46   :  { %v282_v47 = vld [vmem:[%s8870_s2 + $0x1ec] sm:$0xf]  ;;  %281 = vst [vmem:[#allocation6 + $0x1f4] sm:$0xf] %v280_v46  ;;  %285 = vst [vmem:[#allocation6 + $0x1fc] sm:$0xff] %v284_v48   ;;  %v300_v55 = vld [vmem:[%s8870_s2 + $0x21c] sm:$0xff]  }
  0x47   :  { %283 = vst [vmem:[#allocation6 + $0x1f8] sm:$0xf] %v282_v47  ;;  %v288_v49 = vld [vmem:[%s8870_s2 + $0x210] sm:$0xf]  ;;  %v290_v50 = vld [vmem:[%s8870_s2 + $0x204] sm:$0xf] }
  0x48   :  { %v292_v51 = vld [vmem:[%s8870_s2 + $0x214] sm:$0xf]  ;;  %289 = vst [vmem:[#allocation6 + $0x204] sm:$0xf] %v288_v49  ;;  %291 = vst [vmem:[#allocation6 + $0x208] sm:$0xf] %v290_v50 }
  0x49   :  { %293 = vst [vmem:[#allocation6 + $0x20c] sm:$0xf] %v292_v51  ;;  %v294_v52 = vld [vmem:[%s8870_s2 + $0x208] sm:$0xf]  ;;  %v296_v53 = vld [vmem:[%s8870_s2 + $0x218] sm:$0xf] }
  0x4a   :  { %v298_v54 = vld [vmem:[%s8870_s2 + $0x20c] sm:$0xf]  ;;  %295 = vst [vmem:[#allocation6 + $0x210] sm:$0xf] %v294_v52  ;;  %297 = vst [vmem:[#allocation6 + $0x214] sm:$0xf] %v296_v53 }
  0x4b   :  { %299 = vst [vmem:[#allocation6 + $0x218] sm:$0xf] %v298_v54  ;;  %v304_v56 = vld [vmem:[%s8870_s2 + $0x230] sm:$0xf]  ;;  %v306_v57 = vld [vmem:[%s8870_s2 + $0x224] sm:$0xf] }
  0x4c   :  { %301 = vst [vmem:[#allocation6 + $0x21c] sm:$0xff] %v300_v55   ;;  %305 = vst [vmem:[#allocation6 + $0x224] sm:$0xf] %v304_v56  ;;  %v308_v58 = vld [vmem:[%s8870_s2 + $0x234] sm:$0xf]  ;;  %v316_v62 = vld [vmem:[%s8870_s2 + $0x23c] sm:$0xff]  }
  0x4d   :  { %307 = vst [vmem:[#allocation6 + $0x228] sm:$0xf] %v306_v57  ;;  %v310_v59 = vld [vmem:[%s8870_s2 + $0x228] sm:$0xf]  ;;  %v312_v60 = vld [vmem:[%s8870_s2 + $0x238] sm:$0xf] }
  0x4e   :  { %309 = vst [vmem:[#allocation6 + $0x22c] sm:$0xf] %v308_v58  ;;  %311 = vst [vmem:[#allocation6 + $0x230] sm:$0xf] %v310_v59  ;;  %v314_v61 = vld [vmem:[%s8870_s2 + $0x22c] sm:$0xf] }
  0x4f   :  { %313 = vst [vmem:[#allocation6 + $0x234] sm:$0xf] %v312_v60  ;;  %v320_v63 = vld [vmem:[%s8870_s2 + $0x250] sm:$0xf]  ;;  %315 = vst [vmem:[#allocation6 + $0x238] sm:$0xf] %v314_v61 }
  0x50   :  { %317 = vst [vmem:[#allocation6 + $0x23c] sm:$0xff] %v316_v62   ;;  %321 = vst [vmem:[#allocation6 + $0x244] sm:$0xf] %v320_v63  ;;  %v322_v0 = vld [vmem:[%s8870_s2 + $0x244] sm:$0xf]  ;;  %v332_v5 = vld [vmem:[%s8870_s2 + $0x25c] sm:$0xff]  }
  0x51   :  { %v324_v1 = vld [vmem:[%s8870_s2 + $0x254] sm:$0xf]  ;;  %v326_v2 = vld [vmem:[%s8870_s2 + $0x248] sm:$0xf]  ;;  %323 = vst [vmem:[#allocation6 + $0x248] sm:$0xf] %v322_v0 }
  0x52   :  { %325 = vst [vmem:[#allocation6 + $0x24c] sm:$0xf] %v324_v1  ;;  %327 = vst [vmem:[#allocation6 + $0x250] sm:$0xf] %v326_v2  ;;  %v328_v3 = vld [vmem:[%s8870_s2 + $0x258] sm:$0xf] }
  0x53   :  { %v330_v4 = vld [vmem:[%s8870_s2 + $0x24c] sm:$0xf]  ;;  %329 = vst [vmem:[#allocation6 + $0x254] sm:$0xf] %v328_v3  ;;  %333 = vst [vmem:[#allocation6 + $0x25c] sm:$0xff] %v332_v5   ;;  %v348_v12 = vld [vmem:[%s8870_s2 + $0x27c] sm:$0xff]  }
  0x54   :  { %331 = vst [vmem:[#allocation6 + $0x258] sm:$0xf] %v330_v4  ;;  %v336_v6 = vld [vmem:[%s8870_s2 + $0x270] sm:$0xf]  ;;  %v338_v7 = vld [vmem:[%s8870_s2 + $0x264] sm:$0xf] }
  0x55   :  { %v340_v8 = vld [vmem:[%s8870_s2 + $0x274] sm:$0xf]  ;;  %337 = vst [vmem:[#allocation6 + $0x264] sm:$0xf] %v336_v6  ;;  %339 = vst [vmem:[#allocation6 + $0x268] sm:$0xf] %v338_v7 }
  0x56   :  { %341 = vst [vmem:[#allocation6 + $0x26c] sm:$0xf] %v340_v8  ;;  %v342_v9 = vld [vmem:[%s8870_s2 + $0x268] sm:$0xf]  ;;  %v344_v10 = vld [vmem:[%s8870_s2 + $0x278] sm:$0xf] }
  0x57   :  { %v346_v11 = vld [vmem:[%s8870_s2 + $0x26c] sm:$0xf]  ;;  %343 = vst [vmem:[#allocation6 + $0x270] sm:$0xf] %v342_v9  ;;  %345 = vst [vmem:[#allocation6 + $0x274] sm:$0xf] %v344_v10 }
  0x58   :  { %347 = vst [vmem:[#allocation6 + $0x278] sm:$0xf] %v346_v11  ;;  %v352_v13 = vld [vmem:[%s8870_s2 + $0x290] sm:$0xf]  ;;  %v354_v14 = vld [vmem:[%s8870_s2 + $0x284] sm:$0xf] }
  0x59   :  { %349 = vst [vmem:[#allocation6 + $0x27c] sm:$0xff] %v348_v12   ;;  %353 = vst [vmem:[#allocation6 + $0x284] sm:$0xf] %v352_v13  ;;  %v356_v15 = vld [vmem:[%s8870_s2 + $0x294] sm:$0xf]  ;;  %v364_v19 = vld [vmem:[%s8870_s2 + $0x29c] sm:$0xff]  }
  0x5a   :  { %355 = vst [vmem:[#allocation6 + $0x288] sm:$0xf] %v354_v14  ;;  %v358_v16 = vld [vmem:[%s8870_s2 + $0x288] sm:$0xf]  ;;  %v360_v17 = vld [vmem:[%s8870_s2 + $0x298] sm:$0xf] }
  0x5b   :  { %357 = vst [vmem:[#allocation6 + $0x28c] sm:$0xf] %v356_v15  ;;  %359 = vst [vmem:[#allocation6 + $0x290] sm:$0xf] %v358_v16  ;;  %v362_v18 = vld [vmem:[%s8870_s2 + $0x28c] sm:$0xf] }
  0x5c   :  { %361 = vst [vmem:[#allocation6 + $0x294] sm:$0xf] %v360_v17  ;;  %v368_v20 = vld [vmem:[%s8870_s2 + $0x2b0] sm:$0xf]  ;;  %363 = vst [vmem:[#allocation6 + $0x298] sm:$0xf] %v362_v18 }
  0x5d   :  { %365 = vst [vmem:[#allocation6 + $0x29c] sm:$0xff] %v364_v19   ;;  %369 = vst [vmem:[#allocation6 + $0x2a4] sm:$0xf] %v368_v20  ;;  %v370_v21 = vld [vmem:[%s8870_s2 + $0x2a4] sm:$0xf]  ;;  %v380_v26 = vld [vmem:[%s8870_s2 + $0x2bc] sm:$0xff]  }
  0x5e   :  { %v372_v22 = vld [vmem:[%s8870_s2 + $0x2b4] sm:$0xf]  ;;  %v374_v23 = vld [vmem:[%s8870_s2 + $0x2a8] sm:$0xf]  ;;  %371 = vst [vmem:[#allocation6 + $0x2a8] sm:$0xf] %v370_v21 }
  0x5f   :  { %373 = vst [vmem:[#allocation6 + $0x2ac] sm:$0xf] %v372_v22  ;;  %375 = vst [vmem:[#allocation6 + $0x2b0] sm:$0xf] %v374_v23  ;;  %v376_v24 = vld [vmem:[%s8870_s2 + $0x2b8] sm:$0xf] }
  0x60   :  { %v378_v25 = vld [vmem:[%s8870_s2 + $0x2ac] sm:$0xf]  ;;  %377 = vst [vmem:[#allocation6 + $0x2b4] sm:$0xf] %v376_v24  ;;  %381 = vst [vmem:[#allocation6 + $0x2bc] sm:$0xff] %v380_v26   ;;  %v396_v33 = vld [vmem:[%s8870_s2 + $0x2dc] sm:$0xff]  }
  0x61   :  { %379 = vst [vmem:[#allocation6 + $0x2b8] sm:$0xf] %v378_v25  ;;  %v384_v27 = vld [vmem:[%s8870_s2 + $0x2d0] sm:$0xf]  ;;  %v386_v28 = vld [vmem:[%s8870_s2 + $0x2c4] sm:$0xf] }
  0x62   :  { %v388_v29 = vld [vmem:[%s8870_s2 + $0x2d4] sm:$0xf]  ;;  %385 = vst [vmem:[#allocation6 + $0x2c4] sm:$0xf] %v384_v27  ;;  %387 = vst [vmem:[#allocation6 + $0x2c8] sm:$0xf] %v386_v28 }
  0x63   :  { %389 = vst [vmem:[#allocation6 + $0x2cc] sm:$0xf] %v388_v29  ;;  %v390_v30 = vld [vmem:[%s8870_s2 + $0x2c8] sm:$0xf]  ;;  %v392_v31 = vld [vmem:[%s8870_s2 + $0x2d8] sm:$0xf] }
  0x64   :  { %v394_v32 = vld [vmem:[%s8870_s2 + $0x2cc] sm:$0xf]  ;;  %391 = vst [vmem:[#allocation6 + $0x2d0] sm:$0xf] %v390_v30  ;;  %393 = vst [vmem:[#allocation6 + $0x2d4] sm:$0xf] %v392_v31 }
  0x65   :  { %395 = vst [vmem:[#allocation6 + $0x2d8] sm:$0xf] %v394_v32  ;;  %v400_v34 = vld [vmem:[%s8870_s2 + $0x2f0] sm:$0xf]  ;;  %v402_v35 = vld [vmem:[%s8870_s2 + $0x2e4] sm:$0xf] }
  0x66   :  { %397 = vst [vmem:[#allocation6 + $0x2dc] sm:$0xff] %v396_v33   ;;  %401 = vst [vmem:[#allocation6 + $0x2e4] sm:$0xf] %v400_v34  ;;  %v404_v36 = vld [vmem:[%s8870_s2 + $0x2f4] sm:$0xf]  ;;  %v412_v40 = vld [vmem:[%s8870_s2 + $0x2fc] sm:$0xff]  }
  0x67   :  { %403 = vst [vmem:[#allocation6 + $0x2e8] sm:$0xf] %v402_v35  ;;  %v406_v37 = vld [vmem:[%s8870_s2 + $0x2e8] sm:$0xf]  ;;  %v408_v38 = vld [vmem:[%s8870_s2 + $0x2f8] sm:$0xf] }
  0x68   :  { %405 = vst [vmem:[#allocation6 + $0x2ec] sm:$0xf] %v404_v36  ;;  %407 = vst [vmem:[#allocation6 + $0x2f0] sm:$0xf] %v406_v37  ;;  %v410_v39 = vld [vmem:[%s8870_s2 + $0x2ec] sm:$0xf] }
  0x69   :  { %409 = vst [vmem:[#allocation6 + $0x2f4] sm:$0xf] %v408_v38  ;;  %v416_v41 = vld [vmem:[%s8870_s2 + $0x310] sm:$0xf]  ;;  %411 = vst [vmem:[#allocation6 + $0x2f8] sm:$0xf] %v410_v39 }
  0x6a   :  { %413 = vst [vmem:[#allocation6 + $0x2fc] sm:$0xff] %v412_v40   ;;  %417 = vst [vmem:[#allocation6 + $0x304] sm:$0xf] %v416_v41  ;;  %v418_v42 = vld [vmem:[%s8870_s2 + $0x304] sm:$0xf]  ;;  %v428_v47 = vld [vmem:[%s8870_s2 + $0x31c] sm:$0xff]  }
  0x6b   :  { %v420_v43 = vld [vmem:[%s8870_s2 + $0x314] sm:$0xf]  ;;  %v422_v44 = vld [vmem:[%s8870_s2 + $0x308] sm:$0xf]  ;;  %419 = vst [vmem:[#allocation6 + $0x308] sm:$0xf] %v418_v42 }
  0x6c   :  { %421 = vst [vmem:[#allocation6 + $0x30c] sm:$0xf] %v420_v43  ;;  %423 = vst [vmem:[#allocation6 + $0x310] sm:$0xf] %v422_v44  ;;  %v424_v45 = vld [vmem:[%s8870_s2 + $0x318] sm:$0xf] }
  0x6d   :  { %v426_v46 = vld [vmem:[%s8870_s2 + $0x30c] sm:$0xf]  ;;  %425 = vst [vmem:[#allocation6 + $0x314] sm:$0xf] %v424_v45  ;;  %429 = vst [vmem:[#allocation6 + $0x31c] sm:$0xff] %v428_v47   ;;  %v444_v54 = vld [vmem:[%s8870_s2 + $0x33c] sm:$0xff]  }
  0x6e   :  { %427 = vst [vmem:[#allocation6 + $0x318] sm:$0xf] %v426_v46  ;;  %v432_v48 = vld [vmem:[%s8870_s2 + $0x330] sm:$0xf]  ;;  %v434_v49 = vld [vmem:[%s8870_s2 + $0x324] sm:$0xf] }
  0x6f   :  { %v436_v50 = vld [vmem:[%s8870_s2 + $0x334] sm:$0xf]  ;;  %433 = vst [vmem:[#allocation6 + $0x324] sm:$0xf] %v432_v48  ;;  %435 = vst [vmem:[#allocation6 + $0x328] sm:$0xf] %v434_v49 }
  0x70   :  { %437 = vst [vmem:[#allocation6 + $0x32c] sm:$0xf] %v436_v50  ;;  %v438_v51 = vld [vmem:[%s8870_s2 + $0x328] sm:$0xf]  ;;  %v440_v52 = vld [vmem:[%s8870_s2 + $0x338] sm:$0xf] }
  0x71   :  { %v442_v53 = vld [vmem:[%s8870_s2 + $0x32c] sm:$0xf]  ;;  %439 = vst [vmem:[#allocation6 + $0x330] sm:$0xf] %v438_v51  ;;  %441 = vst [vmem:[#allocation6 + $0x334] sm:$0xf] %v440_v52 }
  0x72   :  { %443 = vst [vmem:[#allocation6 + $0x338] sm:$0xf] %v442_v53  ;;  %v448_v55 = vld [vmem:[%s8870_s2 + $0x350] sm:$0xf]  ;;  %v450_v56 = vld [vmem:[%s8870_s2 + $0x344] sm:$0xf] }
  0x73   :  { %445 = vst [vmem:[#allocation6 + $0x33c] sm:$0xff] %v444_v54   ;;  %449 = vst [vmem:[#allocation6 + $0x344] sm:$0xf] %v448_v55  ;;  %v452_v57 = vld [vmem:[%s8870_s2 + $0x354] sm:$0xf]  ;;  %v460_v61 = vld [vmem:[%s8870_s2 + $0x35c] sm:$0xff]  }
  0x74   :  { %451 = vst [vmem:[#allocation6 + $0x348] sm:$0xf] %v450_v56  ;;  %v454_v58 = vld [vmem:[%s8870_s2 + $0x348] sm:$0xf]  ;;  %v456_v59 = vld [vmem:[%s8870_s2 + $0x358] sm:$0xf] }
  0x75   :  { %453 = vst [vmem:[#allocation6 + $0x34c] sm:$0xf] %v452_v57  ;;  %455 = vst [vmem:[#allocation6 + $0x350] sm:$0xf] %v454_v58  ;;  %v458_v60 = vld [vmem:[%s8870_s2 + $0x34c] sm:$0xf] }
  0x76   :  { %457 = vst [vmem:[#allocation6 + $0x354] sm:$0xf] %v456_v59  ;;  %v464_v62 = vld [vmem:[%s8870_s2 + $0x370] sm:$0xf]  ;;  %459 = vst [vmem:[#allocation6 + $0x358] sm:$0xf] %v458_v60 }
  0x77   :  { %461 = vst [vmem:[#allocation6 + $0x35c] sm:$0xff] %v460_v61   ;;  %465 = vst [vmem:[#allocation6 + $0x364] sm:$0xf] %v464_v62  ;;  %v466_v63 = vld [vmem:[%s8870_s2 + $0x364] sm:$0xf]  ;;  %v476_v4 = vld [vmem:[%s8870_s2 + $0x37c] sm:$0xff]  }
  0x78   :  { %v468_v0 = vld [vmem:[%s8870_s2 + $0x374] sm:$0xf]  ;;  %v470_v1 = vld [vmem:[%s8870_s2 + $0x368] sm:$0xf]  ;;  %467 = vst [vmem:[#allocation6 + $0x368] sm:$0xf] %v466_v63 }
  0x79   :  { %469 = vst [vmem:[#allocation6 + $0x36c] sm:$0xf] %v468_v0  ;;  %471 = vst [vmem:[#allocation6 + $0x370] sm:$0xf] %v470_v1  ;;  %v472_v2 = vld [vmem:[%s8870_s2 + $0x378] sm:$0xf] }
  0x7a   :  { %v474_v3 = vld [vmem:[%s8870_s2 + $0x36c] sm:$0xf]  ;;  %473 = vst [vmem:[#allocation6 + $0x374] sm:$0xf] %v472_v2  ;;  %477 = vst [vmem:[#allocation6 + $0x37c] sm:$0xff] %v476_v4   ;;  %v492_v11 = vld [vmem:[%s8870_s2 + $0x39c] sm:$0xff]  }
  0x7b   :  { %475 = vst [vmem:[#allocation6 + $0x378] sm:$0xf] %v474_v3  ;;  %v480_v5 = vld [vmem:[%s8870_s2 + $0x390] sm:$0xf]  ;;  %v482_v6 = vld [vmem:[%s8870_s2 + $0x384] sm:$0xf] }
  0x7c   :  { %v484_v7 = vld [vmem:[%s8870_s2 + $0x394] sm:$0xf]  ;;  %481 = vst [vmem:[#allocation6 + $0x384] sm:$0xf] %v480_v5  ;;  %483 = vst [vmem:[#allocation6 + $0x388] sm:$0xf] %v482_v6 }
  0x7d   :  { %485 = vst [vmem:[#allocation6 + $0x38c] sm:$0xf] %v484_v7  ;;  %v486_v8 = vld [vmem:[%s8870_s2 + $0x388] sm:$0xf]  ;;  %v488_v9 = vld [vmem:[%s8870_s2 + $0x398] sm:$0xf] }
  0x7e   :  { %v490_v10 = vld [vmem:[%s8870_s2 + $0x38c] sm:$0xf]  ;;  %487 = vst [vmem:[#allocation6 + $0x390] sm:$0xf] %v486_v8  ;;  %489 = vst [vmem:[#allocation6 + $0x394] sm:$0xf] %v488_v9 }
  0x7f   :  { %491 = vst [vmem:[#allocation6 + $0x398] sm:$0xf] %v490_v10  ;;  %v496_v12 = vld [vmem:[%s8870_s2 + $0x3b0] sm:$0xf]  ;;  %v498_v13 = vld [vmem:[%s8870_s2 + $0x3a4] sm:$0xf] }
  0x80   :  { %493 = vst [vmem:[#allocation6 + $0x39c] sm:$0xff] %v492_v11   ;;  %497 = vst [vmem:[#allocation6 + $0x3a4] sm:$0xf] %v496_v12  ;;  %v500_v14 = vld [vmem:[%s8870_s2 + $0x3b4] sm:$0xf]  ;;  %v508_v18 = vld [vmem:[%s8870_s2 + $0x3bc] sm:$0xff]  }
  0x81   :  { %499 = vst [vmem:[#allocation6 + $0x3a8] sm:$0xf] %v498_v13  ;;  %v502_v15 = vld [vmem:[%s8870_s2 + $0x3a8] sm:$0xf]  ;;  %v504_v16 = vld [vmem:[%s8870_s2 + $0x3b8] sm:$0xf] }
  0x82   :  { %501 = vst [vmem:[#allocation6 + $0x3ac] sm:$0xf] %v500_v14  ;;  %503 = vst [vmem:[#allocation6 + $0x3b0] sm:$0xf] %v502_v15  ;;  %v506_v17 = vld [vmem:[%s8870_s2 + $0x3ac] sm:$0xf] }
  0x83   :  { %505 = vst [vmem:[#allocation6 + $0x3b4] sm:$0xf] %v504_v16  ;;  %v512_v19 = vld [vmem:[%s8870_s2 + $0x3d0] sm:$0xf]  ;;  %507 = vst [vmem:[#allocation6 + $0x3b8] sm:$0xf] %v506_v17 }
  0x84   :  { %509 = vst [vmem:[#allocation6 + $0x3bc] sm:$0xff] %v508_v18   ;;  %513 = vst [vmem:[#allocation6 + $0x3c4] sm:$0xf] %v512_v19  ;;  %v514_v20 = vld [vmem:[%s8870_s2 + $0x3c4] sm:$0xf]  ;;  %v524_v25 = vld [vmem:[%s8870_s2 + $0x3dc] sm:$0xff]  }
  0x85   :  { %v516_v21 = vld [vmem:[%s8870_s2 + $0x3d4] sm:$0xf]  ;;  %v518_v22 = vld [vmem:[%s8870_s2 + $0x3c8] sm:$0xf]  ;;  %515 = vst [vmem:[#allocation6 + $0x3c8] sm:$0xf] %v514_v20 }
  0x86   :  { %517 = vst [vmem:[#allocation6 + $0x3cc] sm:$0xf] %v516_v21  ;;  %519 = vst [vmem:[#allocation6 + $0x3d0] sm:$0xf] %v518_v22  ;;  %v520_v23 = vld [vmem:[%s8870_s2 + $0x3d8] sm:$0xf] }
  0x87   :  { %v522_v24 = vld [vmem:[%s8870_s2 + $0x3cc] sm:$0xf]  ;;  %521 = vst [vmem:[#allocation6 + $0x3d4] sm:$0xf] %v520_v23  ;;  %525 = vst [vmem:[#allocation6 + $0x3dc] sm:$0xff] %v524_v25   ;;  %v540_v32 = vld [vmem:[%s8870_s2 + $0x3fc] sm:$0xff]  }
  0x88   :  { %523 = vst [vmem:[#allocation6 + $0x3d8] sm:$0xf] %v522_v24  ;;  %v528_v26 = vld [vmem:[%s8870_s2 + $0x3f0] sm:$0xf]  ;;  %v530_v27 = vld [vmem:[%s8870_s2 + $0x3e4] sm:$0xf] }
  0x89   :  { %v532_v28 = vld [vmem:[%s8870_s2 + $0x3f4] sm:$0xf]  ;;  %529 = vst [vmem:[#allocation6 + $0x3e4] sm:$0xf] %v528_v26  ;;  %531 = vst [vmem:[#allocation6 + $0x3e8] sm:$0xf] %v530_v27 }
  0x8a   :  { %533 = vst [vmem:[#allocation6 + $0x3ec] sm:$0xf] %v532_v28  ;;  %v534_v29 = vld [vmem:[%s8870_s2 + $0x3e8] sm:$0xf]  ;;  %v536_v30 = vld [vmem:[%s8870_s2 + $0x3f8] sm:$0xf] }
  0x8b   :  { %v538_v31 = vld [vmem:[%s8870_s2 + $0x3ec] sm:$0xf]  ;;  %535 = vst [vmem:[#allocation6 + $0x3f0] sm:$0xf] %v534_v29  ;;  %537 = vst [vmem:[#allocation6 + $0x3f4] sm:$0xf] %v536_v30 }
  0x8c   :  { %539 = vst [vmem:[#allocation6 + $0x3f8] sm:$0xf] %v538_v31  ;;  %v544_v33 = vld [vmem:[%s8870_s2 + $0x410] sm:$0xf]  ;;  %v546_v34 = vld [vmem:[%s8870_s2 + $0x404] sm:$0xf] }
  0x8d   :  { %541 = vst [vmem:[#allocation6 + $0x3fc] sm:$0xff] %v540_v32   ;;  %545 = vst [vmem:[#allocation6 + $0x404] sm:$0xf] %v544_v33  ;;  %v548_v35 = vld [vmem:[%s8870_s2 + $0x414] sm:$0xf]  ;;  %v556_v39 = vld [vmem:[%s8870_s2 + $0x41c] sm:$0xff]  }
  0x8e   :  { %547 = vst [vmem:[#allocation6 + $0x408] sm:$0xf] %v546_v34  ;;  %v550_v36 = vld [vmem:[%s8870_s2 + $0x408] sm:$0xf]  ;;  %v552_v37 = vld [vmem:[%s8870_s2 + $0x418] sm:$0xf] }
  0x8f   :  { %549 = vst [vmem:[#allocation6 + $0x40c] sm:$0xf] %v548_v35  ;;  %551 = vst [vmem:[#allocation6 + $0x410] sm:$0xf] %v550_v36  ;;  %v554_v38 = vld [vmem:[%s8870_s2 + $0x40c] sm:$0xf] }
  0x90   :  { %553 = vst [vmem:[#allocation6 + $0x414] sm:$0xf] %v552_v37  ;;  %v560_v40 = vld [vmem:[%s8870_s2 + $0x430] sm:$0xf]  ;;  %555 = vst [vmem:[#allocation6 + $0x418] sm:$0xf] %v554_v38 }
  0x91   :  { %557 = vst [vmem:[#allocation6 + $0x41c] sm:$0xff] %v556_v39   ;;  %561 = vst [vmem:[#allocation6 + $0x424] sm:$0xf] %v560_v40  ;;  %v562_v41 = vld [vmem:[%s8870_s2 + $0x424] sm:$0xf]  ;;  %v572_v46 = vld [vmem:[%s8870_s2 + $0x43c] sm:$0xff]  }
  0x92   :  { %v564_v42 = vld [vmem:[%s8870_s2 + $0x434] sm:$0xf]  ;;  %v566_v43 = vld [vmem:[%s8870_s2 + $0x428] sm:$0xf]  ;;  %563 = vst [vmem:[#allocation6 + $0x428] sm:$0xf] %v562_v41 }
  0x93   :  { %565 = vst [vmem:[#allocation6 + $0x42c] sm:$0xf] %v564_v42  ;;  %567 = vst [vmem:[#allocation6 + $0x430] sm:$0xf] %v566_v43  ;;  %v568_v44 = vld [vmem:[%s8870_s2 + $0x438] sm:$0xf] }
  0x94   :  { %v570_v45 = vld [vmem:[%s8870_s2 + $0x42c] sm:$0xf]  ;;  %569 = vst [vmem:[#allocation6 + $0x434] sm:$0xf] %v568_v44  ;;  %573 = vst [vmem:[#allocation6 + $0x43c] sm:$0xff] %v572_v46   ;;  %v588_v53 = vld [vmem:[%s8870_s2 + $0x45c] sm:$0xff]  }
  0x95   :  { %571 = vst [vmem:[#allocation6 + $0x438] sm:$0xf] %v570_v45  ;;  %v576_v47 = vld [vmem:[%s8870_s2 + $0x450] sm:$0xf]  ;;  %v578_v48 = vld [vmem:[%s8870_s2 + $0x444] sm:$0xf] }
  0x96   :  { %v580_v49 = vld [vmem:[%s8870_s2 + $0x454] sm:$0xf]  ;;  %577 = vst [vmem:[#allocation6 + $0x444] sm:$0xf] %v576_v47  ;;  %579 = vst [vmem:[#allocation6 + $0x448] sm:$0xf] %v578_v48 }
  0x97   :  { %581 = vst [vmem:[#allocation6 + $0x44c] sm:$0xf] %v580_v49  ;;  %v582_v50 = vld [vmem:[%s8870_s2 + $0x448] sm:$0xf]  ;;  %v584_v51 = vld [vmem:[%s8870_s2 + $0x458] sm:$0xf] }
  0x98   :  { %v586_v52 = vld [vmem:[%s8870_s2 + $0x44c] sm:$0xf]  ;;  %583 = vst [vmem:[#allocation6 + $0x450] sm:$0xf] %v582_v50  ;;  %585 = vst [vmem:[#allocation6 + $0x454] sm:$0xf] %v584_v51 }
  0x99   :  { %587 = vst [vmem:[#allocation6 + $0x458] sm:$0xf] %v586_v52  ;;  %v592_v54 = vld [vmem:[%s8870_s2 + $0x470] sm:$0xf]  ;;  %v594_v55 = vld [vmem:[%s8870_s2 + $0x464] sm:$0xf] }
  0x9a   :  { %589 = vst [vmem:[#allocation6 + $0x45c] sm:$0xff] %v588_v53   ;;  %593 = vst [vmem:[#allocation6 + $0x464] sm:$0xf] %v592_v54  ;;  %v596_v56 = vld [vmem:[%s8870_s2 + $0x474] sm:$0xf]  ;;  %v604_v60 = vld [vmem:[%s8870_s2 + $0x47c] sm:$0xff]  }
  0x9b   :  { %595 = vst [vmem:[#allocation6 + $0x468] sm:$0xf] %v594_v55  ;;  %v598_v57 = vld [vmem:[%s8870_s2 + $0x468] sm:$0xf]  ;;  %v600_v58 = vld [vmem:[%s8870_s2 + $0x478] sm:$0xf] }
  0x9c   :  { %597 = vst [vmem:[#allocation6 + $0x46c] sm:$0xf] %v596_v56  ;;  %599 = vst [vmem:[#allocation6 + $0x470] sm:$0xf] %v598_v57  ;;  %v602_v59 = vld [vmem:[%s8870_s2 + $0x46c] sm:$0xf] }
  0x9d   :  { %601 = vst [vmem:[#allocation6 + $0x474] sm:$0xf] %v600_v58  ;;  %v608_v61 = vld [vmem:[%s8870_s2 + $0x490] sm:$0xf]  ;;  %603 = vst [vmem:[#allocation6 + $0x478] sm:$0xf] %v602_v59 }
  0x9e   :  { %605 = vst [vmem:[#allocation6 + $0x47c] sm:$0xff] %v604_v60   ;;  %609 = vst [vmem:[#allocation6 + $0x484] sm:$0xf] %v608_v61  ;;  %v610_v62 = vld [vmem:[%s8870_s2 + $0x484] sm:$0xf]  ;;  %v620_v3 = vld [vmem:[%s8870_s2 + $0x49c] sm:$0xff]  }
  0x9f   :  { %v612_v63 = vld [vmem:[%s8870_s2 + $0x494] sm:$0xf]  ;;  %v614_v0 = vld [vmem:[%s8870_s2 + $0x488] sm:$0xf]  ;;  %611 = vst [vmem:[#allocation6 + $0x488] sm:$0xf] %v610_v62 }
  0xa0   :  { %613 = vst [vmem:[#allocation6 + $0x48c] sm:$0xf] %v612_v63  ;;  %615 = vst [vmem:[#allocation6 + $0x490] sm:$0xf] %v614_v0  ;;  %v616_v1 = vld [vmem:[%s8870_s2 + $0x498] sm:$0xf] }
  0xa1   :  { %v618_v2 = vld [vmem:[%s8870_s2 + $0x48c] sm:$0xf]  ;;  %617 = vst [vmem:[#allocation6 + $0x494] sm:$0xf] %v616_v1  ;;  %621 = vst [vmem:[#allocation6 + $0x49c] sm:$0xff] %v620_v3   ;;  %v636_v10 = vld [vmem:[%s8870_s2 + $0x4bc] sm:$0xff]  }
  0xa2   :  { %619 = vst [vmem:[#allocation6 + $0x498] sm:$0xf] %v618_v2  ;;  %v624_v4 = vld [vmem:[%s8870_s2 + $0x4b0] sm:$0xf]  ;;  %v626_v5 = vld [vmem:[%s8870_s2 + $0x4a4] sm:$0xf] }
  0xa3   :  { %v628_v6 = vld [vmem:[%s8870_s2 + $0x4b4] sm:$0xf]  ;;  %625 = vst [vmem:[#allocation6 + $0x4a4] sm:$0xf] %v624_v4  ;;  %627 = vst [vmem:[#allocation6 + $0x4a8] sm:$0xf] %v626_v5 }
  0xa4   :  { %629 = vst [vmem:[#allocation6 + $0x4ac] sm:$0xf] %v628_v6  ;;  %v630_v7 = vld [vmem:[%s8870_s2 + $0x4a8] sm:$0xf]  ;;  %v632_v8 = vld [vmem:[%s8870_s2 + $0x4b8] sm:$0xf] }
  0xa5   :  { %v634_v9 = vld [vmem:[%s8870_s2 + $0x4ac] sm:$0xf]  ;;  %631 = vst [vmem:[#allocation6 + $0x4b0] sm:$0xf] %v630_v7  ;;  %633 = vst [vmem:[#allocation6 + $0x4b4] sm:$0xf] %v632_v8 }
  0xa6   :  { %635 = vst [vmem:[#allocation6 + $0x4b8] sm:$0xf] %v634_v9  ;;  %v640_v11 = vld [vmem:[%s8870_s2 + $0x4d0] sm:$0xf]  ;;  %v642_v12 = vld [vmem:[%s8870_s2 + $0x4c4] sm:$0xf] }
  0xa7   :  { %637 = vst [vmem:[#allocation6 + $0x4bc] sm:$0xff] %v636_v10   ;;  %641 = vst [vmem:[#allocation6 + $0x4c4] sm:$0xf] %v640_v11  ;;  %v644_v13 = vld [vmem:[%s8870_s2 + $0x4d4] sm:$0xf]  ;;  %v652_v17 = vld [vmem:[%s8870_s2 + $0x4dc] sm:$0xff]  }
  0xa8   :  { %643 = vst [vmem:[#allocation6 + $0x4c8] sm:$0xf] %v642_v12  ;;  %v646_v14 = vld [vmem:[%s8870_s2 + $0x4c8] sm:$0xf]  ;;  %v648_v15 = vld [vmem:[%s8870_s2 + $0x4d8] sm:$0xf] }
  0xa9   :  { %645 = vst [vmem:[#allocation6 + $0x4cc] sm:$0xf] %v644_v13  ;;  %647 = vst [vmem:[#allocation6 + $0x4d0] sm:$0xf] %v646_v14  ;;  %v650_v16 = vld [vmem:[%s8870_s2 + $0x4cc] sm:$0xf] }
  0xaa   :  { %649 = vst [vmem:[#allocation6 + $0x4d4] sm:$0xf] %v648_v15  ;;  %v656_v18 = vld [vmem:[%s8870_s2 + $0x4f0] sm:$0xf]  ;;  %651 = vst [vmem:[#allocation6 + $0x4d8] sm:$0xf] %v650_v16 }
  0xab   :  { %653 = vst [vmem:[#allocation6 + $0x4dc] sm:$0xff] %v652_v17   ;;  %657 = vst [vmem:[#allocation6 + $0x4e4] sm:$0xf] %v656_v18  ;;  %v658_v19 = vld [vmem:[%s8870_s2 + $0x4e4] sm:$0xf]  ;;  %v668_v24 = vld [vmem:[%s8870_s2 + $0x4fc] sm:$0xff]  }
  0xac   :  { %v660_v20 = vld [vmem:[%s8870_s2 + $0x4f4] sm:$0xf]  ;;  %v662_v21 = vld [vmem:[%s8870_s2 + $0x4e8] sm:$0xf]  ;;  %659 = vst [vmem:[#allocation6 + $0x4e8] sm:$0xf] %v658_v19 }
  0xad   :  { %661 = vst [vmem:[#allocation6 + $0x4ec] sm:$0xf] %v660_v20  ;;  %663 = vst [vmem:[#allocation6 + $0x4f0] sm:$0xf] %v662_v21  ;;  %v664_v22 = vld [vmem:[%s8870_s2 + $0x4f8] sm:$0xf] }
  0xae   :  { %v666_v23 = vld [vmem:[%s8870_s2 + $0x4ec] sm:$0xf]  ;;  %665 = vst [vmem:[#allocation6 + $0x4f4] sm:$0xf] %v664_v22  ;;  %669 = vst [vmem:[#allocation6 + $0x4fc] sm:$0xff] %v668_v24   ;;  %v684_v31 = vld [vmem:[%s8870_s2 + $0x51c] sm:$0xff]  }
  0xaf   :  { %667 = vst [vmem:[#allocation6 + $0x4f8] sm:$0xf] %v666_v23  ;;  %v672_v25 = vld [vmem:[%s8870_s2 + $0x510] sm:$0xf]  ;;  %v674_v26 = vld [vmem:[%s8870_s2 + $0x504] sm:$0xf] }
  0xb0   :  { %v676_v27 = vld [vmem:[%s8870_s2 + $0x514] sm:$0xf]  ;;  %673 = vst [vmem:[#allocation6 + $0x504] sm:$0xf] %v672_v25  ;;  %675 = vst [vmem:[#allocation6 + $0x508] sm:$0xf] %v674_v26 }
  0xb1   :  { %677 = vst [vmem:[#allocation6 + $0x50c] sm:$0xf] %v676_v27  ;;  %v678_v28 = vld [vmem:[%s8870_s2 + $0x508] sm:$0xf]  ;;  %v680_v29 = vld [vmem:[%s8870_s2 + $0x518] sm:$0xf] }
  0xb2   :  { %v682_v30 = vld [vmem:[%s8870_s2 + $0x50c] sm:$0xf]  ;;  %679 = vst [vmem:[#allocation6 + $0x510] sm:$0xf] %v678_v28  ;;  %681 = vst [vmem:[#allocation6 + $0x514] sm:$0xf] %v680_v29 }
  0xb3   :  { %683 = vst [vmem:[#allocation6 + $0x518] sm:$0xf] %v682_v30  ;;  %v688_v32 = vld [vmem:[%s8870_s2 + $0x530] sm:$0xf]  ;;  %v690_v33 = vld [vmem:[%s8870_s2 + $0x524] sm:$0xf] }
  0xb4   :  { %685 = vst [vmem:[#allocation6 + $0x51c] sm:$0xff] %v684_v31   ;;  %689 = vst [vmem:[#allocation6 + $0x524] sm:$0xf] %v688_v32  ;;  %v692_v34 = vld [vmem:[%s8870_s2 + $0x534] sm:$0xf]  ;;  %v700_v38 = vld [vmem:[%s8870_s2 + $0x53c] sm:$0xff]  }
  0xb5   :  { %691 = vst [vmem:[#allocation6 + $0x528] sm:$0xf] %v690_v33  ;;  %v694_v35 = vld [vmem:[%s8870_s2 + $0x528] sm:$0xf]  ;;  %v696_v36 = vld [vmem:[%s8870_s2 + $0x538] sm:$0xf] }
  0xb6   :  { %693 = vst [vmem:[#allocation6 + $0x52c] sm:$0xf] %v692_v34  ;;  %695 = vst [vmem:[#allocation6 + $0x530] sm:$0xf] %v694_v35  ;;  %v698_v37 = vld [vmem:[%s8870_s2 + $0x52c] sm:$0xf] }
  0xb7   :  { %697 = vst [vmem:[#allocation6 + $0x534] sm:$0xf] %v696_v36  ;;  %v704_v39 = vld [vmem:[%s8870_s2 + $0x550] sm:$0xf]  ;;  %699 = vst [vmem:[#allocation6 + $0x538] sm:$0xf] %v698_v37 }
  0xb8   :  { %701 = vst [vmem:[#allocation6 + $0x53c] sm:$0xff] %v700_v38   ;;  %705 = vst [vmem:[#allocation6 + $0x544] sm:$0xf] %v704_v39  ;;  %v706_v40 = vld [vmem:[%s8870_s2 + $0x544] sm:$0xf]  ;;  %v716_v45 = vld [vmem:[%s8870_s2 + $0x55c] sm:$0xff]  }
  0xb9   :  { %v708_v41 = vld [vmem:[%s8870_s2 + $0x554] sm:$0xf]  ;;  %v710_v42 = vld [vmem:[%s8870_s2 + $0x548] sm:$0xf]  ;;  %707 = vst [vmem:[#allocation6 + $0x548] sm:$0xf] %v706_v40 }
  0xba   :  { %709 = vst [vmem:[#allocation6 + $0x54c] sm:$0xf] %v708_v41  ;;  %711 = vst [vmem:[#allocation6 + $0x550] sm:$0xf] %v710_v42  ;;  %v712_v43 = vld [vmem:[%s8870_s2 + $0x558] sm:$0xf] }
  0xbb   :  { %v714_v44 = vld [vmem:[%s8870_s2 + $0x54c] sm:$0xf]  ;;  %713 = vst [vmem:[#allocation6 + $0x554] sm:$0xf] %v712_v43  ;;  %717 = vst [vmem:[#allocation6 + $0x55c] sm:$0xff] %v716_v45   ;;  %v732_v52 = vld [vmem:[%s8870_s2 + $0x57c] sm:$0xff]  }
  0xbc   :  { %715 = vst [vmem:[#allocation6 + $0x558] sm:$0xf] %v714_v44  ;;  %v720_v46 = vld [vmem:[%s8870_s2 + $0x570] sm:$0xf]  ;;  %v722_v47 = vld [vmem:[%s8870_s2 + $0x564] sm:$0xf] }
  0xbd   :  { %v724_v48 = vld [vmem:[%s8870_s2 + $0x574] sm:$0xf]  ;;  %721 = vst [vmem:[#allocation6 + $0x564] sm:$0xf] %v720_v46  ;;  %723 = vst [vmem:[#allocation6 + $0x568] sm:$0xf] %v722_v47 }
  0xbe   :  { %725 = vst [vmem:[#allocation6 + $0x56c] sm:$0xf] %v724_v48  ;;  %v726_v49 = vld [vmem:[%s8870_s2 + $0x568] sm:$0xf]  ;;  %v728_v50 = vld [vmem:[%s8870_s2 + $0x578] sm:$0xf] }
  0xbf   :  { %v730_v51 = vld [vmem:[%s8870_s2 + $0x56c] sm:$0xf]  ;;  %727 = vst [vmem:[#allocation6 + $0x570] sm:$0xf] %v726_v49  ;;  %729 = vst [vmem:[#allocation6 + $0x574] sm:$0xf] %v728_v50 }
  0xc0   :  { %731 = vst [vmem:[#allocation6 + $0x578] sm:$0xf] %v730_v51  ;;  %v736_v53 = vld [vmem:[%s8870_s2 + $0x590] sm:$0xf]  ;;  %v738_v54 = vld [vmem:[%s8870_s2 + $0x584] sm:$0xf] }
  0xc1   :  { %733 = vst [vmem:[#allocation6 + $0x57c] sm:$0xff] %v732_v52   ;;  %737 = vst [vmem:[#allocation6 + $0x584] sm:$0xf] %v736_v53  ;;  %v740_v55 = vld [vmem:[%s8870_s2 + $0x594] sm:$0xf]  ;;  %v748_v59 = vld [vmem:[%s8870_s2 + $0x59c] sm:$0xff]  }
  0xc2   :  { %739 = vst [vmem:[#allocation6 + $0x588] sm:$0xf] %v738_v54  ;;  %v742_v56 = vld [vmem:[%s8870_s2 + $0x588] sm:$0xf]  ;;  %v744_v57 = vld [vmem:[%s8870_s2 + $0x598] sm:$0xf] }
  0xc3   :  { %741 = vst [vmem:[#allocation6 + $0x58c] sm:$0xf] %v740_v55  ;;  %743 = vst [vmem:[#allocation6 + $0x590] sm:$0xf] %v742_v56  ;;  %v746_v58 = vld [vmem:[%s8870_s2 + $0x58c] sm:$0xf] }
  0xc4   :  { %745 = vst [vmem:[#allocation6 + $0x594] sm:$0xf] %v744_v57  ;;  %v752_v60 = vld [vmem:[%s8870_s2 + $0x5b0] sm:$0xf]  ;;  %747 = vst [vmem:[#allocation6 + $0x598] sm:$0xf] %v746_v58 }
  0xc5   :  { %749 = vst [vmem:[#allocation6 + $0x59c] sm:$0xff] %v748_v59   ;;  %753 = vst [vmem:[#allocation6 + $0x5a4] sm:$0xf] %v752_v60  ;;  %v754_v61 = vld [vmem:[%s8870_s2 + $0x5a4] sm:$0xf]  ;;  %v764_v2 = vld [vmem:[%s8870_s2 + $0x5bc] sm:$0xff]  }
  0xc6   :  { %v756_v62 = vld [vmem:[%s8870_s2 + $0x5b4] sm:$0xf]  ;;  %v758_v63 = vld [vmem:[%s8870_s2 + $0x5a8] sm:$0xf]  ;;  %755 = vst [vmem:[#allocation6 + $0x5a8] sm:$0xf] %v754_v61 }
  0xc7   :  { %757 = vst [vmem:[#allocation6 + $0x5ac] sm:$0xf] %v756_v62  ;;  %759 = vst [vmem:[#allocation6 + $0x5b0] sm:$0xf] %v758_v63  ;;  %v760_v0 = vld [vmem:[%s8870_s2 + $0x5b8] sm:$0xf] }
  0xc8   :  { %v762_v1 = vld [vmem:[%s8870_s2 + $0x5ac] sm:$0xf]  ;;  %761 = vst [vmem:[#allocation6 + $0x5b4] sm:$0xf] %v760_v0  ;;  %765 = vst [vmem:[#allocation6 + $0x5bc] sm:$0xff] %v764_v2   ;;  %v780_v9 = vld [vmem:[%s8870_s2 + $0x5dc] sm:$0xff]  }
  0xc9   :  { %763 = vst [vmem:[#allocation6 + $0x5b8] sm:$0xf] %v762_v1  ;;  %v768_v3 = vld [vmem:[%s8870_s2 + $0x5d0] sm:$0xf]  ;;  %v770_v4 = vld [vmem:[%s8870_s2 + $0x5c4] sm:$0xf] }
  0xca   :  { %v772_v5 = vld [vmem:[%s8870_s2 + $0x5d4] sm:$0xf]  ;;  %769 = vst [vmem:[#allocation6 + $0x5c4] sm:$0xf] %v768_v3  ;;  %771 = vst [vmem:[#allocation6 + $0x5c8] sm:$0xf] %v770_v4 }
  0xcb   :  { %773 = vst [vmem:[#allocation6 + $0x5cc] sm:$0xf] %v772_v5  ;;  %v774_v6 = vld [vmem:[%s8870_s2 + $0x5c8] sm:$0xf]  ;;  %v776_v7 = vld [vmem:[%s8870_s2 + $0x5d8] sm:$0xf] }
  0xcc   :  { %v778_v8 = vld [vmem:[%s8870_s2 + $0x5cc] sm:$0xf]  ;;  %775 = vst [vmem:[#allocation6 + $0x5d0] sm:$0xf] %v774_v6  ;;  %777 = vst [vmem:[#allocation6 + $0x5d4] sm:$0xf] %v776_v7 }
  0xcd   :  { %779 = vst [vmem:[#allocation6 + $0x5d8] sm:$0xf] %v778_v8  ;;  %v784_v10 = vld [vmem:[%s8870_s2 + $0x5f0] sm:$0xf]  ;;  %v786_v11 = vld [vmem:[%s8870_s2 + $0x5e4] sm:$0xf] }
  0xce   :  { %781 = vst [vmem:[#allocation6 + $0x5dc] sm:$0xff] %v780_v9   ;;  %785 = vst [vmem:[#allocation6 + $0x5e4] sm:$0xf] %v784_v10  ;;  %v788_v12 = vld [vmem:[%s8870_s2 + $0x5f4] sm:$0xf] }
  0xcf   :  { %787 = vst [vmem:[#allocation6 + $0x5e8] sm:$0xf] %v786_v11  ;;  %v790_v13 = vld [vmem:[%s8870_s2 + $0x5e8] sm:$0xf]  ;;  %v792_v14 = vld [vmem:[%s8870_s2 + $0x5f8] sm:$0xf] }
  0xd0   :  { %789 = vst [vmem:[#allocation6 + $0x5ec] sm:$0xf] %v788_v12  ;;  %791 = vst [vmem:[#allocation6 + $0x5f0] sm:$0xf] %v790_v13  ;;  %v794_v15 = vld [vmem:[%s8870_s2 + $0x5ec] sm:$0xf] }
  0xd1   :  { %793 = vst [vmem:[#allocation6 + $0x5f4] sm:$0xf] %v792_v14  ;;  %v796_v16 = vld [vmem:[%s8870_s2 + $0x5fc] sm:$0xf]  ;;  %795 = vst [vmem:[#allocation6 + $0x5f8] sm:$0xf] %v794_v15 }
  0xd2   :  { %797 = vst [vmem:[#allocation6 + $0x5fc] sm:$0xf] %v796_v16 }
  0xd3   :  { %1596 = vsyncadd [#allocation7], 24576  ;;  %v5916_v17 = vld [vmem:[%s8869_s1 + $0x4] ss:$8 sps:$4 sm:$0xff]   ;;  %v5920_v19 = vld [vmem:[%s8869_s1] ss:$8 sps:$4 sm:$0xff]  }
  0xd4   :  { %v5918_v18 = vld [vmem:[%s8869_s1 + $0x304] ss:$8 sps:$4 sm:$0xff]   ;;  %v5921_v20 = vld [vmem:[%s8869_s1 + $0x300] ss:$8 sps:$4 sm:$0xff]   ;;  %2941 = vmatprep.subr.bf16.mxu1 %v5916_v17  ;;  %v5922_v21 = vld [vmem:[%s8869_s1 + $0x14] ss:$8 sps:$4 sm:$0xff]  }
  0xd5   :  { %3064 = vmatprep.subr.bf16.mxu0 %v5918_v18  ;;  %2942 = vmatpush1.bf16.msra.mxu1 %v5920_v19  ;;  %v5924_v22 = vld [vmem:[%s8869_s1 + $0x314] ss:$8 sps:$4 sm:$0xff]   ;;  %v5926_v23 = vld [vmem:[%s8869_s1 + $0x10] ss:$8 sps:$4 sm:$0xff]   ;;  %v5928_v25 = vld [vmem:[%s8869_s1 + $0x24] ss:$8 sps:$4 sm:$0xff]  }
  0xd6   :  { %3065 = vmatpush1.bf16.msra.mxu0 %v5921_v20  ;;  %2943 = vmatprep.subr.bf16.mxu1 %v5922_v21  ;;  %v5927_v24 = vld [vmem:[%s8869_s1 + $0x310] ss:$8 sps:$4 sm:$0xff]   ;;  %v5930_v26 = vld [vmem:[%s8869_s1 + $0x324] ss:$8 sps:$4 sm:$0xff]   ;;  %v5932_v27 = vld [vmem:[%s8869_s1 + $0x20] ss:$8 sps:$4 sm:$0xff]  }
  0xd7   :  { %3066 = vmatprep.subr.bf16.mxu0 %v5924_v22  ;;  %v5933_v28 = vld [vmem:[%s8869_s1 + $0x320] ss:$8 sps:$4 sm:$0xff]   ;;  %v5934_v29 = vld [vmem:[%s8869_s1 + $0x34] ss:$8 sps:$4 sm:$0xff]   ;;  %v5938_v31 = vld [vmem:[%s8869_s1 + $0x30] ss:$8 sps:$4 sm:$0xff]  }
  0xd8   :  { %v5936_v30 = vld [vmem:[%s8869_s1 + $0x334] ss:$8 sps:$4 sm:$0xff]   ;;  %v5939_v32 = vld [vmem:[%s8869_s1 + $0x330] ss:$8 sps:$4 sm:$0xff]   ;;  %v5940_v33 = vld [vmem:[%s8869_s1 + $0x44] ss:$8 sps:$4 sm:$0xff]  }
  0xd9   :  { %2944 = vmatpush1.bf16.msra.mxu1 %v5926_v23  ;;  %v5942_v34 = vld [vmem:[%s8869_s1 + $0x344] ss:$8 sps:$4 sm:$0xff]   ;;  %v5944_v35 = vld [vmem:[%s8869_s1 + $0x40] ss:$8 sps:$4 sm:$0xff]   ;;  %v5946_v37 = vld [vmem:[%s8869_s1 + $0x54] ss:$8 sps:$4 sm:$0xff]  }
  0xda   :  { %3067 = vmatpush1.bf16.msra.mxu0 %v5927_v24  ;;  %2945 = vmatprep.subr.bf16.mxu1 %v5928_v25  ;;  %v5945_v36 = vld [vmem:[%s8869_s1 + $0x340] ss:$8 sps:$4 sm:$0xff]   ;;  %v5948_v38 = vld [vmem:[%s8869_s1 + $0x354] ss:$8 sps:$4 sm:$0xff]   ;;  %v5950_v39 = vld [vmem:[%s8869_s1 + $0x50] ss:$8 sps:$4 sm:$0xff]  }
  0xdb   :  { %3068 = vmatprep.subr.bf16.mxu0 %v5930_v26  ;;  %v5951_v40 = vld [vmem:[%s8869_s1 + $0x350] ss:$8 sps:$4 sm:$0xff]   ;;  %v5952_v41 = vld [vmem:[%s8869_s1 + $0x64] ss:$8 sps:$4 sm:$0xff]   ;;  %v5956_v43 = vld [vmem:[%s8869_s1 + $0x60] ss:$8 sps:$4 sm:$0xff]  }
  0xdc   :  { %v5954_v42 = vld [vmem:[%s8869_s1 + $0x364] ss:$8 sps:$4 sm:$0xff]   ;;  %v5957_v44 = vld [vmem:[%s8869_s1 + $0x360] ss:$8 sps:$4 sm:$0xff]   ;;  %v5958_v45 = vld [vmem:[%s8869_s1 + $0x74] ss:$8 sps:$4 sm:$0xff]  }
  0xdd   :  { %2946 = vmatpush1.bf16.msra.mxu1 %v5932_v27  ;;  %v5960_v46 = vld [vmem:[%s8869_s1 + $0x374] ss:$8 sps:$4 sm:$0xff]   ;;  %v5962_v47 = vld [vmem:[%s8869_s1 + $0x70] ss:$8 sps:$4 sm:$0xff]   ;;  %v5964_v49 = vld [vmem:[%s8869_s1 + $0x84] ss:$8 sps:$4 sm:$0xff]  }
  0xde   :  { %3069 = vmatpush1.bf16.msra.mxu0 %v5933_v28  ;;  %2947 = vmatprep.subr.bf16.mxu1 %v5934_v29  ;;  %v5963_v48 = vld [vmem:[%s8869_s1 + $0x370] ss:$8 sps:$4 sm:$0xff]   ;;  %v5966_v50 = vld [vmem:[%s8869_s1 + $0x384] ss:$8 sps:$4 sm:$0xff]   ;;  %v5968_v51 = vld [vmem:[%s8869_s1 + $0x80] ss:$8 sps:$4 sm:$0xff]  }
  0xdf   :  { %3070 = vmatprep.subr.bf16.mxu0 %v5936_v30  ;;  %v5969_v52 = vld [vmem:[%s8869_s1 + $0x380] ss:$8 sps:$4 sm:$0xff]   ;;  %v5970_v53 = vld [vmem:[%s8869_s1 + $0x94] ss:$8 sps:$4 sm:$0xff]   ;;  %v5974_v55 = vld [vmem:[%s8869_s1 + $0x90] ss:$8 sps:$4 sm:$0xff]  }
  0xe0   :  { %v5972_v54 = vld [vmem:[%s8869_s1 + $0x394] ss:$8 sps:$4 sm:$0xff]   ;;  %v5975_v56 = vld [vmem:[%s8869_s1 + $0x390] ss:$8 sps:$4 sm:$0xff]   ;;  %v5976_v57 = vld [vmem:[%s8869_s1 + $0xa4] ss:$8 sps:$4 sm:$0xff]  }
  0xe1   :  { %2948 = vmatpush1.bf16.msra.mxu1 %v5938_v31  ;;  %v5978_v58 = vld [vmem:[%s8869_s1 + $0x3a4] ss:$8 sps:$4 sm:$0xff]   ;;  %v5980_v59 = vld [vmem:[%s8869_s1 + $0xa0] ss:$8 sps:$4 sm:$0xff]   ;;  %v5982_v61 = vld [vmem:[%s8869_s1 + $0xb4] ss:$8 sps:$4 sm:$0xff]  }
  0xe2   :  { %3071 = vmatpush1.bf16.msra.mxu0 %v5939_v32  ;;  %2949 = vmatprep.subr.bf16.mxu1 %v5940_v33  ;;  %v5981_v60 = vld [vmem:[%s8869_s1 + $0x3a0] ss:$8 sps:$4 sm:$0xff]   ;;  %v5984_v62 = vld [vmem:[%s8869_s1 + $0x3b4] ss:$8 sps:$4 sm:$0xff]   ;;  %v5986_v63 = vld [vmem:[%s8869_s1 + $0xb0] ss:$8 sps:$4 sm:$0xff]  }
  0xe3   :  { %3072 = vmatprep.subr.bf16.mxu0 %v5942_v34  ;;  %v1598_v0 = vld [vmem:[%s8868_s0 + $0x8] sm:$0xff]  ;;  %v5987_v1 = vld [vmem:[%s8869_s1 + $0x3b0] ss:$8 sps:$4 sm:$0xff]   ;;  %v7737_v10 = vld [vmem:[%s8868_s0] sm:$0xff]  ;;  %vm1663_vm0 = vsmask.f32 3328 }
  0xe4   :  { %v5988_v2 = vld [vmem:[%s8869_s1 + $0xc4] ss:$8 sps:$4 sm:$0xff]   ;;  %1606 = vst [vmem:[#allocation2 + $0x8] sm:$0xff] %v1598_v0  ;;  %v5850_v3 = vpack.c.bf16 %v1598_v0, %v1598_v0  ;;  %v7713_v4 = vld [vmem:[%s8868_s0 + $0x10] sm:$0xff]  ;;  %v7718_v5 = vld [vmem:[%s8868_s0 + $0x18] sm:$0xff]  ;;  %vm1726_vm3 = vcmask 1042432  }
  0xe5   :  { %2950 = vmatpush1.bf16.msra.mxu1 %v5944_v35  ;;  %v1603_v6 = vld [vmem:[%s8868_s0 + $0x30] sm:$0x3]  ;;  %v1604_v7 = vld [vmem:[%s8868_s0 + $0x38] sm:$0x3]  ;;  %1607 = vst [vmem:[#allocation2 + $0x10] sm:$0xff] %v7713_v4  ;;  %1608 = vst [vmem:[#allocation2 + $0x18] sm:$0xff] %v7718_v5 }
  0xe6   :  { %3073 = vmatpush1.bf16.msra.mxu0 %v5945_v36  ;;  %2951 = vmatprep.subr.bf16.mxu1 %v5946_v37  ;;  %v5990_v8 = vld [vmem:[%s8869_s1 + $0x3c4] ss:$8 sps:$4 sm:$0xff]   ;;  %1611 = vst [vmem:[#allocation2 + $0x30] sm:$0x3] %v1603_v6  ;;  %1612 = vst [vmem:[#allocation2 + $0x38] sm:$0x3] %v1604_v7 }
  0xe7   :  { %3074 = vmatprep.subr.bf16.mxu0 %v5948_v38  ;;  %2973 = vmatprep.mubr.bf16.mxu1 %v5850_v3  ;;  %v5992_v9 = vld [vmem:[%s8869_s1 + $0xc0] ss:$8 sps:$4 sm:$0xff]   ;;  %1605 = vst [vmem:[#allocation2] sm:$0xff] %v7737_v10  ;;  %v5994_v12 = vld [vmem:[%s8869_s1 + $0xd4] ss:$8 sps:$4 sm:$0xff]   ;;  %vm1727_vm4 = vcmask 1046532  }
  0xe8   :  { %v5993_v11 = vld [vmem:[%s8869_s1 + $0x3c0] ss:$8 sps:$4 sm:$0xff]   ;;  %v5996_v13 = vld [vmem:[%s8869_s1 + $0x3d4] ss:$8 sps:$4 sm:$0xff]   ;;  %v5998_v14 = vld [vmem:[%s8869_s1 + $0xd0] ss:$8 sps:$4 sm:$0xff]  }
  0xe9   :  { %2952 = vmatpush1.bf16.msra.mxu1 %v5950_v39  ;;  %v5999_v15 = vld [vmem:[%s8869_s1 + $0x3d0] ss:$8 sps:$4 sm:$0xff]   ;;  %v6000_v16 = vld [vmem:[%s8869_s1 + $0xe4] ss:$8 sps:$4 sm:$0xff]   ;;  %v6004_v24 = vld [vmem:[%s8869_s1 + $0xe0] ss:$8 sps:$4 sm:$0xff]  }
  0xea   :  { %3075 = vmatpush1.bf16.msra.mxu0 %v5951_v40  ;;  %2953 = vmatprep.subr.bf16.mxu1 %v5952_v41  ;;  %v6002_v21 = vld [vmem:[%s8869_s1 + $0x3e4] ss:$8 sps:$4 sm:$0xff]   ;;  %vm1664_vm1 = vsmask.f32 7440  ;;  %v6005_v28 = vld [vmem:[%s8869_s1 + $0x3e0] ss:$8 sps:$4 sm:$0xff]   ;;  %v5849_v41 = vpack.c.bf16 %v7737_v10, %v7737_v10  ;;  %vm7911_vm5 = vmor %vm1726_vm3, %vm1727_vm4 }
  0xeb   :  { %3076 = vmatprep.subr.bf16.mxu0 %v5954_v42  ;;  %v6006_v29 = vld [vmem:[%s8869_s1 + $0xf4] ss:$8 sps:$4 sm:$0xff]   ;;  %v6010_v33 = vld [vmem:[%s8869_s1 + $0xf0] ss:$8 sps:$4 sm:$0xff]   ;;  %v6014_v37 = vld [vmem:[%s8869_s1 + $0x104] ss:$8 sps:$4 sm:$0xff]  }
  0xec   :  { %v1637_v17 = vld [vmem:[#allocation2 + $0x10] sm:$0xfe]  ;;  %v1638_v18 = vld [vmem:[#allocation2 + $0x18] sm:$0xfe]  ;;  %vm7784_vm2 = vmor %vm1663_vm0, %vm1664_vm1 }
  0xed   :  { %2954 = vmatpush1.bf16.msra.mxu1 %v5956_v43  ;;  %v1641_v19 = vld [vmem:[#allocation2 + $0x30] sm:$0x1]  ;;  %v1642_v20 = vld [vmem:[#allocation2 + $0x38] sm:$0x1]  ;;  %v5829_v22 = vpack.c.bf16 %v1638_v18, %v1637_v17  ;;  %v6008_v30 = vld [vmem:[%s8869_s1 + $0x3f4] ss:$8 sps:$4 sm:$0xff]  }
  0xee   :  { %3077 = vmatpush1.bf16.msra.mxu0 %v5957_v44  ;;  %2955 = vmatprep.subr.bf16.mxu1 %v5958_v45  ;;  %v5831_v23 = vpack.c.bf16 %v1642_v20, %v1641_v19  ;;  %v6011_v34 = vld [vmem:[%s8869_s1 + $0x3f0] ss:$8 sps:$4 sm:$0xff]   ;;  %v6017_v40 = vld [vmem:[%s8869_s1 + $0x404] ss:$8 sps:$4 sm:$0xff]   ;;  %v6012_v42 = vld [vmem:[%s8869_s1 + $0x100] ss:$8 sps:$4 sm:$0xff]  }
  0xef   :  { %3078 = vmatprep.subr.bf16.mxu0 %v5960_v46  ;;  %v1681_v25 = vshrl.u32 %v5829_v22, 16  ;;  %v1684_v26 = vshll.u32 %v5829_v22, 16  ;;  %v6015_v46 = vld [vmem:[%s8869_s1 + $0x400] ss:$8 sps:$4 sm:$0xff]   ;;  %v6044_v0 = vld [vmem:[%s8869_s1 + $0x154] ss:$8 sps:$4 sm:$0xff]  }
  0xf0   :  { %v1690_v27 = vshll.u32 %v5831_v23, 16  ;;  %v6045_v3 = vld [vmem:[%s8869_s1 + $0x450] ss:$8 sps:$4 sm:$0xff]   ;;  %v6053_v6 = vld [vmem:[%s8869_s1 + $0x464] ss:$8 sps:$4 sm:$0xff]  }
  0xf1   :  { %2956 = vmatpush1.bf16.msra.mxu1 %v5962_v47  ;;  %v1683_v31 = vrot.slane %v1681_v25, 4  ;;  %v1686_v32 = vrot.slane %v1684_v26, 5  ;;  %v6020_v47 = vld [vmem:[%s8869_s1 + $0x114] ss:$8 sps:$4 sm:$0xff]   ;;  %v6048_v7 = vld [vmem:[%s8869_s1 + $0x160] ss:$8 sps:$4 sm:$0xff]  }
  0xf2   :  { %3079 = vmatpush1.bf16.msra.mxu0 %v5963_v48  ;;  %2957 = vmatprep.subr.bf16.mxu1 %v5964_v49  ;;  %v1692_v36 = vrot.slane %v1690_v27, 5  ;;  %v6023_v48 = vld [vmem:[%s8869_s1 + $0x414] ss:$8 sps:$4 sm:$0xff]   ;;  %v5852_v49 = vpack.c.bf16 %v7718_v5, %v7718_v5  ;;  %v6050_v5 = vld [vmem:[%s8869_s1 + $0x164] ss:$8 sps:$4 sm:$0xff]  }
  0xf3   :  { %3080 = vmatprep.subr.bf16.mxu0 %v5966_v50  ;;  %v1687_v35 = vor.u32 %v1686_v32, %v1683_v31  ;;  %v6018_v50 = vld [vmem:[%s8869_s1 + $0x110] ss:$8 sps:$4 sm:$0xff]   ;;  %v1699_v17 = vld [vmem:[#allocation2 + $0x8] sm:$0xfc]  ;;  %v6068_v22 = vld [vmem:[%s8869_s1 + $0x194] ss:$8 sps:$4 sm:$0xff]  }
  0xf4   :  { %v6054_v10 = vld [vmem:[%s8869_s1 + $0x170] ss:$8 sps:$4 sm:$0xff]   ;;  %v6065_v18 = vld [vmem:[%s8869_s1 + $0x484] ss:$8 sps:$4 sm:$0xff]   ;;  %v6060_v19 = vld [vmem:[%s8869_s1 + $0x180] ss:$8 sps:$4 sm:$0xff]  }
  0xf5   :  { %2958 = vmatpush1.bf16.msra.mxu1 %v5968_v51  ;;  %v1688_v39 = vrot.slane %v1687_v35, 4  ;;  %v6021_v51 = vld [vmem:[%s8869_s1 + $0x410] ss:$8 sps:$4 sm:$0xff]   ;;  %v6071_v23 = vld [vmem:[%s8869_s1 + $0x494] ss:$8 sps:$4 sm:$0xff]  }
  0xf6   :  { %3081 = vmatpush1.bf16.msra.mxu0 %v5969_v52  ;;  %2959 = vmatprep.subr.bf16.mxu1 %v5970_v53  ;;  %v6026_v52 = vld [vmem:[%s8869_s1 + $0x124] ss:$8 sps:$4 sm:$0xff]   ;;  %v6066_v27 = vld [vmem:[%s8869_s1 + $0x190] ss:$8 sps:$4 sm:$0xff]   ;;  %v6075_v35 = vld [vmem:[%s8869_s1 + $0x4a0] ss:$8 sps:$4 sm:$0xff]  }
  0xf7   :  { %3082 = vmatprep.subr.bf16.mxu0 %v5972_v54  ;;  %v1693_v43 = vsel %vm7784_vm2, %v1688_v39, %v1692_v36  ;;  %v6029_v53 = vld [vmem:[%s8869_s1 + $0x424] ss:$8 sps:$4 sm:$0xff]   ;;  %v6024_v54 = vld [vmem:[%s8869_s1 + $0x120] ss:$8 sps:$4 sm:$0xff]  }
  0xf8   :  { %v5401_v44 = vcombine.low %v1693_v43, %v1693_v43  ;;  %v5402_v45 = vcombine.high %v1693_v43, %v1693_v43  ;;  %v6074_v31 = vld [vmem:[%s8869_s1 + $0x1a4] ss:$8 sps:$4 sm:$0xff]  }
  0xf9   :  { %2960 = vmatpush1.bf16.msra.mxu1 %v5974_v55  ;;  %v6027_v55 = vld [vmem:[%s8869_s1 + $0x420] ss:$8 sps:$4 sm:$0xff]   ;;  %v6077_v32 = vld [vmem:[%s8869_s1 + $0x4a4] ss:$8 sps:$4 sm:$0xff]  }
  0xfa   :  { %3083 = vmatpush1.bf16.msra.mxu0 %v5975_v56  ;;  %2961 = vmatprep.subr.bf16.mxu1 %v5976_v57  ;;  %v6032_v56 = vld [vmem:[%s8869_s1 + $0x134] ss:$8 sps:$4 sm:$0xff]   ;;  %v6086_v43 = vld [vmem:[%s8869_s1 + $0x1c4] ss:$8 sps:$4 sm:$0xff]  }
  0xfb   :  { %3084 = vmatprep.subr.bf16.mxu0 %v5978_v58  ;;  %3096 = vmatprep.mubr.bf16.mxu0 %v5402_v45  ;;  %v6035_v57 = vld [vmem:[%s8869_s1 + $0x434] ss:$8 sps:$4 sm:$0xff]   ;;  %v6030_v58 = vld [vmem:[%s8869_s1 + $0x130] ss:$8 sps:$4 sm:$0xff]   ;;  %v6084_v45 = vld [vmem:[%s8869_s1 + $0x1c0] ss:$8 sps:$4 sm:$0xff]  }
  0xfd   :  { %2962 = vmatpush1.bf16.msra.mxu1 %v5980_v59  ;;  %v6033_v59 = vld [vmem:[%s8869_s1 + $0x430] ss:$8 sps:$4 sm:$0xff]  }
  0xfe   :  { %3085 = vmatpush1.bf16.msra.mxu0 %v5981_v60  ;;  %2963 = vmatprep.subr.bf16.mxu1 %v5982_v61  ;;  %v6038_v60 = vld [vmem:[%s8869_s1 + $0x144] ss:$8 sps:$4 sm:$0xff]  }
  0xff   :  { %3086 = vmatprep.subr.bf16.mxu0 %v5984_v62  ;;  %v6041_v61 = vld [vmem:[%s8869_s1 + $0x444] ss:$8 sps:$4 sm:$0xff]   ;;  %v6036_v62 = vld [vmem:[%s8869_s1 + $0x140] ss:$8 sps:$4 sm:$0xff]  }
 0x101   :  { %2964 = vmatpush1.bf16.msra.mxu1 %v5986_v63  ;;  %v6039_v63 = vld [vmem:[%s8869_s1 + $0x440] ss:$8 sps:$4 sm:$0xff]  }
 0x102   :  { %3087 = vmatpush1.bf16.msra.mxu0 %v5987_v1  ;;  %2965 = vmatprep.subr.bf16.mxu1 %v5988_v2  ;;  %v6047_v1 = vld [vmem:[%s8869_s1 + $0x454] ss:$8 sps:$4 sm:$0xff]   ;;  %v6042_v2 = vld [vmem:[%s8869_s1 + $0x150] ss:$8 sps:$4 sm:$0xff]  }
 0x103   :  { %3088 = vmatprep.subr.bf16.mxu0 %v5990_v8  ;;  %v6051_v8 = vld [vmem:[%s8869_s1 + $0x460] ss:$8 sps:$4 sm:$0xff]  }
 0x105   :  { %2966 = vmatpush1.bf16.msra.mxu1 %v5992_v9  ;;  %v6056_v9 = vld [vmem:[%s8869_s1 + $0x174] ss:$8 sps:$4 sm:$0xff]  }
 0x106   :  { %3089 = vmatpush1.bf16.msra.mxu0 %v5993_v11  ;;  %2967 = vmatprep.subr.bf16.mxu1 %v5994_v12  ;;  %v6059_v11 = vld [vmem:[%s8869_s1 + $0x474] ss:$8 sps:$4 sm:$0xff]   ;;  %v6057_v12 = vld [vmem:[%s8869_s1 + $0x470] ss:$8 sps:$4 sm:$0xff]  }
 0x107   :  { %3090 = vmatprep.subr.bf16.mxu0 %v5996_v13  ;;  %v1601_v13 = vld [vmem:[%s8868_s0 + $0x20] sm:$0x3] }
 0x108   :  { %1609 = vst [vmem:[#allocation2 + $0x20] sm:$0x3] %v1601_v13  ;;  %v1700_v13 = vld [vmem:[#allocation2 + $0x10] sm:$0xfc] }
 0x109   :  { %2968 = vmatpush1.bf16.msra.mxu1 %v5998_v14  ;;  %v1602_v14 = vld [vmem:[%s8868_s0 + $0x28] sm:$0x3] }
 0x10a   :  { %3091 = vmatpush1.bf16.msra.mxu0 %v5999_v15  ;;  %2969 = vmatprep.subr.bf16.mxu1 %v6000_v16  ;;  %v6062_v15 = vld [vmem:[%s8869_s1 + $0x184] ss:$8 sps:$4 sm:$0xff]   ;;  %1610 = vst [vmem:[#allocation2 + $0x28] sm:$0x3] %v1602_v14 }
 0x10b   :  { %3092 = vmatprep.subr.bf16.mxu0 %v6002_v21  ;;  %v1698_v16 = vld [vmem:[#allocation2] sm:$0xfc] }
 0x10c   :  { %v5832_v20 = vpack.c.bf16 %v1699_v17, %v1698_v16  ;;  %v6063_v21 = vld [vmem:[%s8869_s1 + $0x480] ss:$8 sps:$4 sm:$0xff]   ;;  %v1704_v16 = vld [vmem:[#allocation2 + $0x30] sm:$0x3]  ;;  %v1705_v17 = vld [vmem:[#allocation2 + $0x38] sm:$0x3] }
 0x10d   :  { %2970 = vmatpush1.bf16.msra.mxu1 %v6004_v24 }
 0x10e   :  { %3093 = vmatpush1.bf16.msra.mxu0 %v6005_v28  ;;  %2971 = vmatprep.subr.bf16.mxu1 %v6006_v29  ;;  %v6069_v28 = vld [vmem:[%s8869_s1 + $0x490] ss:$8 sps:$4 sm:$0xff]  }
 0x10f   :  { %3094 = vmatprep.subr.bf16.mxu0 %v6008_v30  ;;  %v1702_v25 = vld [vmem:[#allocation2 + $0x20] sm:$0x3]  ;;  %v5393_v30 = vrot.slane %v5832_v20, 9 }
 0x111   :  { %2972 = vmatpush1.bf16.msra.mxu1 %v6010_v33  ;;  %v1703_v26 = vld [vmem:[#allocation2 + $0x28] sm:$0x3] }
 0x112   :  { %3095 = vmatpush1.bf16.msra.mxu0 %v6011_v34  ;;  %2982 = vmatprep.subr.bf16.mxu1 %v6014_v37  ;;  %v5834_v29 = vpack.c.bf16 %v1703_v26, %v1702_v25  ;;  %v6072_v34 = vld [vmem:[%s8869_s1 + $0x1a0] ss:$8 sps:$4 sm:$0xff]   ;;  %v6080_v37 = vld [vmem:[%s8869_s1 + $0x1b4] ss:$8 sps:$4 sm:$0xff]  }
 0x113   :  { %3105 = vmatprep.subr.bf16.mxu0 %v6017_v40  ;;  %v6083_v40 = vld [vmem:[%s8869_s1 + $0x4b4] ss:$8 sps:$4 sm:$0xff]  }
 0x114   :  { %2974 = vmatmul.mubr.bf16.vlgmr.msra.gmra.mrb[0].mxu1 %v5849_v41  ;;  %v1731_v33 = vrot.slane %v5834_v29, 5  ;;  %v6078_v41 = vld [vmem:[%s8869_s1 + $0x1b0] ss:$8 sps:$4 sm:$0xff]   ;;  %v6131_v25 = vld [vmem:[%s8869_s1 + $0x534] ss:$8 sps:$4 sm:$0xff]  }
 0x115   :  { %2983 = vmatpush1.bf16.msra.mxu1 %v6012_v42  ;;  %3097 = vmatmul.mubr.bf16.vlgmr.msra.gmra.mrb[0].mxu0 %v5401_v44  ;;  %v6081_v42 = vld [vmem:[%s8869_s1 + $0x4b0] ss:$8 sps:$4 sm:$0xff]   ;;  %v6089_v44 = vld [vmem:[%s8869_s1 + $0x4c4] ss:$8 sps:$4 sm:$0xff]  }
 0x116   :  { %3106 = vmatpush1.bf16.msra.mxu0 %v6015_v46  ;;  %2984 = vmatprep.subr.bf16.mxu1 %v6020_v47  ;;  %v1732_v36 = vsel %vm7911_vm5, %v5393_v30, %v1731_v33  ;;  %v6087_v46 = vld [vmem:[%s8869_s1 + $0x4c0] ss:$8 sps:$4 sm:$0xff]   ;;  %v6092_v47 = vld [vmem:[%s8869_s1 + $0x1d4] ss:$8 sps:$4 sm:$0xff]   ;;  %v6134_v33 = vld [vmem:[%s8869_s1 + $0x244] ss:$8 sps:$4 sm:$0xff]  }
 0x117   :  { %3107 = vmatprep.subr.bf16.mxu0 %v6023_v48  ;;  %3014 = vmatprep.mubr.bf16.mxu1 %v5852_v49  ;;  %v5404_v39 = vcombine.high %v1732_v36, %v1732_v36  ;;  %v6095_v48 = vld [vmem:[%s8869_s1 + $0x4d4] ss:$8 sps:$4 sm:$0xff]   ;;  %v6090_v49 = vld [vmem:[%s8869_s1 + $0x1d0] ss:$8 sps:$4 sm:$0xff]  }
 0x119   :  { %2985 = vmatpush1.bf16.msra.mxu1 %v6018_v50  ;;  %3137 = vmatprep.mubr.bf16.mxu0 %v5404_v39  ;;  %v6093_v50 = vld [vmem:[%s8869_s1 + $0x4d0] ss:$8 sps:$4 sm:$0xff]  }
 0x11a   :  { %3108 = vmatpush1.bf16.msra.mxu0 %v6021_v51  ;;  %2986 = vmatprep.subr.bf16.mxu1 %v6026_v52  ;;  %v6098_v51 = vld [vmem:[%s8869_s1 + $0x1e4] ss:$8 sps:$4 sm:$0xff]  }
 0x11b   :  { %3109 = vmatprep.subr.bf16.mxu0 %v6029_v53  ;;  %v6101_v52 = vld [vmem:[%s8869_s1 + $0x4e4] ss:$8 sps:$4 sm:$0xff]   ;;  %v6096_v53 = vld [vmem:[%s8869_s1 + $0x1e0] ss:$8 sps:$4 sm:$0xff]  }
 0x11d   :  { %2987 = vmatpush1.bf16.msra.mxu1 %v6024_v54  ;;  %v6099_v54 = vld [vmem:[%s8869_s1 + $0x4e0] ss:$8 sps:$4 sm:$0xff]  }
 0x11e   :  { %3110 = vmatpush1.bf16.msra.mxu0 %v6027_v55  ;;  %2988 = vmatprep.subr.bf16.mxu1 %v6032_v56  ;;  %v6104_v55 = vld [vmem:[%s8869_s1 + $0x1f4] ss:$8 sps:$4 sm:$0xff]  }
 0x11f   :  { %3111 = vmatprep.subr.bf16.mxu0 %v6035_v57  ;;  %v6107_v56 = vld [vmem:[%s8869_s1 + $0x4f4] ss:$8 sps:$4 sm:$0xff]   ;;  %v6102_v57 = vld [vmem:[%s8869_s1 + $0x1f0] ss:$8 sps:$4 sm:$0xff]  }
 0x121   :  { %2989 = vmatpush1.bf16.msra.mxu1 %v6030_v58  ;;  %v6105_v58 = vld [vmem:[%s8869_s1 + $0x4f0] ss:$8 sps:$4 sm:$0xff]  }
 0x122   :  { %3112 = vmatpush1.bf16.msra.mxu0 %v6033_v59  ;;  %2990 = vmatprep.subr.bf16.mxu1 %v6038_v60  ;;  %v6110_v59 = vld [vmem:[%s8869_s1 + $0x204] ss:$8 sps:$4 sm:$0xff]  }
 0x123   :  { %3113 = vmatprep.subr.bf16.mxu0 %v6041_v61  ;;  %v6113_v60 = vld [vmem:[%s8869_s1 + $0x504] ss:$8 sps:$4 sm:$0xff]   ;;  %v5851_v61 = vpack.c.bf16 %v7713_v4, %v7713_v4  ;;  %v6119_v4 = vld [vmem:[%s8869_s1 + $0x514] ss:$8 sps:$4 sm:$0xff]  }
 0x125   :  { %2991 = vmatpush1.bf16.msra.mxu1 %v6036_v62  ;;  %v6108_v62 = vld [vmem:[%s8869_s1 + $0x200] ss:$8 sps:$4 sm:$0xff]  }
 0x126   :  { %3114 = vmatpush1.bf16.msra.mxu0 %v6039_v63  ;;  %2992 = vmatprep.subr.bf16.mxu1 %v6044_v0  ;;  %v5403_v63 = vcombine.low %v1732_v36, %v1732_v36  ;;  %v6111_v0 = vld [vmem:[%s8869_s1 + $0x500] ss:$8 sps:$4 sm:$0xff]  }
 0x127   :  { %3115 = vmatprep.subr.bf16.mxu0 %v6047_v1  ;;  %v6116_v1 = vld [vmem:[%s8869_s1 + $0x214] ss:$8 sps:$4 sm:$0xff]  }
 0x129   :  { %2993 = vmatpush1.bf16.msra.mxu1 %v6042_v2  ;;  %v6114_v2 = vld [vmem:[%s8869_s1 + $0x210] ss:$8 sps:$4 sm:$0xff]  }
 0x12a   :  { %3116 = vmatpush1.bf16.msra.mxu0 %v6045_v3  ;;  %2994 = vmatprep.subr.bf16.mxu1 %v6050_v5  ;;  %v6117_v3 = vld [vmem:[%s8869_s1 + $0x510] ss:$8 sps:$4 sm:$0xff]   ;;  %v6122_v5 = vld [vmem:[%s8869_s1 + $0x224] ss:$8 sps:$4 sm:$0xff]  }
 0x12b   :  { %3117 = vmatprep.subr.bf16.mxu0 %v6053_v6  ;;  %v6120_v6 = vld [vmem:[%s8869_s1 + $0x220] ss:$8 sps:$4 sm:$0xff]  }
 0x12d   :  { %2995 = vmatpush1.bf16.msra.mxu1 %v6048_v7  ;;  %v6125_v7 = vld [vmem:[%s8869_s1 + $0x524] ss:$8 sps:$4 sm:$0xff]  }
 0x12e   :  { %3118 = vmatpush1.bf16.msra.mxu0 %v6051_v8  ;;  %2996 = vmatprep.subr.bf16.mxu1 %v6056_v9  ;;  %v1635_v8 = vld [vmem:[#allocation2] sm:$0xfe]  ;;  %v1636_v9 = vld [vmem:[#allocation2 + $0x8] sm:$0xfe] }
 0x12f   :  { %3119 = vmatprep.subr.bf16.mxu0 %v6059_v11  ;;  %v1640_v11 = vld [vmem:[#allocation2 + $0x28] sm:$0x1] }
 0x131   :  { %2997 = vmatpush1.bf16.msra.mxu1 %v6054_v10  ;;  %v1639_v10 = vld [vmem:[#allocation2 + $0x20] sm:$0x1] }
 0x132   :  { %3120 = vmatpush1.bf16.msra.mxu0 %v6057_v12  ;;  %2998 = vmatprep.subr.bf16.mxu1 %v6062_v15  ;;  %v5828_v12 = vpack.c.bf16 %v1636_v9, %v1635_v8  ;;  %v5830_v14 = vpack.c.bf16 %v1640_v11, %v1639_v10  ;;  %v1701_v15 = vld [vmem:[#allocation2 + $0x18] sm:$0xfc]  ;;  %v6182_v9 = vld [vmem:[%s8869_s1 + $0x2c4] ss:$8 sps:$4 sm:$0xff]   ;;  %v6180_v11 = vld [vmem:[%s8869_s1 + $0x2c0] ss:$8 sps:$4 sm:$0xff]  }
 0x133   :  { %3121 = vmatprep.subr.bf16.mxu0 %v6065_v18  ;;  %v6123_v18 = vld [vmem:[%s8869_s1 + $0x520] ss:$8 sps:$4 sm:$0xff]   ;;  %v6177_v8 = vld [vmem:[%s8869_s1 + $0x5b0] ss:$8 sps:$4 sm:$0xff]   ;;  %v6185_v10 = vld [vmem:[%s8869_s1 + $0x5c4] ss:$8 sps:$4 sm:$0xff]  }
 0x134   :  { %v1667_v20 = vshrl.u32 %v5828_v12, 16  ;;  %v1676_v26 = vshll.u32 %v5830_v14, 16  ;;  %v6191_v14 = vld [vmem:[%s8869_s1 + $0x5d4] ss:$8 sps:$4 sm:$0xff]  }
 0x135   :  { %2999 = vmatpush1.bf16.msra.mxu1 %v6060_v19  ;;  %v6128_v19 = vld [vmem:[%s8869_s1 + $0x234] ss:$8 sps:$4 sm:$0xff]  }
 0x136   :  { %3122 = vmatpush1.bf16.msra.mxu0 %v6063_v21  ;;  %3000 = vmatprep.subr.bf16.mxu1 %v6068_v22  ;;  %v1670_v21 = vshll.u32 %v5828_v12, 16  ;;  %v5833_v22 = vpack.c.bf16 %v1701_v15, %v1700_v13  ;;  %v6183_v12 = vld [vmem:[%s8869_s1 + $0x5c0] ss:$8 sps:$4 sm:$0xff]   ;;  %v6188_v13 = vld [vmem:[%s8869_s1 + $0x2d4] ss:$8 sps:$4 sm:$0xff]  }
 0x137   :  { %3123 = vmatprep.subr.bf16.mxu0 %v6071_v23  ;;  %v5835_v23 = vpack.c.bf16 %v1705_v17, %v1704_v16  ;;  %v6186_v15 = vld [vmem:[%s8869_s1 + $0x2d0] ss:$8 sps:$4 sm:$0xff]   ;;  %v6194_v17 = vld [vmem:[%s8869_s1 + $0x2e4] ss:$8 sps:$4 sm:$0xff]  }
 0x138   :  { %v5394_v29 = vrot.slane %v5833_v22, 9  ;;  %v6189_v16 = vld [vmem:[%s8869_s1 + $0x5d0] ss:$8 sps:$4 sm:$0xff]   ;;  %v6203_v22 = vld [vmem:[%s8869_s1 + $0x5f4] ss:$8 sps:$4 sm:$0xff]  }
 0x139   :  { %3001 = vmatpush1.bf16.msra.mxu1 %v6066_v27  ;;  %v1669_v27 = vrot.slane %v1667_v20, 4  ;;  %v1735_v30 = vrot.slane %v5835_v23, 5  ;;  %v6195_v20 = vld [vmem:[%s8869_s1 + $0x5e0] ss:$8 sps:$4 sm:$0xff]   ;;  %v6198_v23 = vld [vmem:[%s8869_s1 + $0x2f0] ss:$8 sps:$4 sm:$0xff]  }
 0x13a   :  { %3124 = vmatpush1.bf16.msra.mxu0 %v6069_v28  ;;  %3002 = vmatprep.subr.bf16.mxu1 %v6074_v31  ;;  %v1672_v28 = vrot.slane %v1670_v21, 5  ;;  %v6126_v31 = vld [vmem:[%s8869_s1 + $0x230] ss:$8 sps:$4 sm:$0xff]   ;;  %v6200_v21 = vld [vmem:[%s8869_s1 + $0x2f4] ss:$8 sps:$4 sm:$0xff]  }
 0x13b   :  { %3125 = vmatprep.subr.bf16.mxu0 %v6077_v32  ;;  %v6129_v32 = vld [vmem:[%s8869_s1 + $0x530] ss:$8 sps:$4 sm:$0xff]   ;;  %v8050_v36 = vsel %vm7911_vm5, %v5394_v29, %v1735_v30 }
 0x13c   :  { %v5406_v39 = vcombine.high %v8050_v36, %v8050_v36 }
 0x13d   :  { %3003 = vmatpush1.bf16.msra.mxu1 %v6072_v34  ;;  %v1673_v34 = vor.u32 %v1672_v28, %v1669_v27  ;;  %v5405_v27 = vcombine.low %v8050_v36, %v8050_v36 }
 0x13e   :  { %3126 = vmatpush1.bf16.msra.mxu0 %v6075_v35  ;;  %3004 = vmatprep.subr.bf16.mxu1 %v6080_v37  ;;  %v1678_v35 = vrot.slane %v1676_v26, 5  ;;  %v6137_v37 = vld [vmem:[%s8869_s1 + $0x544] ss:$8 sps:$4 sm:$0xff]  }
 0x13f   :  { %3127 = vmatprep.subr.bf16.mxu0 %v6083_v40  ;;  %v1674_v40 = vrot.slane %v1673_v34, 4 }
 0x141   :  { %3005 = vmatpush1.bf16.msra.mxu1 %v6078_v41  ;;  %v6132_v41 = vld [vmem:[%s8869_s1 + $0x240] ss:$8 sps:$4 sm:$0xff]  }
 0x142   :  { %3128 = vmatpush1.bf16.msra.mxu0 %v6081_v42  ;;  %3006 = vmatprep.subr.bf16.mxu1 %v6086_v43  ;;  %v6135_v42 = vld [vmem:[%s8869_s1 + $0x540] ss:$8 sps:$4 sm:$0xff]   ;;  %v6140_v43 = vld [vmem:[%s8869_s1 + $0x254] ss:$8 sps:$4 sm:$0xff]  }
 0x143   :  { %3129 = vmatprep.subr.bf16.mxu0 %v6089_v44  ;;  %v8068_v44 = vsel %vm7784_vm2, %v1674_v40, %v1678_v35 }
 0x144   :  { %v5399_v26 = vcombine.low %v8068_v44, %v8068_v44 }
 0x145   :  { %3007 = vmatpush1.bf16.msra.mxu1 %v6084_v45  ;;  %v6143_v45 = vld [vmem:[%s8869_s1 + $0x554] ss:$8 sps:$4 sm:$0xff]  }
 0x146   :  { %3130 = vmatpush1.bf16.msra.mxu0 %v6087_v46  ;;  %3008 = vmatprep.subr.bf16.mxu1 %v6092_v47  ;;  %v5400_v46 = vcombine.high %v8068_v44, %v8068_v44  ;;  %v6138_v47 = vld [vmem:[%s8869_s1 + $0x250] ss:$8 sps:$4 sm:$0xff]  }
 0x147   :  { %3131 = vmatprep.subr.bf16.mxu0 %v6095_v48  ;;  %v6141_v48 = vld [vmem:[%s8869_s1 + $0x550] ss:$8 sps:$4 sm:$0xff]  }
 0x149   :  { %3009 = vmatpush1.bf16.msra.mxu1 %v6090_v49  ;;  %v6146_v49 = vld [vmem:[%s8869_s1 + $0x264] ss:$8 sps:$4 sm:$0xff]  }
 0x14a   :  { %3132 = vmatpush1.bf16.msra.mxu0 %v6093_v50  ;;  %3010 = vmatprep.subr.bf16.mxu1 %v6098_v51  ;;  %v6149_v50 = vld [vmem:[%s8869_s1 + $0x564] ss:$8 sps:$4 sm:$0xff]   ;;  %v6144_v51 = vld [vmem:[%s8869_s1 + $0x260] ss:$8 sps:$4 sm:$0xff]  }
 0x14b   :  { %3133 = vmatprep.subr.bf16.mxu0 %v6101_v52  ;;  %v6147_v52 = vld [vmem:[%s8869_s1 + $0x560] ss:$8 sps:$4 sm:$0xff]  }
 0x14d   :  { %3011 = vmatpush1.bf16.msra.mxu1 %v6096_v53  ;;  %v6152_v53 = vld [vmem:[%s8869_s1 + $0x274] ss:$8 sps:$4 sm:$0xff]  }
 0x14e   :  { %3134 = vmatpush1.bf16.msra.mxu0 %v6099_v54  ;;  %3012 = vmatprep.subr.bf16.mxu1 %v6104_v55  ;;  %v6155_v54 = vld [vmem:[%s8869_s1 + $0x574] ss:$8 sps:$4 sm:$0xff]   ;;  %v6150_v55 = vld [vmem:[%s8869_s1 + $0x270] ss:$8 sps:$4 sm:$0xff]  }
 0x14f   :  { %3135 = vmatprep.subr.bf16.mxu0 %v6107_v56  ;;  %v6153_v56 = vld [vmem:[%s8869_s1 + $0x570] ss:$8 sps:$4 sm:$0xff]  }
 0x151   :  { %3013 = vmatpush1.bf16.msra.mxu1 %v6102_v57  ;;  %v6158_v57 = vld [vmem:[%s8869_s1 + $0x284] ss:$8 sps:$4 sm:$0xff]  }
 0x152   :  { %3136 = vmatpush1.bf16.msra.mxu0 %v6105_v58  ;;  %3023 = vmatprep.subr.bf16.mxu1 %v6110_v59  ;;  %v6161_v58 = vld [vmem:[%s8869_s1 + $0x584] ss:$8 sps:$4 sm:$0xff]   ;;  %v6156_v59 = vld [vmem:[%s8869_s1 + $0x280] ss:$8 sps:$4 sm:$0xff]  }
 0x153   :  { %3146 = vmatprep.subr.bf16.mxu0 %v6113_v60  ;;  %v6159_v60 = vld [vmem:[%s8869_s1 + $0x580] ss:$8 sps:$4 sm:$0xff]  }
 0x154   :  { %3015 = vmatmul.mubr.bf16.vlgmr.msra.gmra.mrb[0].mxu1 %v5851_v61  ;;  %v6164_v61 = vld [vmem:[%s8869_s1 + $0x294] ss:$8 sps:$4 sm:$0xff]  }
 0x155   :  { %3024 = vmatpush1.bf16.msra.mxu1 %v6108_v62  ;;  %3138 = vmatmul.mubr.bf16.vlgmr.msra.gmra.mrb[0].mxu0 %v5403_v63  ;;  %v6167_v62 = vld [vmem:[%s8869_s1 + $0x594] ss:$8 sps:$4 sm:$0xff]   ;;  %v6162_v63 = vld [vmem:[%s8869_s1 + $0x290] ss:$8 sps:$4 sm:$0xff]  }
 0x156   :  { %3147 = vmatpush1.bf16.msra.mxu0 %v6111_v0  ;;  %3025 = vmatprep.subr.bf16.mxu1 %v6116_v1  ;;  %v6165_v0 = vld [vmem:[%s8869_s1 + $0x590] ss:$8 sps:$4 sm:$0xff]   ;;  %v6170_v1 = vld [vmem:[%s8869_s1 + $0x2a4] ss:$8 sps:$4 sm:$0xff]  }
 0x157   :  { %3148 = vmatprep.subr.bf16.mxu0 %v6119_v4  ;;  %3178 = vmatprep.mubr.bf16.mxu0 %v5406_v39  ;;  %v6173_v4 = vld [vmem:[%s8869_s1 + $0x5a4] ss:$8 sps:$4 sm:$0xff]  }
 0x158   :  { %3055 = vmatprep.mubr.bf16.mxu1 %v5400_v46 }
 0x159   :  { %3026 = vmatpush1.bf16.msra.mxu1 %v6114_v2  ;;  %v6168_v2 = vld [vmem:[%s8869_s1 + $0x2a0] ss:$8 sps:$4 sm:$0xff]  }
 0x15a   :  { %3149 = vmatpush1.bf16.msra.mxu0 %v6117_v3  ;;  %3027 = vmatprep.subr.bf16.mxu1 %v6122_v5  ;;  %v6171_v3 = vld [vmem:[%s8869_s1 + $0x5a0] ss:$8 sps:$4 sm:$0xff]   ;;  %v6176_v5 = vld [vmem:[%s8869_s1 + $0x2b4] ss:$8 sps:$4 sm:$0xff]  }
 0x15b   :  { %3150 = vmatprep.subr.bf16.mxu0 %v6125_v7  ;;  %v6174_v7 = vld [vmem:[%s8869_s1 + $0x2b0] ss:$8 sps:$4 sm:$0xff]  }
 0x15d   :  { %3028 = vmatpush1.bf16.msra.mxu1 %v6120_v6  ;;  %v6179_v6 = vld [vmem:[%s8869_s1 + $0x5b4] ss:$8 sps:$4 sm:$0xff]  }
 0x15e   :  { %3151 = vmatpush1.bf16.msra.mxu0 %v6123_v18  ;;  %3029 = vmatprep.subr.bf16.mxu1 %v6128_v19  ;;  %v6197_v18 = vld [vmem:[%s8869_s1 + $0x5e4] ss:$8 sps:$4 sm:$0xff]   ;;  %v6192_v19 = vld [vmem:[%s8869_s1 + $0x2e0] ss:$8 sps:$4 sm:$0xff]  }
 0x15f   :  { %3152 = vmatprep.subr.bf16.mxu0 %v6131_v25  ;;  %v6201_v25 = vld [vmem:[%s8869_s1 + $0x5f0] ss:$8 sps:$4 sm:$0xff]  }
 0x161   :  { %3030 = vmatpush1.bf16.msra.mxu1 %v6126_v31 }
 0x162   :  { %3153 = vmatpush1.bf16.msra.mxu0 %v6129_v32  ;;  %3031 = vmatprep.subr.bf16.mxu1 %v6134_v33 }
 0x163   :  { %3154 = vmatprep.subr.bf16.mxu0 %v6137_v37 }
 0x165   :  { %3032 = vmatpush1.bf16.msra.mxu1 %v6132_v41 }
 0x166   :  { %3155 = vmatpush1.bf16.msra.mxu0 %v6135_v42  ;;  %3033 = vmatprep.subr.bf16.mxu1 %v6140_v43 }
 0x167   :  { %3156 = vmatprep.subr.bf16.mxu0 %v6143_v45 }
 0x169   :  { %3034 = vmatpush1.bf16.msra.mxu1 %v6138_v47 }
 0x16a   :  { %3157 = vmatpush1.bf16.msra.mxu0 %v6141_v48  ;;  %3035 = vmatprep.subr.bf16.mxu1 %v6146_v49 }
 0x16b   :  { %3158 = vmatprep.subr.bf16.mxu0 %v6149_v50 }
 0x16d   :  { %3036 = vmatpush1.bf16.msra.mxu1 %v6144_v51 }
 0x16e   :  { %3159 = vmatpush1.bf16.msra.mxu0 %v6147_v52  ;;  %3037 = vmatprep.subr.bf16.mxu1 %v6152_v53 }
 0x16f   :  { %3160 = vmatprep.subr.bf16.mxu0 %v6155_v54 }
 0x171   :  { %3038 = vmatpush1.bf16.msra.mxu1 %v6150_v55 }
 0x172   :  { %3161 = vmatpush1.bf16.msra.mxu0 %v6153_v56  ;;  %3039 = vmatprep.subr.bf16.mxu1 %v6158_v57 }
 0x173   :  { %3162 = vmatprep.subr.bf16.mxu0 %v6161_v58 }
 0x175   :  { %3040 = vmatpush1.bf16.msra.mxu1 %v6156_v59 }
 0x176   :  { %3163 = vmatpush1.bf16.msra.mxu0 %v6159_v60  ;;  %3041 = vmatprep.subr.bf16.mxu1 %v6164_v61 }
 0x177   :  { %3164 = vmatprep.subr.bf16.mxu0 %v6167_v62 }
 0x179   :  { %3042 = vmatpush1.bf16.msra.mxu1 %v6162_v63 }
 0x17a   :  { %3165 = vmatpush1.bf16.msra.mxu0 %v6165_v0  ;;  %3043 = vmatprep.subr.bf16.mxu1 %v6170_v1 }
 0x17b   :  { %3166 = vmatprep.subr.bf16.mxu0 %v6173_v4 }
 0x17d   :  { %3044 = vmatpush1.bf16.msra.mxu1 %v6168_v2 }
 0x17e   :  { %3167 = vmatpush1.bf16.msra.mxu0 %v6171_v3  ;;  %3045 = vmatprep.subr.bf16.mxu1 %v6176_v5 }
 0x17f   :  { %3168 = vmatprep.subr.bf16.mxu0 %v6179_v6 }
 0x181   :  { %3046 = vmatpush1.bf16.msra.mxu1 %v6174_v7 }
 0x182   :  { %3169 = vmatpush1.bf16.msra.mxu0 %v6177_v8  ;;  %3047 = vmatprep.subr.bf16.mxu1 %v6182_v9 }
 0x183   :  { %3170 = vmatprep.subr.bf16.mxu0 %v6185_v10 }
 0x185   :  { %3048 = vmatpush1.bf16.msra.mxu1 %v6180_v11 }
 0x186   :  { %3171 = vmatpush1.bf16.msra.mxu0 %v6183_v12  ;;  %3049 = vmatprep.subr.bf16.mxu1 %v6188_v13 }
 0x187   :  { %3172 = vmatprep.subr.bf16.mxu0 %v6191_v14 }
 0x189   :  { %3050 = vmatpush1.bf16.msra.mxu1 %v6186_v15 }
 0x18a   :  { %3173 = vmatpush1.bf16.msra.mxu0 %v6189_v16  ;;  %3051 = vmatprep.subr.bf16.mxu1 %v6194_v17 }
 0x18b   :  { %3174 = vmatprep.subr.bf16.mxu0 %v6197_v18 }
 0x18d   :  { %3052 = vmatpush1.bf16.msra.mxu1 %v6192_v19 }
 0x18e   :  { %3175 = vmatpush1.bf16.msra.mxu0 %v6195_v20  ;;  %3053 = vmatprep.subr.bf16.mxu1 %v6200_v21 }
 0x18f   :  { %3176 = vmatprep.subr.bf16.mxu0 %v6203_v22 }
 0x191   :  { %3054 = vmatpush1.bf16.msra.mxu1 %v6198_v23 }
 0x192   :  { %3177 = vmatpush1.bf16.msra.mxu0 %v6201_v25 }
 0x194   :  { %3056 = vmatmul.mubr.bf16.vlgmr.msra.gmra.mrb[0].mxu1 %v5399_v26 }
 0x195   :  { %3179 = vmatmul.mubr.bf16.vlgmr.msra.gmra.mrb[0].mxu0 %v5405_v27 }
 0x267   :  { %v3057_v28 = vpop.f32.mrb[0].mxu1 }
 0x268   :  { %v3180_v29 = vpop.f32.mrb[0].mxu0  ;;  %v3059_v30 = vpop.f32.mrb[1].mxu1 }
 0x269   :  { %v5857_v31 = vadd.f32 %v3180_v29, %v3057_v28  ;;  %v3182_v32 = vpop.f32.mrb[1].mxu0  ;;  %v3061_v33 = vpop.f32.mrb[2].mxu1 }
 0x26a   :  { %v5858_v34 = vadd.f32 %v3182_v32, %v3059_v30  ;;  %v3184_v35 = vpop.f32.mrb[2].mxu0  ;;  %v3062_v37 = vpop.f32.mrb[3].mxu1 }
 0x26b   :  { %3187 = vst [vmem:[#allocation3] sm:$0xff] %v5857_v31  ;;  %v3185_v39 = vpop.f32.mrb[3].mxu0 }
 0x26c   :  { %3188 = vst [vmem:[#allocation3 + $0x8] sm:$0xff] %v5858_v34 }
 0x26d   :  { %6524 = dma.done.wait [#allocation7], 24576 }
 0x26e   :  { %6525 = vsyncadd [#allocation7], 4294942720  ;;  %v3241_v40 = vld [vmem:[#allocation6 + $0x8] sm:$0xff]  ;;  %v3240_v41 = vld [vmem:[#allocation6] sm:$0xff]  ;;  %vm5319_vm6 = vcmask 1041408   ;;  %s6528_s19 = smov [#allocation8]  }
 0x26f   :  { %v3245_v36 = vld [vmem:[#allocation6 + $0x28] sm:$0xff]  ;;  %3453 = vmatprep.subr.bf16.mxu1 %v3241_v40  ;;  %v3244_v42 = vld [vmem:[#allocation6 + $0x20] sm:$0xff]  ;;  %s5355_s20 = sshll.u32 %s6528_s19, 4  ;;  %vm5347_vm8 = vcmask 0   ;;  %s5356_s20 = int_to_ptr.vmem [resolvable:$true] %s5355_s20 }
 0x270   :  { %3454 = vmatpush1.bf16.msra.mxu1 %v3240_v41  ;;  %v3249_v43 = vld [vmem:[#allocation6 + $0x48] sm:$0xff]  ;;  %v3248_v44 = vld [vmem:[#allocation6 + $0x40] sm:$0xff]  ;;  %s6502_s21 = scalar_lea.vmem %s5356_s20, 16  ;;  %s6506_s22 = scalar_lea.vmem %s5356_s20, 32 }
 0x271   :  { %3455 = vmatprep.subr.bf16.mxu1 %v3245_v36  ;;  %v3253_v45 = vld [vmem:[#allocation6 + $0x68] sm:$0xff]  ;;  %v3252_v47 = vld [vmem:[#allocation6 + $0x60] sm:$0xff]  ;;  %p6503_p0 = scmp.ne.s32.totalorder %s5356_s20, %s6502_s21  ;;  %p6507_p1 = scmp.lt.s32.totalorder %s5356_s20, %s5356_s20 }
 0x272   :  { %v3193_v46 = vld [vmem:[#allocation3] sm:$0x3f]  ;;  %v3257_v49 = vld [vmem:[#allocation6 + $0x88] sm:$0xff]  ;;  %v3256_v51 = vld [vmem:[#allocation6 + $0x80] sm:$0xff]  ;;  %p6508_p2 = scmp.lt.s32.totalorder %s6506_s22, %s6502_s21 }
 0x273   :  { %v3194_v48 = vld [vmem:[#allocation3 + $0x8] sm:$0x3f]  ;;  %v3261_v52 = vld [vmem:[#allocation6 + $0xa8] sm:$0xff]  ;;  %v3204_v57 = vld [vmem:[#allocation3] sm:$0x7e] }
 0x274   :  { %3456 = vmatpush1.bf16.msra.mxu1 %v3244_v42  ;;  %v5836_v50 = vpack.c.bf16 %v3194_v48, %v3193_v46  ;;  %v3260_v53 = vld [vmem:[#allocation6 + $0xa0] sm:$0xff]  ;;  %v3265_v54 = vld [vmem:[#allocation6 + $0xc8] sm:$0xff]  ;;  %v3224_v16 = vld [vmem:[#allocation3] sm:$0xfc]  ;;  %p6509_p3 = por %p6508_p2, %p6507_p1 }
 0x275   :  { %3457 = vmatprep.subr.bf16.mxu1 %v3249_v43  ;;  %v3205_v58 = vld [vmem:[#allocation3 + $0x8] sm:$0x7e]  ;;  %v3269_v61 = vld [vmem:[#allocation6 + $0xe8] sm:$0xff] }
 0x276   :  { %3203 = vst [vmem:[#allocation5] sm:$0x77] %v5836_v50  ;;  %v3264_v59 = vld [vmem:[#allocation6 + $0xc0] sm:$0xff]  ;;  %v5837_v60 = vpack.c.bf16 %v3205_v58, %v3204_v57  ;;  %v3273_v2 = vld [vmem:[#allocation6 + $0x108] sm:$0xff]  ;;  %p6510_p4 = pnand %p6509_p3, %p6503_p0 }
 0x277   :  { %v3268_v0 = vld [vmem:[#allocation6 + $0xe0] sm:$0xff]  ;;  %v3277_v6 = vld [vmem:[#allocation6 + $0x128] sm:$0xff] }
 0x278   :  { %3458 = vmatpush1.bf16.msra.mxu1 %v3248_v44  ;;  %v3214_v62 = vshrl.u32 %v5837_v60, 16  ;;  %v3217_v63 = vshll.u32 %v5837_v60, 16  ;;  %v3272_v5 = vld [vmem:[#allocation6 + $0x100] sm:$0xff]  ;;  %v3281_v9 = vld [vmem:[#allocation6 + $0x148] sm:$0xff] }
 0x279   :  { %3459 = vmatprep.subr.bf16.mxu1 %v3253_v45  ;;  %v3276_v8 = vld [vmem:[#allocation6 + $0x120] sm:$0xff]  ;;  %v3285_v11 = vld [vmem:[#allocation6 + $0x168] sm:$0xff] }
 0x27a   :  { %v3216_v1 = vrot.slane %v3214_v62, 4  ;;  %v3219_v4 = vrot.slane %v3217_v63, 5  ;;  %v3280_v10 = vld [vmem:[#allocation6 + $0x140] sm:$0xff]  ;;  %v3289_v13 = vld [vmem:[#allocation6 + $0x188] sm:$0xff] }
 0x27b   :  { %v3284_v12 = vld [vmem:[#allocation6 + $0x160] sm:$0xff]  ;;  %v3293_v15 = vld [vmem:[#allocation6 + $0x1a8] sm:$0xff] }
 0x27c   :  { %3460 = vmatpush1.bf16.msra.mxu1 %v3252_v47  ;;  %v3220_v3 = vor.u32 %v3219_v4, %v3216_v1  ;;  %v3288_v14 = vld [vmem:[#allocation6 + $0x180] sm:$0xff]  ;;  %v3297_v20 = vld [vmem:[#allocation6 + $0x1c8] sm:$0xff] }
 0x27d   :  { %3461 = vmatprep.subr.bf16.mxu1 %v3257_v49  ;;  %v3237_v55 = vld [vmem:[#allocation5] sm:$0x77]  ;;  %v3225_v17 = vld [vmem:[#allocation3 + $0x8] sm:$0xfc] }
 0x27e   :  { %v8205_v56 = vcombine.high %v3237_v55, %v3237_v55  ;;  %v3221_v7 = vrot.slane %v3220_v3, 4  ;;  %v3292_v18 = vld [vmem:[#allocation6 + $0x1a0] sm:$0xff]  ;;  %v5838_v19 = vpack.c.bf16 %v3225_v17, %v3224_v16  ;;  %v3301_v23 = vld [vmem:[#allocation6 + $0x1e8] sm:$0xff]  ;;  %v8210_v28 = vcombine.low %v3237_v55, %v3237_v55 }
 0x27f   :  { %v3296_v22 = vld [vmem:[#allocation6 + $0x1c0] sm:$0xff]  ;;  %v3305_v26 = vld [vmem:[#allocation6 + $0x208] sm:$0xff] }
 0x280   :  { %3462 = vmatpush1.bf16.msra.mxu1 %v3256_v51  ;;  %3485 = vmatprep.mubr.bf16.mxu1 %v8205_v56  ;;  %3223 = vst [vmem:[#allocation5 + $0x8] sm:$0x77] %v3221_v7  ;;  %v5602_v21 = vrot.slane %v5838_v19, 9  ;;  %v3300_v25 = vld [vmem:[#allocation6 + $0x1e0] sm:$0xff]  ;;  %v3309_v31 = vld [vmem:[#allocation6 + $0x228] sm:$0xff] }
 0x281   :  { %3463 = vmatprep.subr.bf16.mxu1 %v3261_v52  ;;  %v3304_v29 = vld [vmem:[#allocation6 + $0x200] sm:$0xff]  ;;  %v3313_v33 = vld [vmem:[#allocation6 + $0x248] sm:$0xff] }
 0x282   :  { %3236 = vst [vmem:[#allocation5 + $0x10] sm:$0x77] %v5602_v21  ;;  %v3308_v32 = vld [vmem:[#allocation6 + $0x220] sm:$0xff]  ;;  %v3317_v35 = vld [vmem:[#allocation6 + $0x268] sm:$0xff] }
 0x283   :  { %v3312_v34 = vld [vmem:[#allocation6 + $0x240] sm:$0xff]  ;;  %v3321_v39 = vld [vmem:[#allocation6 + $0x288] sm:$0xff] }
 0x284   :  { %3464 = vmatpush1.bf16.msra.mxu1 %v3260_v53  ;;  %v3316_v37 = vld [vmem:[#allocation6 + $0x260] sm:$0xff]  ;;  %v3325_v41 = vld [vmem:[#allocation6 + $0x2a8] sm:$0xff] }
 0x285   :  { %3465 = vmatprep.subr.bf16.mxu1 %v3265_v54  ;;  %v3320_v40 = vld [vmem:[#allocation6 + $0x280] sm:$0xff]  ;;  %v3329_v42 = vld [vmem:[#allocation6 + $0x2c8] sm:$0xff] }
 0x286   :  { %v3324_v36 = vld [vmem:[#allocation6 + $0x2a0] sm:$0xff]  ;;  %v3333_v44 = vld [vmem:[#allocation6 + $0x2e8] sm:$0xff] }
 0x287   :  { %v8208_v27 = vld [vmem:[#allocation5 + $0x8] sm:$0x77]  ;;  %v3328_v43 = vld [vmem:[#allocation6 + $0x2c0] sm:$0xff]  ;;  %v3337_v46 = vld [vmem:[#allocation6 + $0x308] sm:$0xff] }
 0x288   :  { %3466 = vmatpush1.bf16.msra.mxu1 %v3264_v59  ;;  %v8214_v30 = vcombine.high %v8208_v27, %v8208_v27  ;;  %v3332_v45 = vld [vmem:[#allocation6 + $0x2e0] sm:$0xff]  ;;  %v3341_v48 = vld [vmem:[#allocation6 + $0x328] sm:$0xff]  ;;  %v8222_v1 = vcombine.low %v8208_v27, %v8208_v27 }
 0x289   :  { %3467 = vmatprep.subr.bf16.mxu1 %v3269_v61  ;;  %v3336_v47 = vld [vmem:[#allocation6 + $0x300] sm:$0xff]  ;;  %v3345_v50 = vld [vmem:[#allocation6 + $0x348] sm:$0xff]  ;;  %v8218_v63 = vld [vmem:[#allocation5 + $0x10] sm:$0x77] }
 0x28a   :  { %v3340_v49 = vld [vmem:[#allocation6 + $0x320] sm:$0xff]  ;;  %v3349_v52 = vld [vmem:[#allocation6 + $0x368] sm:$0xff]  ;;  %v8226_v4 = vcombine.high %v8218_v63, %v8218_v63 }
 0x28b   :  { %v3344_v51 = vld [vmem:[#allocation6 + $0x340] sm:$0xff]  ;;  %v3353_v54 = vld [vmem:[#allocation6 + $0x388] sm:$0xff] }
 0x28c   :  { %3468 = vmatpush1.bf16.msra.mxu1 %v3268_v0  ;;  %v3348_v53 = vld [vmem:[#allocation6 + $0x360] sm:$0xff]  ;;  %v3357_v57 = vld [vmem:[#allocation6 + $0x3a8] sm:$0xff] }
 0x28d   :  { %3469 = vmatprep.subr.bf16.mxu1 %v3273_v2  ;;  %v3352_v55 = vld [vmem:[#allocation6 + $0x380] sm:$0xff]  ;;  %v3361_v59 = vld [vmem:[#allocation6 + $0x3c8] sm:$0xff] }
 0x28e   :  { %v3356_v58 = vld [vmem:[#allocation6 + $0x3a0] sm:$0xff]  ;;  %v3365_v61 = vld [vmem:[#allocation6 + $0x3e8] sm:$0xff] }
 0x28f   :  { %v3360_v60 = vld [vmem:[#allocation6 + $0x3c0] sm:$0xff]  ;;  %v3369_v0 = vld [vmem:[#allocation6 + $0x408] sm:$0xff] }
 0x290   :  { %3470 = vmatpush1.bf16.msra.mxu1 %v3272_v5  ;;  %v3364_v62 = vld [vmem:[#allocation6 + $0x3e0] sm:$0xff]  ;;  %v3373_v3 = vld [vmem:[#allocation6 + $0x428] sm:$0xff] }
 0x291   :  { %3471 = vmatprep.subr.bf16.mxu1 %v3277_v6  ;;  %v3368_v2 = vld [vmem:[#allocation6 + $0x400] sm:$0xff]  ;;  %v3377_v6 = vld [vmem:[#allocation6 + $0x448] sm:$0xff] }
 0x292   :  { %v3372_v5 = vld [vmem:[#allocation6 + $0x420] sm:$0xff]  ;;  %v3397_v16 = vld [vmem:[#allocation6 + $0x4e8] sm:$0xff] }
 0x293   :  { %v3376_v7 = vld [vmem:[#allocation6 + $0x440] sm:$0xff]  ;;  %v3417_v27 = vld [vmem:[#allocation6 + $0x588] sm:$0xff] }
 0x294   :  { %3472 = vmatpush1.bf16.msra.mxu1 %v3276_v8  ;;  %v3381_v8 = vld [vmem:[#allocation6 + $0x468] sm:$0xff]  ;;  %v3396_v17 = vld [vmem:[#allocation6 + $0x4e0] sm:$0xff] }
 0x295   :  { %3473 = vmatprep.subr.bf16.mxu1 %v3281_v9  ;;  %v3380_v9 = vld [vmem:[#allocation6 + $0x460] sm:$0xff]  ;;  %v6357_v38 = vld [vmem:[%s8869_s1 + $0x310] ss:$8 sps:$4 sm:$0xff]  }
 0x296   :  { %v3400_v19 = vld [vmem:[#allocation6 + $0x500] sm:$0xff]  ;;  %v6453_v24 = vld [vmem:[%s8869_s1 + $0x510] ss:$8 sps:$4 sm:$0xff]  }
 0x297   :  { %v3404_v21 = vld [vmem:[#allocation6 + $0x520] sm:$0xff] }
 0x298   :  { %3474 = vmatpush1.bf16.msra.mxu1 %v3280_v10  ;;  %v3385_v10 = vld [vmem:[#allocation6 + $0x488] sm:$0xff] }
 0x299   :  { %3475 = vmatprep.subr.bf16.mxu1 %v3285_v11  ;;  %v3384_v11 = vld [vmem:[#allocation6 + $0x480] sm:$0xff] }
 0x29c   :  { %3476 = vmatpush1.bf16.msra.mxu1 %v3284_v12  ;;  %v3389_v12 = vld [vmem:[#allocation6 + $0x4a8] sm:$0xff] }
 0x29d   :  { %3477 = vmatprep.subr.bf16.mxu1 %v3289_v13  ;;  %v3388_v13 = vld [vmem:[#allocation6 + $0x4a0] sm:$0xff] }
 0x2a0   :  { %3478 = vmatpush1.bf16.msra.mxu1 %v3288_v14  ;;  %v3393_v14 = vld [vmem:[#allocation6 + $0x4c8] sm:$0xff] }
 0x2a1   :  { %3479 = vmatprep.subr.bf16.mxu1 %v3293_v15  ;;  %v3392_v15 = vld [vmem:[#allocation6 + $0x4c0] sm:$0xff] }
 0x2a4   :  { %3480 = vmatpush1.bf16.msra.mxu1 %v3292_v18  ;;  %v3401_v18 = vld [vmem:[#allocation6 + $0x508] sm:$0xff] }
 0x2a5   :  { %3481 = vmatprep.subr.bf16.mxu1 %v3297_v20  ;;  %v3405_v20 = vld [vmem:[#allocation6 + $0x528] sm:$0xff] }
 0x2a8   :  { %3482 = vmatpush1.bf16.msra.mxu1 %v3296_v22  ;;  %v3409_v22 = vld [vmem:[#allocation6 + $0x548] sm:$0xff] }
 0x2a9   :  { %3483 = vmatprep.subr.bf16.mxu1 %v3301_v23  ;;  %v3408_v23 = vld [vmem:[#allocation6 + $0x540] sm:$0xff] }
 0x2ac   :  { %3484 = vmatpush1.bf16.msra.mxu1 %v3300_v25  ;;  %v3413_v25 = vld [vmem:[#allocation6 + $0x568] sm:$0xff] }
 0x2ad   :  { %3494 = vmatprep.subr.bf16.mxu1 %v3305_v26  ;;  %v3412_v26 = vld [vmem:[#allocation6 + $0x560] sm:$0xff] }
 0x2af   :  { %3486 = vmatmul.mubr.bf16.vlgmr.msra.gmra.mrb[4].mxu1 %v8210_v28 }
 0x2b0   :  { %3495 = vmatpush1.bf16.msra.mxu1 %v3304_v29  ;;  %3526 = vmatprep.mubr.bf16.mxu1 %v8214_v30  ;;  %v3416_v29 = vld [vmem:[#allocation6 + $0x580] sm:$0xff] }
 0x2b1   :  { %3496 = vmatprep.subr.bf16.mxu1 %v3309_v31  ;;  %v3421_v31 = vld [vmem:[#allocation6 + $0x5a8] sm:$0xff] }
 0x2b4   :  { %3497 = vmatpush1.bf16.msra.mxu1 %v3308_v32  ;;  %v3420_v32 = vld [vmem:[#allocation6 + $0x5a0] sm:$0xff] }
 0x2b5   :  { %3498 = vmatprep.subr.bf16.mxu1 %v3313_v33  ;;  %v3425_v33 = vld [vmem:[#allocation6 + $0x5c8] sm:$0xff] }
 0x2b8   :  { %3499 = vmatpush1.bf16.msra.mxu1 %v3312_v34  ;;  %v3424_v34 = vld [vmem:[#allocation6 + $0x5c0] sm:$0xff] }
 0x2b9   :  { %3500 = vmatprep.subr.bf16.mxu1 %v3317_v35  ;;  %v3429_v35 = vld [vmem:[#allocation6 + $0x5e8] sm:$0xff] }
 0x2bc   :  { %3501 = vmatpush1.bf16.msra.mxu1 %v3316_v37  ;;  %v3428_v37 = vld [vmem:[#allocation6 + $0x5e0] sm:$0xff] }
 0x2bd   :  { %3502 = vmatprep.subr.bf16.mxu1 %v3321_v39  ;;  %v3243_v39 = vld [vmem:[#allocation6 + $0x18] sm:$0xff] }
 0x2c0   :  { %3503 = vmatpush1.bf16.msra.mxu1 %v3320_v40  ;;  %v8232_v40 = vcombine.low %v8218_v63, %v8218_v63  ;;  %v6215_v63 = vld [vmem:[%s8869_s1 + $0x10] ss:$8 sps:$4 sm:$0xff]  }
 0x2c1   :  { %3504 = vmatprep.subr.bf16.mxu1 %v3325_v41  ;;  %v3242_v41 = vld [vmem:[#allocation6 + $0x10] sm:$0xff] }
 0x2c4   :  { %3505 = vmatpush1.bf16.msra.mxu1 %v3324_v36  ;;  %v3247_v36 = vld [vmem:[#allocation6 + $0x38] sm:$0xff] }
 0x2c5   :  { %3506 = vmatprep.subr.bf16.mxu1 %v3329_v42  ;;  %v3246_v42 = vld [vmem:[#allocation6 + $0x30] sm:$0xff] }
 0x2c8   :  { %3507 = vmatpush1.bf16.msra.mxu1 %v3328_v43  ;;  %v3251_v43 = vld [vmem:[#allocation6 + $0x58] sm:$0xff] }
 0x2c9   :  { %3508 = vmatprep.subr.bf16.mxu1 %v3333_v44  ;;  %v3250_v44 = vld [vmem:[#allocation6 + $0x50] sm:$0xff] }
 0x2cc   :  { %3509 = vmatpush1.bf16.msra.mxu1 %v3332_v45  ;;  %v3255_v45 = vld [vmem:[#allocation6 + $0x78] sm:$0xff] }
 0x2cd   :  { %3510 = vmatprep.subr.bf16.mxu1 %v3337_v46  ;;  %v3254_v46 = vld [vmem:[#allocation6 + $0x70] sm:$0xff] }
 0x2d0   :  { %3511 = vmatpush1.bf16.msra.mxu1 %v3336_v47  ;;  %v3259_v47 = vld [vmem:[#allocation6 + $0x98] sm:$0xff] }
 0x2d1   :  { %3512 = vmatprep.subr.bf16.mxu1 %v3341_v48  ;;  %v3258_v48 = vld [vmem:[#allocation6 + $0x90] sm:$0xff] }
 0x2d4   :  { %3513 = vmatpush1.bf16.msra.mxu1 %v3340_v49  ;;  %v3263_v49 = vld [vmem:[#allocation6 + $0xb8] sm:$0xff] }
 0x2d5   :  { %3514 = vmatprep.subr.bf16.mxu1 %v3345_v50  ;;  %v3262_v50 = vld [vmem:[#allocation6 + $0xb0] sm:$0xff] }
 0x2d8   :  { %3515 = vmatpush1.bf16.msra.mxu1 %v3344_v51  ;;  %v3267_v51 = vld [vmem:[#allocation6 + $0xd8] sm:$0xff] }
 0x2d9   :  { %3516 = vmatprep.subr.bf16.mxu1 %v3349_v52  ;;  %v3271_v52 = vld [vmem:[#allocation6 + $0xf8] sm:$0xff] }
 0x2dc   :  { %3517 = vmatpush1.bf16.msra.mxu1 %v3348_v53  ;;  %v3270_v53 = vld [vmem:[#allocation6 + $0xf0] sm:$0xff] }
 0x2dd   :  { %3518 = vmatprep.subr.bf16.mxu1 %v3353_v54  ;;  %v3275_v54 = vld [vmem:[#allocation6 + $0x118] sm:$0xff] }
 0x2e0   :  { %3519 = vmatpush1.bf16.msra.mxu1 %v3352_v55  ;;  %v3274_v55 = vld [vmem:[#allocation6 + $0x110] sm:$0xff] }
 0x2e1   :  { %3520 = vmatprep.subr.bf16.mxu1 %v3357_v57  ;;  %v3279_v57 = vld [vmem:[#allocation6 + $0x138] sm:$0xff] }
 0x2e4   :  { %3521 = vmatpush1.bf16.msra.mxu1 %v3356_v58  ;;  %v6210_v58 = vld [vmem:[%s8869_s1 + $0x4] ss:$8 sps:$4 sm:$0xff]  }
 0x2e5   :  { %3522 = vmatprep.subr.bf16.mxu1 %v3361_v59  ;;  %v6212_v59 = vld [vmem:[%s8869_s1] ss:$8 sps:$4 sm:$0xff]   ;;  %5037 = vmatprep.subr.bf16.mxu0 %v6210_v58  ;;  %v3334_v58 = vld [vmem:[#allocation6 + $0x2f0] sm:$0xff] }
 0x2e6   :  { %5038 = vmatpush1.bf16.msra.mxu0 %v6212_v59  ;;  %v3339_v59 = vld [vmem:[#allocation6 + $0x318] sm:$0xff] }
 0x2e8   :  { %3523 = vmatpush1.bf16.msra.mxu1 %v3360_v60  ;;  %v3278_v60 = vld [vmem:[#allocation6 + $0x130] sm:$0xff] }
 0x2e9   :  { %3524 = vmatprep.subr.bf16.mxu1 %v3365_v61  ;;  %v3283_v61 = vld [vmem:[#allocation6 + $0x158] sm:$0xff] }
 0x2ec   :  { %3525 = vmatpush1.bf16.msra.mxu1 %v3364_v62  ;;  %v6213_v62 = vld [vmem:[%s8869_s1 + $0x14] ss:$8 sps:$4 sm:$0xff]  }
 0x2ed   :  { %3535 = vmatprep.subr.bf16.mxu1 %v3369_v0  ;;  %v3282_v0 = vld [vmem:[#allocation6 + $0x150] sm:$0xff]  ;;  %5039 = vmatprep.subr.bf16.mxu0 %v6213_v62  ;;  %v3343_v62 = vld [vmem:[#allocation6 + $0x338] sm:$0xff] }
 0x2ee   :  { %5040 = vmatpush1.bf16.msra.mxu0 %v6215_v63  ;;  %v3342_v63 = vld [vmem:[#allocation6 + $0x330] sm:$0xff] }
 0x2ef   :  { %3527 = vmatmul.mubr.bf16.vlgmr.msra.gmra.mrb[4].mxu1 %v8222_v1 }
 0x2f0   :  { %3536 = vmatpush1.bf16.msra.mxu1 %v3368_v2  ;;  %3567 = vmatprep.mubr.bf16.mxu1 %v8226_v4  ;;  %v3287_v2 = vld [vmem:[#allocation6 + $0x178] sm:$0xff] }
 0x2f1   :  { %3537 = vmatprep.subr.bf16.mxu1 %v3373_v3  ;;  %v6216_v3 = vld [vmem:[%s8869_s1 + $0x24] ss:$8 sps:$4 sm:$0xff]  }
 0x2f2   :  { %5041 = vmatprep.subr.bf16.mxu0 %v6216_v3  ;;  %v3346_v3 = vld [vmem:[#allocation6 + $0x350] sm:$0xff] }
 0x2f4   :  { %3538 = vmatpush1.bf16.msra.mxu1 %v3372_v5  ;;  %v6218_v5 = vld [vmem:[%s8869_s1 + $0x20] ss:$8 sps:$4 sm:$0xff]  }
 0x2f5   :  { %3539 = vmatprep.subr.bf16.mxu1 %v3377_v6  ;;  %v3286_v6 = vld [vmem:[#allocation6 + $0x170] sm:$0xff]  ;;  %5042 = vmatpush1.bf16.msra.mxu0 %v6218_v5  ;;  %v3351_v5 = vld [vmem:[#allocation6 + $0x378] sm:$0xff] }
 0x2f8   :  { %3540 = vmatpush1.bf16.msra.mxu1 %v3376_v7  ;;  %v3291_v7 = vld [vmem:[#allocation6 + $0x198] sm:$0xff] }
 0x2f9   :  { %3541 = vmatprep.subr.bf16.mxu1 %v3381_v8  ;;  %v6219_v8 = vld [vmem:[%s8869_s1 + $0x34] ss:$8 sps:$4 sm:$0xff]  }
 0x2fa   :  { %5043 = vmatprep.subr.bf16.mxu0 %v6219_v8  ;;  %v3354_v8 = vld [vmem:[#allocation6 + $0x390] sm:$0xff] }
 0x2fc   :  { %3542 = vmatpush1.bf16.msra.mxu1 %v3380_v9  ;;  %v6221_v9 = vld [vmem:[%s8869_s1 + $0x30] ss:$8 sps:$4 sm:$0xff]  }
 0x2fd   :  { %3543 = vmatprep.subr.bf16.mxu1 %v3385_v10  ;;  %v3290_v10 = vld [vmem:[#allocation6 + $0x190] sm:$0xff]  ;;  %5044 = vmatpush1.bf16.msra.mxu0 %v6221_v9  ;;  %v3359_v9 = vld [vmem:[#allocation6 + $0x3b8] sm:$0xff] }
 0x300   :  { %3544 = vmatpush1.bf16.msra.mxu1 %v3384_v11  ;;  %v3295_v11 = vld [vmem:[#allocation6 + $0x1b8] sm:$0xff] }
 0x301   :  { %3545 = vmatprep.subr.bf16.mxu1 %v3389_v12  ;;  %v6222_v12 = vld [vmem:[%s8869_s1 + $0x44] ss:$8 sps:$4 sm:$0xff]  }
 0x302   :  { %5045 = vmatprep.subr.bf16.mxu0 %v6222_v12  ;;  %v3362_v12 = vld [vmem:[#allocation6 + $0x3d0] sm:$0xff] }
 0x304   :  { %3546 = vmatpush1.bf16.msra.mxu1 %v3388_v13  ;;  %v6224_v13 = vld [vmem:[%s8869_s1 + $0x40] ss:$8 sps:$4 sm:$0xff]  }
 0x305   :  { %3547 = vmatprep.subr.bf16.mxu1 %v3393_v14  ;;  %v3294_v14 = vld [vmem:[#allocation6 + $0x1b0] sm:$0xff]  ;;  %5046 = vmatpush1.bf16.msra.mxu0 %v6224_v13  ;;  %v3367_v13 = vld [vmem:[#allocation6 + $0x3f8] sm:$0xff] }
 0x308   :  { %3548 = vmatpush1.bf16.msra.mxu1 %v3392_v15  ;;  %v3299_v15 = vld [vmem:[#allocation6 + $0x1d8] sm:$0xff] }
 0x309   :  { %3549 = vmatprep.subr.bf16.mxu1 %v3397_v16  ;;  %v6225_v16 = vld [vmem:[%s8869_s1 + $0x54] ss:$8 sps:$4 sm:$0xff]  }
 0x30a   :  { %5047 = vmatprep.subr.bf16.mxu0 %v6225_v16  ;;  %v3370_v16 = vld [vmem:[#allocation6 + $0x410] sm:$0xff] }
 0x30c   :  { %3550 = vmatpush1.bf16.msra.mxu1 %v3396_v17  ;;  %v6227_v17 = vld [vmem:[%s8869_s1 + $0x50] ss:$8 sps:$4 sm:$0xff]  }
 0x30d   :  { %3551 = vmatprep.subr.bf16.mxu1 %v3401_v18  ;;  %v3298_v18 = vld [vmem:[#allocation6 + $0x1d0] sm:$0xff]  ;;  %5048 = vmatpush1.bf16.msra.mxu0 %v6227_v17  ;;  %v3375_v17 = vld [vmem:[#allocation6 + $0x438] sm:$0xff] }
 0x310   :  { %3552 = vmatpush1.bf16.msra.mxu1 %v3400_v19  ;;  %v3303_v19 = vld [vmem:[#allocation6 + $0x1f8] sm:$0xff] }
 0x311   :  { %3553 = vmatprep.subr.bf16.mxu1 %v3405_v20  ;;  %v6228_v20 = vld [vmem:[%s8869_s1 + $0x64] ss:$8 sps:$4 sm:$0xff]  }
 0x312   :  { %5049 = vmatprep.subr.bf16.mxu0 %v6228_v20  ;;  %v3378_v20 = vld [vmem:[#allocation6 + $0x450] sm:$0xff] }
 0x314   :  { %3554 = vmatpush1.bf16.msra.mxu1 %v3404_v21  ;;  %v6230_v21 = vld [vmem:[%s8869_s1 + $0x60] ss:$8 sps:$4 sm:$0xff]  }
 0x315   :  { %3555 = vmatprep.subr.bf16.mxu1 %v3409_v22  ;;  %v3302_v22 = vld [vmem:[#allocation6 + $0x1f0] sm:$0xff]  ;;  %5050 = vmatpush1.bf16.msra.mxu0 %v6230_v21  ;;  %v3383_v21 = vld [vmem:[#allocation6 + $0x478] sm:$0xff] }
 0x318   :  { %3556 = vmatpush1.bf16.msra.mxu1 %v3408_v23  ;;  %v3307_v23 = vld [vmem:[#allocation6 + $0x218] sm:$0xff] }
 0x319   :  { %3557 = vmatprep.subr.bf16.mxu1 %v3413_v25  ;;  %v6231_v25 = vld [vmem:[%s8869_s1 + $0x74] ss:$8 sps:$4 sm:$0xff]  }
 0x31a   :  { %5051 = vmatprep.subr.bf16.mxu0 %v6231_v25  ;;  %v3386_v25 = vld [vmem:[#allocation6 + $0x490] sm:$0xff] }
 0x31c   :  { %3558 = vmatpush1.bf16.msra.mxu1 %v3412_v26  ;;  %v6233_v26 = vld [vmem:[%s8869_s1 + $0x70] ss:$8 sps:$4 sm:$0xff]  }
 0x31d   :  { %3559 = vmatprep.subr.bf16.mxu1 %v3417_v27  ;;  %v3306_v27 = vld [vmem:[#allocation6 + $0x210] sm:$0xff]  ;;  %5052 = vmatpush1.bf16.msra.mxu0 %v6233_v26  ;;  %v3391_v26 = vld [vmem:[#allocation6 + $0x4b8] sm:$0xff] }
 0x320   :  { %3560 = vmatpush1.bf16.msra.mxu1 %v3416_v29  ;;  %v3311_v29 = vld [vmem:[#allocation6 + $0x238] sm:$0xff] }
 0x321   :  { %3561 = vmatprep.subr.bf16.mxu1 %v3421_v31  ;;  %v6234_v31 = vld [vmem:[%s8869_s1 + $0x84] ss:$8 sps:$4 sm:$0xff]  }
 0x322   :  { %5053 = vmatprep.subr.bf16.mxu0 %v6234_v31  ;;  %v3398_v31 = vld [vmem:[#allocation6 + $0x4f0] sm:$0xff] }
 0x324   :  { %3562 = vmatpush1.bf16.msra.mxu1 %v3420_v32  ;;  %v6236_v32 = vld [vmem:[%s8869_s1 + $0x80] ss:$8 sps:$4 sm:$0xff]  }
 0x325   :  { %3563 = vmatprep.subr.bf16.mxu1 %v3425_v33  ;;  %v6237_v33 = vld [vmem:[%s8869_s1 + $0x94] ss:$8 sps:$4 sm:$0xff]   ;;  %5054 = vmatpush1.bf16.msra.mxu0 %v6236_v32  ;;  %v3403_v32 = vld [vmem:[#allocation6 + $0x518] sm:$0xff] }
 0x326   :  { %5055 = vmatprep.subr.bf16.mxu0 %v6237_v33  ;;  %v3402_v33 = vld [vmem:[#allocation6 + $0x510] sm:$0xff] }
 0x328   :  { %3564 = vmatpush1.bf16.msra.mxu1 %v3424_v34  ;;  %v3310_v34 = vld [vmem:[#allocation6 + $0x230] sm:$0xff] }
 0x329   :  { %3565 = vmatprep.subr.bf16.mxu1 %v3429_v35  ;;  %v3315_v35 = vld [vmem:[#allocation6 + $0x258] sm:$0xff] }
 0x32c   :  { %3566 = vmatpush1.bf16.msra.mxu1 %v3428_v37  ;;  %v6240_v37 = vld [vmem:[%s8869_s1 + $0xa4] ss:$8 sps:$4 sm:$0xff]  }
 0x32d   :  { %3576 = vmatprep.subr.bf16.mxu1 %v3243_v39  ;;  %v3314_v39 = vld [vmem:[#allocation6 + $0x250] sm:$0xff] }
 0x32f   :  { %3568 = vmatmul.mubr.bf16.vlgmr.msra.gmra.mrb[4].mxu1 %v8232_v40 }
 0x330   :  { %3577 = vmatpush1.bf16.msra.mxu1 %v3242_v41  ;;  %3608 = vmatprep.mubr.bf16.mxu1 %v8205_v56  ;;  %v3266_v56 = vld [vmem:[#allocation6 + $0xd0] sm:$0xff]  ;;  %v3319_v41 = vld [vmem:[#allocation6 + $0x278] sm:$0xff] }
 0x331   :  { %3578 = vmatprep.subr.bf16.mxu1 %v3247_v36  ;;  %v6243_v36 = vld [vmem:[%s8869_s1 + $0xb4] ss:$8 sps:$4 sm:$0xff]  }
 0x334   :  { %3579 = vmatpush1.bf16.msra.mxu1 %v3246_v42  ;;  %v3318_v42 = vld [vmem:[#allocation6 + $0x270] sm:$0xff] }
 0x335   :  { %3580 = vmatprep.subr.bf16.mxu1 %v3251_v43  ;;  %v3323_v43 = vld [vmem:[#allocation6 + $0x298] sm:$0xff] }
 0x338   :  { %3581 = vmatpush1.bf16.msra.mxu1 %v3250_v44  ;;  %v6245_v44 = vld [vmem:[%s8869_s1 + $0xb0] ss:$8 sps:$4 sm:$0xff]  }
 0x339   :  { %3582 = vmatprep.subr.bf16.mxu1 %v3255_v45  ;;  %v6246_v45 = vld [vmem:[%s8869_s1 + $0xc4] ss:$8 sps:$4 sm:$0xff]  }
 0x33c   :  { %3583 = vmatpush1.bf16.msra.mxu1 %v3254_v46  ;;  %v3322_v46 = vld [vmem:[#allocation6 + $0x290] sm:$0xff] }
 0x33d   :  { %3584 = vmatprep.subr.bf16.mxu1 %v3259_v47  ;;  %v3327_v47 = vld [vmem:[#allocation6 + $0x2b8] sm:$0xff] }
 0x340   :  { %3585 = vmatpush1.bf16.msra.mxu1 %v3258_v48  ;;  %v6248_v48 = vld [vmem:[%s8869_s1 + $0xc0] ss:$8 sps:$4 sm:$0xff]  }
 0x341   :  { %3586 = vmatprep.subr.bf16.mxu1 %v3263_v49  ;;  %v3326_v49 = vld [vmem:[#allocation6 + $0x2b0] sm:$0xff] }
 0x344   :  { %3587 = vmatpush1.bf16.msra.mxu1 %v3262_v50  ;;  %v3331_v50 = vld [vmem:[#allocation6 + $0x2d8] sm:$0xff] }
 0x345   :  { %3588 = vmatprep.subr.bf16.mxu1 %v3267_v51  ;;  %v6249_v51 = vld [vmem:[%s8869_s1 + $0xd4] ss:$8 sps:$4 sm:$0xff]  }
 0x348   :  { %3589 = vmatpush1.bf16.msra.mxu1 %v3266_v56  ;;  %v6251_v56 = vld [vmem:[%s8869_s1 + $0xd0] ss:$8 sps:$4 sm:$0xff]  }
 0x349   :  { %3590 = vmatprep.subr.bf16.mxu1 %v3271_v52  ;;  %v3330_v52 = vld [vmem:[#allocation6 + $0x2d0] sm:$0xff] }
 0x34c   :  { %3591 = vmatpush1.bf16.msra.mxu1 %v3270_v53  ;;  %v3335_v53 = vld [vmem:[#allocation6 + $0x2f8] sm:$0xff] }
 0x34d   :  { %3592 = vmatprep.subr.bf16.mxu1 %v3275_v54  ;;  %v6252_v54 = vld [vmem:[%s8869_s1 + $0xe4] ss:$8 sps:$4 sm:$0xff]  }
 0x350   :  { %3593 = vmatpush1.bf16.msra.mxu1 %v3274_v55  ;;  %v6254_v55 = vld [vmem:[%s8869_s1 + $0xe0] ss:$8 sps:$4 sm:$0xff]  }
 0x351   :  { %3594 = vmatprep.subr.bf16.mxu1 %v3279_v57  ;;  %v6255_v57 = vld [vmem:[%s8869_s1 + $0xf4] ss:$8 sps:$4 sm:$0xff]  }
 0x354   :  { %3595 = vmatpush1.bf16.msra.mxu1 %v3278_v60  ;;  %v6257_v60 = vld [vmem:[%s8869_s1 + $0xf0] ss:$8 sps:$4 sm:$0xff]  }
 0x355   :  { %3596 = vmatprep.subr.bf16.mxu1 %v3283_v61  ;;  %v3338_v61 = vld [vmem:[#allocation6 + $0x310] sm:$0xff] }
 0x358   :  { %3597 = vmatpush1.bf16.msra.mxu1 %v3282_v0  ;;  %v6260_v0 = vld [vmem:[%s8869_s1 + $0x104] ss:$8 sps:$4 sm:$0xff]  }
 0x359   :  { %3598 = vmatprep.subr.bf16.mxu1 %v3287_v2  ;;  %v3347_v2 = vld [vmem:[#allocation6 + $0x358] sm:$0xff] }
 0x35c   :  { %3599 = vmatpush1.bf16.msra.mxu1 %v3286_v6  ;;  %v3350_v6 = vld [vmem:[#allocation6 + $0x370] sm:$0xff] }
 0x35d   :  { %3600 = vmatprep.subr.bf16.mxu1 %v3291_v7  ;;  %v3355_v7 = vld [vmem:[#allocation6 + $0x398] sm:$0xff] }
 0x360   :  { %3601 = vmatpush1.bf16.msra.mxu1 %v3290_v10  ;;  %v3358_v10 = vld [vmem:[#allocation6 + $0x3b0] sm:$0xff] }
 0x361   :  { %3602 = vmatprep.subr.bf16.mxu1 %v3295_v11  ;;  %v3363_v11 = vld [vmem:[#allocation6 + $0x3d8] sm:$0xff] }
 0x364   :  { %3603 = vmatpush1.bf16.msra.mxu1 %v3294_v14  ;;  %v3366_v14 = vld [vmem:[#allocation6 + $0x3f0] sm:$0xff] }
 0x365   :  { %3604 = vmatprep.subr.bf16.mxu1 %v3299_v15  ;;  %v3371_v15 = vld [vmem:[#allocation6 + $0x418] sm:$0xff] }
 0x368   :  { %3605 = vmatpush1.bf16.msra.mxu1 %v3298_v18  ;;  %v3374_v18 = vld [vmem:[#allocation6 + $0x430] sm:$0xff] }
 0x369   :  { %3606 = vmatprep.subr.bf16.mxu1 %v3303_v19  ;;  %v3379_v19 = vld [vmem:[#allocation6 + $0x458] sm:$0xff] }
 0x36c   :  { %3607 = vmatpush1.bf16.msra.mxu1 %v3302_v22  ;;  %v3382_v22 = vld [vmem:[#allocation6 + $0x470] sm:$0xff] }
 0x36d   :  { %3617 = vmatprep.subr.bf16.mxu1 %v3307_v23  ;;  %v3387_v23 = vld [vmem:[#allocation6 + $0x498] sm:$0xff] }
 0x36f   :  { %3609 = vmatmul.mubr.bf16.vlgmr.msra.gmra.mrb[8].mxu1 %v8210_v28  ;;  %v6239_v28 = vld [vmem:[%s8869_s1 + $0x90] ss:$8 sps:$4 sm:$0xff]  }
 0x370   :  { %3618 = vmatpush1.bf16.msra.mxu1 %v3306_v27  ;;  %3649 = vmatprep.mubr.bf16.mxu1 %v8214_v30  ;;  %v6242_v30 = vld [vmem:[%s8869_s1 + $0xa0] ss:$8 sps:$4 sm:$0xff]  }
 0x371   :  { %3619 = vmatprep.subr.bf16.mxu1 %v3311_v29  ;;  %5056 = vmatpush1.bf16.msra.mxu0 %v6239_v28  ;;  %v3395_v27 = vld [vmem:[#allocation6 + $0x4d8] sm:$0xff] }
 0x372   :  { %5057 = vmatprep.subr.bf16.mxu0 %v6240_v37  ;;  %v3399_v29 = vld [vmem:[#allocation6 + $0x4f8] sm:$0xff]  ;;  %v3410_v37 = vld [vmem:[#allocation6 + $0x550] sm:$0xff] }
 0x373   :  { %v3411_v28 = vld [vmem:[#allocation6 + $0x558] sm:$0xff] }
 0x374   :  { %3620 = vmatpush1.bf16.msra.mxu1 %v3310_v34  ;;  %v3407_v34 = vld [vmem:[#allocation6 + $0x538] sm:$0xff] }
 0x375   :  { %3621 = vmatprep.subr.bf16.mxu1 %v3315_v35  ;;  %5058 = vmatpush1.bf16.msra.mxu0 %v6242_v30  ;;  %v3406_v35 = vld [vmem:[#allocation6 + $0x530] sm:$0xff]  ;;  %v3419_v30 = vld [vmem:[#allocation6 + $0x598] sm:$0xff] }
 0x376   :  { %5059 = vmatprep.subr.bf16.mxu0 %v6243_v36  ;;  %v3418_v36 = vld [vmem:[#allocation6 + $0x590] sm:$0xff] }
 0x378   :  { %3622 = vmatpush1.bf16.msra.mxu1 %v3314_v39  ;;  %v3415_v39 = vld [vmem:[#allocation6 + $0x578] sm:$0xff] }
 0x379   :  { %3623 = vmatprep.subr.bf16.mxu1 %v3319_v41  ;;  %5060 = vmatpush1.bf16.msra.mxu0 %v6245_v44  ;;  %v3414_v41 = vld [vmem:[#allocation6 + $0x570] sm:$0xff]  ;;  %v3427_v44 = vld [vmem:[#allocation6 + $0x5d8] sm:$0xff] }
 0x37a   :  { %5061 = vmatprep.subr.bf16.mxu0 %v6246_v45  ;;  %v3426_v45 = vld [vmem:[#allocation6 + $0x5d0] sm:$0xff] }
 0x37c   :  { %3624 = vmatpush1.bf16.msra.mxu1 %v3318_v42  ;;  %v3423_v42 = vld [vmem:[#allocation6 + $0x5b8] sm:$0xff] }
 0x37d   :  { %3625 = vmatprep.subr.bf16.mxu1 %v3323_v43  ;;  %5062 = vmatpush1.bf16.msra.mxu0 %v6248_v48  ;;  %v3422_v43 = vld [vmem:[#allocation6 + $0x5b0] sm:$0xff] }
 0x37e   :  { %5063 = vmatprep.subr.bf16.mxu0 %v6249_v51 }
 0x380   :  { %3626 = vmatpush1.bf16.msra.mxu1 %v3322_v46  ;;  %v3431_v46 = vld [vmem:[#allocation6 + $0x5f8] sm:$0xff] }
 0x381   :  { %3627 = vmatprep.subr.bf16.mxu1 %v3327_v47  ;;  %5064 = vmatpush1.bf16.msra.mxu0 %v6251_v56  ;;  %v3430_v47 = vld [vmem:[#allocation6 + $0x5f0] sm:$0xff] }
 0x382   :  { %5065 = vmatprep.subr.bf16.mxu0 %v6252_v54 }
 0x384   :  { %3628 = vmatpush1.bf16.msra.mxu1 %v3326_v49 }
 0x385   :  { %3629 = vmatprep.subr.bf16.mxu1 %v3331_v50  ;;  %5066 = vmatpush1.bf16.msra.mxu0 %v6254_v55 }
 0x386   :  { %5067 = vmatprep.subr.bf16.mxu0 %v6255_v57  ;;  %v6258_v57 = vld [vmem:[%s8869_s1 + $0x100] ss:$8 sps:$4 sm:$0xff]  }
 0x388   :  { %3630 = vmatpush1.bf16.msra.mxu1 %v3330_v52 }
 0x389   :  { %3631 = vmatprep.subr.bf16.mxu1 %v3335_v53  ;;  %5068 = vmatpush1.bf16.msra.mxu0 %v6257_v60  ;;  %v6266_v60 = vld [vmem:[%s8869_s1 + $0x124] ss:$8 sps:$4 sm:$0xff]  }
 0x38a   :  { %5078 = vmatprep.subr.bf16.mxu0 %v6260_v0  ;;  %v6272_v0 = vld [vmem:[%s8869_s1 + $0x144] ss:$8 sps:$4 sm:$0xff]  }
 0x38c   :  { %3632 = vmatpush1.bf16.msra.mxu1 %v3334_v58 }
 0x38d   :  { %3633 = vmatprep.subr.bf16.mxu1 %v3339_v59  ;;  %v6261_v59 = vld [vmem:[%s8869_s1 + $0x110] ss:$8 sps:$4 sm:$0xff]  }
 0x390   :  { %3634 = vmatpush1.bf16.msra.mxu1 %v3338_v61  ;;  %v6264_v61 = vld [vmem:[%s8869_s1 + $0x120] ss:$8 sps:$4 sm:$0xff]  }
 0x391   :  { %3635 = vmatprep.subr.bf16.mxu1 %v3343_v62  ;;  %v6269_v62 = vld [vmem:[%s8869_s1 + $0x134] ss:$8 sps:$4 sm:$0xff]  }
 0x394   :  { %3636 = vmatpush1.bf16.msra.mxu1 %v3342_v63  ;;  %v6267_v63 = vld [vmem:[%s8869_s1 + $0x130] ss:$8 sps:$4 sm:$0xff]  }
 0x395   :  { %3637 = vmatprep.subr.bf16.mxu1 %v3347_v2  ;;  %v6270_v2 = vld [vmem:[%s8869_s1 + $0x140] ss:$8 sps:$4 sm:$0xff]  }
 0x398   :  { %3638 = vmatpush1.bf16.msra.mxu1 %v3346_v3  ;;  %v6275_v3 = vld [vmem:[%s8869_s1 + $0x154] ss:$8 sps:$4 sm:$0xff]  }
 0x399   :  { %3639 = vmatprep.subr.bf16.mxu1 %v3351_v5  ;;  %v6273_v5 = vld [vmem:[%s8869_s1 + $0x150] ss:$8 sps:$4 sm:$0xff]  }
 0x39c   :  { %3640 = vmatpush1.bf16.msra.mxu1 %v3350_v6  ;;  %v6278_v6 = vld [vmem:[%s8869_s1 + $0x164] ss:$8 sps:$4 sm:$0xff]  }
 0x39d   :  { %3641 = vmatprep.subr.bf16.mxu1 %v3355_v7  ;;  %v6276_v7 = vld [vmem:[%s8869_s1 + $0x160] ss:$8 sps:$4 sm:$0xff]  }
 0x3a0   :  { %3642 = vmatpush1.bf16.msra.mxu1 %v3354_v8  ;;  %v6281_v8 = vld [vmem:[%s8869_s1 + $0x174] ss:$8 sps:$4 sm:$0xff]  }
 0x3a1   :  { %3643 = vmatprep.subr.bf16.mxu1 %v3359_v9  ;;  %v6279_v9 = vld [vmem:[%s8869_s1 + $0x170] ss:$8 sps:$4 sm:$0xff]  }
 0x3a4   :  { %3644 = vmatpush1.bf16.msra.mxu1 %v3358_v10  ;;  %v6284_v10 = vld [vmem:[%s8869_s1 + $0x184] ss:$8 sps:$4 sm:$0xff]  }
 0x3a5   :  { %3645 = vmatprep.subr.bf16.mxu1 %v3363_v11  ;;  %v6282_v11 = vld [vmem:[%s8869_s1 + $0x180] ss:$8 sps:$4 sm:$0xff]  }
 0x3a8   :  { %3646 = vmatpush1.bf16.msra.mxu1 %v3362_v12  ;;  %v6287_v12 = vld [vmem:[%s8869_s1 + $0x194] ss:$8 sps:$4 sm:$0xff]  }
 0x3a9   :  { %3647 = vmatprep.subr.bf16.mxu1 %v3367_v13  ;;  %v6285_v13 = vld [vmem:[%s8869_s1 + $0x190] ss:$8 sps:$4 sm:$0xff]  }
 0x3ac   :  { %3648 = vmatpush1.bf16.msra.mxu1 %v3366_v14  ;;  %v6290_v14 = vld [vmem:[%s8869_s1 + $0x1a4] ss:$8 sps:$4 sm:$0xff]  }
 0x3ad   :  { %3658 = vmatprep.subr.bf16.mxu1 %v3371_v15  ;;  %v6288_v15 = vld [vmem:[%s8869_s1 + $0x1a0] ss:$8 sps:$4 sm:$0xff]  }
 0x3af   :  { %3650 = vmatmul.mubr.bf16.vlgmr.msra.gmra.mrb[8].mxu1 %v8222_v1  ;;  %v3390_v1 = vld [vmem:[#allocation6 + $0x4b0] sm:$0xff] }
 0x3b0   :  { %3659 = vmatpush1.bf16.msra.mxu1 %v3370_v16  ;;  %3690 = vmatprep.mubr.bf16.mxu1 %v8226_v4  ;;  %v3394_v4 = vld [vmem:[#allocation6 + $0x4d0] sm:$0xff] }
 0x3b1   :  { %3660 = vmatprep.subr.bf16.mxu1 %v3375_v17  ;;  %v6293_v16 = vld [vmem:[%s8869_s1 + $0x1b4] ss:$8 sps:$4 sm:$0xff]   ;;  %v6291_v17 = vld [vmem:[%s8869_s1 + $0x1b0] ss:$8 sps:$4 sm:$0xff]  }
 0x3b4   :  { %3661 = vmatpush1.bf16.msra.mxu1 %v3374_v18  ;;  %v6296_v18 = vld [vmem:[%s8869_s1 + $0x1c4] ss:$8 sps:$4 sm:$0xff]  }
 0x3b5   :  { %3662 = vmatprep.subr.bf16.mxu1 %v3379_v19  ;;  %v6294_v19 = vld [vmem:[%s8869_s1 + $0x1c0] ss:$8 sps:$4 sm:$0xff]  }
 0x3b8   :  { %3663 = vmatpush1.bf16.msra.mxu1 %v3378_v20  ;;  %v6299_v20 = vld [vmem:[%s8869_s1 + $0x1d4] ss:$8 sps:$4 sm:$0xff]  }
 0x3b9   :  { %3664 = vmatprep.subr.bf16.mxu1 %v3383_v21  ;;  %v6297_v21 = vld [vmem:[%s8869_s1 + $0x1d0] ss:$8 sps:$4 sm:$0xff]  }
 0x3bc   :  { %3665 = vmatpush1.bf16.msra.mxu1 %v3382_v22  ;;  %v6300_v22 = vld [vmem:[%s8869_s1 + $0x1e0] ss:$8 sps:$4 sm:$0xff]  }
 0x3bd   :  { %3666 = vmatprep.subr.bf16.mxu1 %v3387_v23  ;;  %v6302_v23 = vld [vmem:[%s8869_s1 + $0x1e4] ss:$8 sps:$4 sm:$0xff]  }
 0x3c0   :  { %3667 = vmatpush1.bf16.msra.mxu1 %v3386_v25  ;;  %v6305_v25 = vld [vmem:[%s8869_s1 + $0x1f4] ss:$8 sps:$4 sm:$0xff]  }
 0x3c1   :  { %3668 = vmatprep.subr.bf16.mxu1 %v3391_v26  ;;  %v6303_v26 = vld [vmem:[%s8869_s1 + $0x1f0] ss:$8 sps:$4 sm:$0xff]  }
 0x3c4   :  { %3669 = vmatpush1.bf16.msra.mxu1 %v3390_v1  ;;  %v6308_v1 = vld [vmem:[%s8869_s1 + $0x204] ss:$8 sps:$4 sm:$0xff]  }
 0x3c5   :  { %3670 = vmatprep.subr.bf16.mxu1 %v3395_v27 }
 0x3c8   :  { %3671 = vmatpush1.bf16.msra.mxu1 %v3394_v4 }
 0x3c9   :  { %3672 = vmatprep.subr.bf16.mxu1 %v3399_v29 }
 0x3cc   :  { %3673 = vmatpush1.bf16.msra.mxu1 %v3398_v31 }
 0x3cd   :  { %3674 = vmatprep.subr.bf16.mxu1 %v3403_v32 }
 0x3d0   :  { %3675 = vmatpush1.bf16.msra.mxu1 %v3402_v33  ;;  %v3741_v33 = vld [vmem:[#allocation2 + $0x20] sm:$0x1] }
 0x3d1   :  { %3676 = vmatprep.subr.bf16.mxu1 %v3407_v34  ;;  %v3742_v34 = vld [vmem:[#allocation2 + $0x28] sm:$0x1] }
 0x3d4   :  { %3677 = vmatpush1.bf16.msra.mxu1 %v3406_v35  ;;  %v5843_v35 = vpack.c.bf16 %v3742_v34, %v3741_v33  ;;  %v6347_v33 = vld [vmem:[%s8869_s1 + $0x2d4] ss:$8 sps:$4 sm:$0xff]  }
 0x3d5   :  { %3678 = vmatprep.subr.bf16.mxu1 %v3411_v28 }
 0x3d8   :  { %3679 = vmatpush1.bf16.msra.mxu1 %v3410_v37 }
 0x3d9   :  { %3680 = vmatprep.subr.bf16.mxu1 %v3415_v39 }
 0x3dc   :  { %3681 = vmatpush1.bf16.msra.mxu1 %v3414_v41 }
 0x3dd   :  { %3682 = vmatprep.subr.bf16.mxu1 %v3419_v30 }
 0x3e0   :  { %3683 = vmatpush1.bf16.msra.mxu1 %v3418_v36 }
 0x3e1   :  { %3684 = vmatprep.subr.bf16.mxu1 %v3423_v42 }
 0x3e4   :  { %3685 = vmatpush1.bf16.msra.mxu1 %v3422_v43 }
 0x3e5   :  { %3686 = vmatprep.subr.bf16.mxu1 %v3427_v44 }
 0x3e8   :  { %3687 = vmatpush1.bf16.msra.mxu1 %v3426_v45  ;;  %v3775_v45 = vshll.u32 %v5843_v35, 16 }
 0x3e9   :  { %3688 = vmatprep.subr.bf16.mxu1 %v3431_v46 }
 0x3ec   :  { %3689 = vmatpush1.bf16.msra.mxu1 %v3430_v47 }
 0x3ef   :  { %3691 = vmatmul.mubr.bf16.vlgmr.msra.gmra.mrb[8].mxu1 %v8232_v40  ;;  %v6263_v40 = vld [vmem:[%s8869_s1 + $0x114] ss:$8 sps:$4 sm:$0xff]  }
 0x402   :  { %v3569_v48 = vpop.f32.mrb[4].mxu1 }
 0x403   :  { %v3703_v49 = vrot.slane %v3569_v48, 6  ;;  %v3571_v50 = vpop.f32.mrb[5].mxu1 }
 0x404   :  { %v3704_v51 = vrot.slane %v3571_v50, 6  ;;  %v3573_v56 = vpop.f32.mrb[6].mxu1 }
 0x405   :  { %3711 = vst [vmem:[#allocation2] sm:$0xfc] %v3703_v49  ;;  %v3574_v52 = vpop.f32.mrb[7].mxu1  ;;  %v3777_v49 = vrot.slane %v3775_v45, 5  ;;  %v6351_v45 = vld [vmem:[%s8869_s1 + $0x2f0] ss:$8 sps:$4 sm:$0xff]  }
 0x406   :  { %3712 = vst [vmem:[#allocation2 + $0x8] sm:$0xfc] %v3704_v51 }
 0x40c   :  { %v3715_v53 = vld [vmem:[#allocation2] sm:$0xff] }
 0x40d   :  { %v3716_v54 = vld [vmem:[#allocation2 + $0x8] sm:$0xff]  ;;  %v5853_v58 = vpack.c.bf16 %v3715_v53, %v3715_v53  ;;  %v3737_v27 = vld [vmem:[#allocation2] sm:$0xfe] }
 0x40e   :  { %v5854_v55 = vpack.c.bf16 %v3716_v54, %v3716_v54  ;;  %v3738_v4 = vld [vmem:[#allocation2 + $0x8] sm:$0xfe]  ;;  %v5287_v46 = vld [vmem:[#allocation2] sm:$0xff] }
 0x40f   :  { %v5841_v29 = vpack.c.bf16 %v3738_v4, %v3737_v27  ;;  %v5288_v47 = vld [vmem:[#allocation2 + $0x8] sm:$0xff]  ;;  %v5308_v50 = vmul.f32 %v5287_v46, %v5287_v46 }
 0x410   :  { %5069 = vmatprep.mubr.bf16.mxu0 %v5854_v55  ;;  %v5309_v51 = vmul.f32 %v5288_v47, %v5288_v47  ;;  %v6356_v46 = vld [vmem:[%s8869_s1 + $0x304] ss:$8 sps:$4 sm:$0xff]  }
 0x411   :  { %5070 = vmatmul.mubr.bf16.vlgmr.msra.gmra.mrb[4].mxu0 %v5853_v58  ;;  %v3766_v31 = vshrl.u32 %v5841_v29, 16  ;;  %v3769_v32 = vshll.u32 %v5841_v29, 16  ;;  %v6306_v58 = vld [vmem:[%s8869_s1 + $0x200] ss:$8 sps:$4 sm:$0xff]  }
 0x412   :  { %5079 = vmatpush1.bf16.msra.mxu0 %v6258_v57  ;;  %v5316_v55 = vadd.f32 %v5309_v51, %v5308_v50  ;;  %v6342_v29 = vld [vmem:[%s8869_s1 + $0x2c0] ss:$8 sps:$4 sm:$0xff]   ;;  %v6359_v50 = vld [vmem:[%s8869_s1 + $0x314] ss:$8 sps:$4 sm:$0xff]  }
 0x413   :  { %5080 = vmatprep.subr.bf16.mxu0 %v6263_v40  ;;  %v3768_v28 = vrot.slane %v3766_v31, 4  ;;  %v3771_v37 = vrot.slane %v3769_v32, 5  ;;  %v3743_v31 = vld [vmem:[#allocation2 + $0x30] sm:$0x1]  ;;  %v3744_v32 = vld [vmem:[#allocation2 + $0x38] sm:$0x1] }
 0x414   :  { %v5844_v34 = vpack.c.bf16 %v3744_v32, %v3743_v31  ;;  %v6407_v31 = vld [vmem:[%s8869_s1 + $0x414] ss:$8 sps:$4 sm:$0xff]  }
 0x415   :  { %v3772_v44 = vor.u32 %v3771_v37, %v3768_v28  ;;  %v6345_v37 = vld [vmem:[%s8869_s1 + $0x2d0] ss:$8 sps:$4 sm:$0xff]  }
 0x416   :  { %5081 = vmatpush1.bf16.msra.mxu0 %v6261_v59 }
 0x417   :  { %5082 = vmatprep.subr.bf16.mxu0 %v6266_v60  ;;  %v3773_v48 = vrot.slane %v3772_v44, 4  ;;  %v6311_v60 = vld [vmem:[%s8869_s1 + $0x214] ss:$8 sps:$4 sm:$0xff]  }
 0x419   :  { %v8438_v53 = vsel %vm7784_vm2, %v3773_v48, %v3777_v49  ;;  %v6354_v48 = vld [vmem:[%s8869_s1 + $0x300] ss:$8 sps:$4 sm:$0xff]  }
 0x41a   :  { %5083 = vmatpush1.bf16.msra.mxu0 %v6264_v61  ;;  %v5625_v49 = vcombine.low %v8438_v53, %v8438_v53 }
 0x41b   :  { %5084 = vmatprep.subr.bf16.mxu0 %v6269_v62  ;;  %v5626_v62 = vcombine.high %v8438_v53, %v8438_v53  ;;  %v6365_v53 = vld [vmem:[%s8869_s1 + $0x334] ss:$8 sps:$4 sm:$0xff]  }
 0x41e   :  { %5085 = vmatpush1.bf16.msra.mxu0 %v6267_v63 }
 0x41f   :  { %5086 = vmatprep.subr.bf16.mxu0 %v6272_v0  ;;  %v6309_v0 = vld [vmem:[%s8869_s1 + $0x210] ss:$8 sps:$4 sm:$0xff]  }
 0x422   :  { %5087 = vmatpush1.bf16.msra.mxu0 %v6270_v2  ;;  %v6314_v2 = vld [vmem:[%s8869_s1 + $0x224] ss:$8 sps:$4 sm:$0xff]  }
 0x423   :  { %5088 = vmatprep.subr.bf16.mxu0 %v6275_v3  ;;  %v6312_v3 = vld [vmem:[%s8869_s1 + $0x220] ss:$8 sps:$4 sm:$0xff]  }
 0x426   :  { %5089 = vmatpush1.bf16.msra.mxu0 %v6273_v5  ;;  %v6317_v5 = vld [vmem:[%s8869_s1 + $0x234] ss:$8 sps:$4 sm:$0xff]  }
 0x427   :  { %5090 = vmatprep.subr.bf16.mxu0 %v6278_v6  ;;  %v6315_v6 = vld [vmem:[%s8869_s1 + $0x230] ss:$8 sps:$4 sm:$0xff]  }
 0x42a   :  { %5091 = vmatpush1.bf16.msra.mxu0 %v6276_v7  ;;  %v6320_v7 = vld [vmem:[%s8869_s1 + $0x244] ss:$8 sps:$4 sm:$0xff]  }
 0x42b   :  { %5092 = vmatprep.subr.bf16.mxu0 %v6281_v8  ;;  %v6318_v8 = vld [vmem:[%s8869_s1 + $0x240] ss:$8 sps:$4 sm:$0xff]  }
 0x42e   :  { %5093 = vmatpush1.bf16.msra.mxu0 %v6279_v9  ;;  %v6323_v9 = vld [vmem:[%s8869_s1 + $0x254] ss:$8 sps:$4 sm:$0xff]  }
 0x42f   :  { %5094 = vmatprep.subr.bf16.mxu0 %v6284_v10  ;;  %v6321_v10 = vld [vmem:[%s8869_s1 + $0x250] ss:$8 sps:$4 sm:$0xff]  }
 0x432   :  { %5095 = vmatpush1.bf16.msra.mxu0 %v6282_v11  ;;  %v6326_v11 = vld [vmem:[%s8869_s1 + $0x264] ss:$8 sps:$4 sm:$0xff]  }
 0x433   :  { %5096 = vmatprep.subr.bf16.mxu0 %v6287_v12  ;;  %v6324_v12 = vld [vmem:[%s8869_s1 + $0x260] ss:$8 sps:$4 sm:$0xff]  }
 0x436   :  { %5097 = vmatpush1.bf16.msra.mxu0 %v6285_v13  ;;  %v6329_v13 = vld [vmem:[%s8869_s1 + $0x274] ss:$8 sps:$4 sm:$0xff]  }
 0x437   :  { %5098 = vmatprep.subr.bf16.mxu0 %v6290_v14  ;;  %v6327_v14 = vld [vmem:[%s8869_s1 + $0x270] ss:$8 sps:$4 sm:$0xff]  }
 0x43a   :  { %5099 = vmatpush1.bf16.msra.mxu0 %v6288_v15  ;;  %v6332_v15 = vld [vmem:[%s8869_s1 + $0x284] ss:$8 sps:$4 sm:$0xff]  }
 0x43b   :  { %5100 = vmatprep.subr.bf16.mxu0 %v6293_v16  ;;  %v6330_v16 = vld [vmem:[%s8869_s1 + $0x280] ss:$8 sps:$4 sm:$0xff]  }
 0x43e   :  { %5101 = vmatpush1.bf16.msra.mxu0 %v6291_v17  ;;  %v6335_v17 = vld [vmem:[%s8869_s1 + $0x294] ss:$8 sps:$4 sm:$0xff]  }
 0x43f   :  { %5102 = vmatprep.subr.bf16.mxu0 %v6296_v18  ;;  %v6333_v18 = vld [vmem:[%s8869_s1 + $0x290] ss:$8 sps:$4 sm:$0xff]  }
 0x442   :  { %5103 = vmatpush1.bf16.msra.mxu0 %v6294_v19  ;;  %v6338_v19 = vld [vmem:[%s8869_s1 + $0x2a4] ss:$8 sps:$4 sm:$0xff]  }
 0x443   :  { %5104 = vmatprep.subr.bf16.mxu0 %v6299_v20  ;;  %v6336_v20 = vld [vmem:[%s8869_s1 + $0x2a0] ss:$8 sps:$4 sm:$0xff]  }
 0x446   :  { %5105 = vmatpush1.bf16.msra.mxu0 %v6297_v21 }
 0x447   :  { %5106 = vmatprep.subr.bf16.mxu0 %v6302_v23  ;;  %v6341_v23 = vld [vmem:[%s8869_s1 + $0x2b4] ss:$8 sps:$4 sm:$0xff]  }
 0x44a   :  { %5107 = vmatpush1.bf16.msra.mxu0 %v6300_v22 }
 0x44b   :  { %5108 = vmatprep.subr.bf16.mxu0 %v6305_v25 }
 0x44e   :  { %5109 = vmatpush1.bf16.msra.mxu0 %v6303_v26  ;;  %v6339_v26 = vld [vmem:[%s8869_s1 + $0x2b0] ss:$8 sps:$4 sm:$0xff]  }
 0x44f   :  { %5119 = vmatprep.subr.bf16.mxu0 %v6308_v1  ;;  %v6344_v1 = vld [vmem:[%s8869_s1 + $0x2c4] ss:$8 sps:$4 sm:$0xff]  }
 0x4c2   :  { %v3692_v39 = vpop.f32.mrb[8].mxu1 }
 0x4c3   :  { %v3705_v41 = vrot.slane %v3692_v39, 6  ;;  %v3694_v30 = vpop.f32.mrb[9].mxu1  ;;  %v6350_v39 = vld [vmem:[%s8869_s1 + $0x2e4] ss:$8 sps:$4 sm:$0xff]  }
 0x4c4   :  { %v3706_v36 = vrot.slane %v3694_v30, 6  ;;  %v3696_v42 = vpop.f32.mrb[10].mxu1  ;;  %v3789_v30 = vshll.u32 %v5844_v34, 16  ;;  %v6410_v34 = vld [vmem:[%s8869_s1 + $0x424] ss:$8 sps:$4 sm:$0xff]  }
 0x4c5   :  { %3713 = vst [vmem:[#allocation2 + $0x10] sm:$0xfc] %v3705_v41  ;;  %v3697_v43 = vpop.f32.mrb[11].mxu1  ;;  %v6353_v42 = vld [vmem:[%s8869_s1 + $0x2f4] ss:$8 sps:$4 sm:$0xff]  }
 0x4c6   :  { %3714 = vst [vmem:[#allocation2 + $0x18] sm:$0xfc] %v3706_v36  ;;  %v6348_v36 = vld [vmem:[%s8869_s1 + $0x2e0] ss:$8 sps:$4 sm:$0xff]   ;;  %v3791_v44 = vrot.slane %v3789_v30, 5 }
 0x4c7   :  { %v6419_v30 = vld [vmem:[%s8869_s1 + $0x454] ss:$8 sps:$4 sm:$0xff]  }
 0x4cc   :  { %v3717_v56 = vld [vmem:[#allocation2 + $0x10] sm:$0xff] }
 0x4cd   :  { %v3718_v52 = vld [vmem:[#allocation2 + $0x18] sm:$0xff]  ;;  %v5310_v54 = vmul.f32 %v3717_v56, %v3717_v56  ;;  %v5855_v59 = vpack.c.bf16 %v3717_v56, %v3717_v56  ;;  %v3739_v21 = vld [vmem:[#allocation2 + $0x10] sm:$0xfe]  ;;  %v6362_v56 = vld [vmem:[%s8869_s1 + $0x324] ss:$8 sps:$4 sm:$0xff]  }
 0x4ce   :  { %v5856_v57 = vpack.c.bf16 %v3718_v52, %v3718_v52  ;;  %v5311_v40 = vmul.f32 %v3718_v52, %v3718_v52  ;;  %v3740_v22 = vld [vmem:[#allocation2 + $0x18] sm:$0xfe]  ;;  %v6360_v52 = vld [vmem:[%s8869_s1 + $0x320] ss:$8 sps:$4 sm:$0xff]  }
 0x4cf   :  { %v5317_v61 = vadd.f32 %v5316_v55, %v5310_v54  ;;  %v5842_v25 = vpack.c.bf16 %v3740_v22, %v3739_v21  ;;  %v6363_v54 = vld [vmem:[%s8869_s1 + $0x330] ss:$8 sps:$4 sm:$0xff]   ;;  %v6368_v55 = vld [vmem:[%s8869_s1 + $0x344] ss:$8 sps:$4 sm:$0xff]   ;;  %v6396_v21 = vld [vmem:[%s8869_s1 + $0x3e0] ss:$8 sps:$4 sm:$0xff]  }
 0x4d0   :  { %5110 = vmatprep.mubr.bf16.mxu0 %v5856_v57  ;;  %v6366_v57 = vld [vmem:[%s8869_s1 + $0x340] ss:$8 sps:$4 sm:$0xff]   ;;  %v6401_v22 = vld [vmem:[%s8869_s1 + $0x3f4] ss:$8 sps:$4 sm:$0xff]  }
 0x4d1   :  { %5111 = vmatmul.mubr.bf16.vlgmr.msra.gmra.mrb[4].mxu0 %v5855_v59  ;;  %v8448_v63 = vadd.f32 %v5317_v61, %v5311_v40  ;;  %v3780_v27 = vshrl.u32 %v5842_v25, 16  ;;  %v3783_v4 = vshll.u32 %v5842_v25, 16  ;;  %v6369_v40 = vld [vmem:[%s8869_s1 + $0x350] ss:$8 sps:$4 sm:$0xff]   ;;  %v6374_v59 = vld [vmem:[%s8869_s1 + $0x364] ss:$8 sps:$4 sm:$0xff]  }
 0x4d2   :  { %5120 = vmatpush1.bf16.msra.mxu0 %v6306_v58  ;;  %5151 = vmatprep.mubr.bf16.mxu0 %v5626_v62  ;;  %v6371_v58 = vld [vmem:[%s8869_s1 + $0x354] ss:$8 sps:$4 sm:$0xff]   ;;  %v6375_v62 = vld [vmem:[%s8869_s1 + $0x370] ss:$8 sps:$4 sm:$0xff]  }
 0x4d3   :  { %5121 = vmatprep.subr.bf16.mxu0 %v6311_v60  ;;  %v3782_v35 = vrot.slane %v3780_v27, 4  ;;  %v3785_v28 = vrot.slane %v3783_v4, 5  ;;  %v6372_v60 = vld [vmem:[%s8869_s1 + $0x360] ss:$8 sps:$4 sm:$0xff]   ;;  %v6377_v61 = vld [vmem:[%s8869_s1 + $0x374] ss:$8 sps:$4 sm:$0xff]  }
 0x4d4   :  { %v6402_v4 = vld [vmem:[%s8869_s1 + $0x400] ss:$8 sps:$4 sm:$0xff]  }
 0x4d5   :  { %v3786_v41 = vor.u32 %v3785_v28, %v3782_v35  ;;  %v6408_v35 = vld [vmem:[%s8869_s1 + $0x420] ss:$8 sps:$4 sm:$0xff]   ;;  %v6413_v28 = vld [vmem:[%s8869_s1 + $0x434] ss:$8 sps:$4 sm:$0xff]  }
 0x4d6   :  { %5122 = vmatpush1.bf16.msra.mxu0 %v6309_v0  ;;  %v6380_v0 = vld [vmem:[%s8869_s1 + $0x384] ss:$8 sps:$4 sm:$0xff]  }
 0x4d7   :  { %5123 = vmatprep.subr.bf16.mxu0 %v6314_v2  ;;  %v3787_v43 = vrot.slane %v3786_v41, 4  ;;  %v6378_v2 = vld [vmem:[%s8869_s1 + $0x380] ss:$8 sps:$4 sm:$0xff]  }
 0x4d8   :  { %v6414_v41 = vld [vmem:[%s8869_s1 + $0x440] ss:$8 sps:$4 sm:$0xff]  }
 0x4d9   :  { %v8542_v47 = vsel %vm7784_vm2, %v3787_v43, %v3791_v44  ;;  %v6420_v43 = vld [vmem:[%s8869_s1 + $0x460] ss:$8 sps:$4 sm:$0xff]   ;;  %v6425_v44 = vld [vmem:[%s8869_s1 + $0x474] ss:$8 sps:$4 sm:$0xff]  }
 0x4da   :  { %5124 = vmatpush1.bf16.msra.mxu0 %v6312_v3  ;;  %v5628_v51 = vcombine.high %v8542_v47, %v8542_v47  ;;  %v6383_v3 = vld [vmem:[%s8869_s1 + $0x394] ss:$8 sps:$4 sm:$0xff]  }
 0x4db   :  { %5125 = vmatprep.subr.bf16.mxu0 %v6317_v5  ;;  %v6381_v5 = vld [vmem:[%s8869_s1 + $0x390] ss:$8 sps:$4 sm:$0xff]  }
 0x4de   :  { %5126 = vmatpush1.bf16.msra.mxu0 %v6315_v6  ;;  %v6386_v6 = vld [vmem:[%s8869_s1 + $0x3a4] ss:$8 sps:$4 sm:$0xff]  }
 0x4df   :  { %5127 = vmatprep.subr.bf16.mxu0 %v6320_v7  ;;  %v6384_v7 = vld [vmem:[%s8869_s1 + $0x3a0] ss:$8 sps:$4 sm:$0xff]  }
 0x4e2   :  { %5128 = vmatpush1.bf16.msra.mxu0 %v6318_v8  ;;  %v6389_v8 = vld [vmem:[%s8869_s1 + $0x3b4] ss:$8 sps:$4 sm:$0xff]  }
 0x4e3   :  { %5129 = vmatprep.subr.bf16.mxu0 %v6323_v9  ;;  %v6387_v9 = vld [vmem:[%s8869_s1 + $0x3b0] ss:$8 sps:$4 sm:$0xff]  }
 0x4e6   :  { %5130 = vmatpush1.bf16.msra.mxu0 %v6321_v10  ;;  %v6392_v10 = vld [vmem:[%s8869_s1 + $0x3c4] ss:$8 sps:$4 sm:$0xff]  }
 0x4e7   :  { %5131 = vmatprep.subr.bf16.mxu0 %v6326_v11  ;;  %v6390_v11 = vld [vmem:[%s8869_s1 + $0x3c0] ss:$8 sps:$4 sm:$0xff]  }
 0x4ea   :  { %5132 = vmatpush1.bf16.msra.mxu0 %v6324_v12  ;;  %v6395_v12 = vld [vmem:[%s8869_s1 + $0x3d4] ss:$8 sps:$4 sm:$0xff]  }
 0x4eb   :  { %5133 = vmatprep.subr.bf16.mxu0 %v6329_v13  ;;  %v3801_v13 = vld [vmem:[#allocation2 + $0x20] sm:$0x3] }
 0x4ee   :  { %5134 = vmatpush1.bf16.msra.mxu0 %v6327_v14  ;;  %v3802_v14 = vld [vmem:[#allocation2 + $0x28] sm:$0x3] }
 0x4ef   :  { %5135 = vmatprep.subr.bf16.mxu0 %v6332_v15  ;;  %v6393_v15 = vld [vmem:[%s8869_s1 + $0x3d0] ss:$8 sps:$4 sm:$0xff]  }
 0x4f2   :  { %5136 = vmatpush1.bf16.msra.mxu0 %v6330_v16  ;;  %v3797_v16 = vld [vmem:[#allocation2] sm:$0xfc] }
 0x4f3   :  { %5137 = vmatprep.subr.bf16.mxu0 %v6335_v17  ;;  %v3798_v17 = vld [vmem:[#allocation2 + $0x8] sm:$0xfc] }
 0x4f6   :  { %5138 = vmatpush1.bf16.msra.mxu0 %v6333_v18  ;;  %v6398_v18 = vld [vmem:[%s8869_s1 + $0x3e4] ss:$8 sps:$4 sm:$0xff]  }
 0x4f7   :  { %5139 = vmatprep.subr.bf16.mxu0 %v6338_v19  ;;  %v5845_v19 = vpack.c.bf16 %v3798_v17, %v3797_v16  ;;  %v6459_v16 = vld [vmem:[%s8869_s1 + $0x530] ss:$8 sps:$4 sm:$0xff]   ;;  %v6464_v17 = vld [vmem:[%s8869_s1 + $0x544] ss:$8 sps:$4 sm:$0xff]  }
 0x4fa   :  { %5140 = vmatpush1.bf16.msra.mxu0 %v6336_v20  ;;  %v5847_v20 = vpack.c.bf16 %v3802_v14, %v3801_v13  ;;  %v6458_v13 = vld [vmem:[%s8869_s1 + $0x524] ss:$8 sps:$4 sm:$0xff]   ;;  %v6456_v14 = vld [vmem:[%s8869_s1 + $0x520] ss:$8 sps:$4 sm:$0xff]  }
 0x4fb   :  { %5141 = vmatprep.subr.bf16.mxu0 %v6341_v23  ;;  %v5619_v23 = vrot.slane %v5845_v19, 9  ;;  %v6467_v19 = vld [vmem:[%s8869_s1 + $0x554] ss:$8 sps:$4 sm:$0xff]  }
 0x4fc   :  { %v3827_v25 = vrot.slane %v5847_v20, 5  ;;  %v6465_v20 = vld [vmem:[%s8869_s1 + $0x550] ss:$8 sps:$4 sm:$0xff]  }
 0x4fe   :  { %5142 = vmatpush1.bf16.msra.mxu0 %v6339_v26  ;;  %v6399_v26 = vld [vmem:[%s8869_s1 + $0x3f0] ss:$8 sps:$4 sm:$0xff]   ;;  %v8646_v27 = vsel %vm7911_vm5, %v5619_v23, %v3827_v25  ;;  %v6473_v23 = vld [vmem:[%s8869_s1 + $0x574] ss:$8 sps:$4 sm:$0xff]  }
 0x4ff   :  { %5143 = vmatprep.subr.bf16.mxu0 %v6344_v1  ;;  %v6404_v1 = vld [vmem:[%s8869_s1 + $0x404] ss:$8 sps:$4 sm:$0xff]   ;;  %v5630_v32 = vcombine.high %v8646_v27, %v8646_v27  ;;  %v6471_v25 = vld [vmem:[%s8869_s1 + $0x570] ss:$8 sps:$4 sm:$0xff]  }
 0x502   :  { %5144 = vmatpush1.bf16.msra.mxu0 %v6342_v29  ;;  %v5627_v29 = vcombine.low %v8542_v47, %v8542_v47  ;;  %v6426_v47 = vld [vmem:[%s8869_s1 + $0x480] ss:$8 sps:$4 sm:$0xff]  }
 0x503   :  { %5145 = vmatprep.subr.bf16.mxu0 %v6347_v33  ;;  %v6405_v33 = vld [vmem:[%s8869_s1 + $0x410] ss:$8 sps:$4 sm:$0xff]  }
 0x506   :  { %5146 = vmatpush1.bf16.msra.mxu0 %v6345_v37  ;;  %v6411_v37 = vld [vmem:[%s8869_s1 + $0x430] ss:$8 sps:$4 sm:$0xff]  }
 0x507   :  { %5147 = vmatprep.subr.bf16.mxu0 %v6350_v39  ;;  %v6416_v39 = vld [vmem:[%s8869_s1 + $0x444] ss:$8 sps:$4 sm:$0xff]  }
 0x50a   :  { %5148 = vmatpush1.bf16.msra.mxu0 %v6348_v36  ;;  %v6417_v36 = vld [vmem:[%s8869_s1 + $0x450] ss:$8 sps:$4 sm:$0xff]  }
 0x50b   :  { %5149 = vmatprep.subr.bf16.mxu0 %v6353_v42  ;;  %v6422_v42 = vld [vmem:[%s8869_s1 + $0x464] ss:$8 sps:$4 sm:$0xff]  }
 0x50e   :  { %5150 = vmatpush1.bf16.msra.mxu0 %v6351_v45  ;;  %v6423_v45 = vld [vmem:[%s8869_s1 + $0x470] ss:$8 sps:$4 sm:$0xff]  }
 0x50f   :  { %5160 = vmatprep.subr.bf16.mxu0 %v6356_v46  ;;  %v6428_v46 = vld [vmem:[%s8869_s1 + $0x484] ss:$8 sps:$4 sm:$0xff]  }
 0x511   :  { %5152 = vmatmul.mubr.bf16.vlgmr.msra.gmra.mrb[4].mxu0 %v5625_v49  ;;  %v6429_v49 = vld [vmem:[%s8869_s1 + $0x490] ss:$8 sps:$4 sm:$0xff]  }
 0x512   :  { %5161 = vmatpush1.bf16.msra.mxu0 %v6354_v48  ;;  %5192 = vmatprep.mubr.bf16.mxu0 %v5628_v51  ;;  %v6431_v48 = vld [vmem:[%s8869_s1 + $0x494] ss:$8 sps:$4 sm:$0xff]   ;;  %v6432_v51 = vld [vmem:[%s8869_s1 + $0x4a0] ss:$8 sps:$4 sm:$0xff]  }
 0x513   :  { %5162 = vmatprep.subr.bf16.mxu0 %v6359_v50  ;;  %v6434_v50 = vld [vmem:[%s8869_s1 + $0x4a4] ss:$8 sps:$4 sm:$0xff]  }
 0x516   :  { %5163 = vmatpush1.bf16.msra.mxu0 %v6357_v38  ;;  %v6437_v38 = vld [vmem:[%s8869_s1 + $0x4b4] ss:$8 sps:$4 sm:$0xff]  }
 0x517   :  { %5164 = vmatprep.subr.bf16.mxu0 %v6362_v56  ;;  %v6435_v56 = vld [vmem:[%s8869_s1 + $0x4b0] ss:$8 sps:$4 sm:$0xff]  }
 0x51a   :  { %5165 = vmatpush1.bf16.msra.mxu0 %v6360_v52  ;;  %v6440_v52 = vld [vmem:[%s8869_s1 + $0x4c4] ss:$8 sps:$4 sm:$0xff]  }
 0x51b   :  { %5166 = vmatprep.subr.bf16.mxu0 %v6365_v53  ;;  %v6438_v53 = vld [vmem:[%s8869_s1 + $0x4c0] ss:$8 sps:$4 sm:$0xff]  }
 0x51e   :  { %5167 = vmatpush1.bf16.msra.mxu0 %v6363_v54  ;;  %v6443_v54 = vld [vmem:[%s8869_s1 + $0x4d4] ss:$8 sps:$4 sm:$0xff]  }
 0x51f   :  { %5168 = vmatprep.subr.bf16.mxu0 %v6368_v55  ;;  %v3803_v55 = vld [vmem:[#allocation2 + $0x30] sm:$0x3] }
 0x522   :  { %5169 = vmatpush1.bf16.msra.mxu0 %v6366_v57  ;;  %v3804_v57 = vld [vmem:[#allocation2 + $0x38] sm:$0x3] }
 0x523   :  { %5170 = vmatprep.subr.bf16.mxu0 %v6371_v58  ;;  %v6441_v58 = vld [vmem:[%s8869_s1 + $0x4d0] ss:$8 sps:$4 sm:$0xff]  }
 0x526   :  { %5171 = vmatpush1.bf16.msra.mxu0 %v6369_v40  ;;  %v3799_v40 = vld [vmem:[#allocation2 + $0x10] sm:$0xfc] }
 0x527   :  { %5172 = vmatprep.subr.bf16.mxu0 %v6374_v59  ;;  %v3800_v59 = vld [vmem:[#allocation2 + $0x18] sm:$0xfc] }
 0x52a   :  { %5173 = vmatpush1.bf16.msra.mxu0 %v6372_v60  ;;  %v6446_v60 = vld [vmem:[%s8869_s1 + $0x4e4] ss:$8 sps:$4 sm:$0xff]  }
 0x52b   :  { %5174 = vmatprep.subr.bf16.mxu0 %v6377_v61  ;;  %v5846_v61 = vpack.c.bf16 %v3800_v59, %v3799_v40 }
 0x52e   :  { %5175 = vmatpush1.bf16.msra.mxu0 %v6375_v62  ;;  %v5848_v62 = vpack.c.bf16 %v3804_v57, %v3803_v55 }
 0x52f   :  { %5176 = vmatprep.subr.bf16.mxu0 %v6380_v0  ;;  %v6444_v0 = vld [vmem:[%s8869_s1 + $0x4e0] ss:$8 sps:$4 sm:$0xff]  }
 0x532   :  { %5177 = vmatpush1.bf16.msra.mxu0 %v6378_v2  ;;  %v6449_v2 = vld [vmem:[%s8869_s1 + $0x4f4] ss:$8 sps:$4 sm:$0xff]  }
 0x533   :  { %5178 = vmatprep.subr.bf16.mxu0 %v6383_v3  ;;  %v5620_v3 = vrot.slane %v5846_v61, 9 }
 0x536   :  { %5179 = vmatpush1.bf16.msra.mxu0 %v6381_v5  ;;  %v3831_v5 = vrot.slane %v5848_v62, 5 }
 0x537   :  { %5180 = vmatprep.subr.bf16.mxu0 %v6386_v6  ;;  %v6447_v6 = vld [vmem:[%s8869_s1 + $0x4f0] ss:$8 sps:$4 sm:$0xff]  }
 0x53a   :  { %5181 = vmatpush1.bf16.msra.mxu0 %v6384_v7  ;;  %v6452_v7 = vld [vmem:[%s8869_s1 + $0x504] ss:$8 sps:$4 sm:$0xff]  }
 0x53b   :  { %5182 = vmatprep.subr.bf16.mxu0 %v6389_v8  ;;  %v8750_v8 = vsel %vm7911_vm5, %v5620_v3, %v3831_v5 }
 0x53e   :  { %5183 = vmatpush1.bf16.msra.mxu0 %v6387_v9  ;;  %v6450_v9 = vld [vmem:[%s8869_s1 + $0x500] ss:$8 sps:$4 sm:$0xff]  }
 0x53f   :  { %5184 = vmatprep.subr.bf16.mxu0 %v6392_v10  ;;  %v5629_v10 = vcombine.low %v8646_v27, %v8646_v27  ;;  %v6479_v27 = vld [vmem:[%s8869_s1 + $0x594] ss:$8 sps:$4 sm:$0xff]  }
 0x542   :  { %5185 = vmatpush1.bf16.msra.mxu0 %v6390_v11  ;;  %v6455_v11 = vld [vmem:[%s8869_s1 + $0x514] ss:$8 sps:$4 sm:$0xff]  }
 0x543   :  { %5186 = vmatprep.subr.bf16.mxu0 %v6395_v12  ;;  %v5632_v12 = vcombine.high %v8750_v8, %v8750_v8 }
 0x546   :  { %5187 = vmatpush1.bf16.msra.mxu0 %v6393_v15  ;;  %v6461_v15 = vld [vmem:[%s8869_s1 + $0x534] ss:$8 sps:$4 sm:$0xff]  }
 0x547   :  { %5188 = vmatprep.subr.bf16.mxu0 %v6398_v18  ;;  %v6462_v18 = vld [vmem:[%s8869_s1 + $0x540] ss:$8 sps:$4 sm:$0xff]  }
 0x54a   :  { %5189 = vmatpush1.bf16.msra.mxu0 %v6396_v21  ;;  %v6470_v21 = vld [vmem:[%s8869_s1 + $0x564] ss:$8 sps:$4 sm:$0xff]  }
 0x54b   :  { %5190 = vmatprep.subr.bf16.mxu0 %v6401_v22  ;;  %v6468_v22 = vld [vmem:[%s8869_s1 + $0x560] ss:$8 sps:$4 sm:$0xff]  }
 0x54e   :  { %5191 = vmatpush1.bf16.msra.mxu0 %v6399_v26  ;;  %v6476_v26 = vld [vmem:[%s8869_s1 + $0x584] ss:$8 sps:$4 sm:$0xff]  }
 0x54f   :  { %5201 = vmatprep.subr.bf16.mxu0 %v6404_v1  ;;  %v6474_v1 = vld [vmem:[%s8869_s1 + $0x580] ss:$8 sps:$4 sm:$0xff]  }
 0x551   :  { %5193 = vmatmul.mubr.bf16.vlgmr.msra.gmra.mrb[4].mxu0 %v5627_v29  ;;  %v6482_v29 = vld [vmem:[%s8869_s1 + $0x5a4] ss:$8 sps:$4 sm:$0xff]  }
 0x552   :  { %5202 = vmatpush1.bf16.msra.mxu0 %v6402_v4  ;;  %5233 = vmatprep.mubr.bf16.mxu0 %v5630_v32  ;;  %v6477_v4 = vld [vmem:[%s8869_s1 + $0x590] ss:$8 sps:$4 sm:$0xff]   ;;  %v6485_v32 = vld [vmem:[%s8869_s1 + $0x5b4] ss:$8 sps:$4 sm:$0xff]  }
 0x553   :  { %5203 = vmatprep.subr.bf16.mxu0 %v6407_v31  ;;  %v6480_v31 = vld [vmem:[%s8869_s1 + $0x5a0] ss:$8 sps:$4 sm:$0xff]  }
 0x556   :  { %5204 = vmatpush1.bf16.msra.mxu0 %v6405_v33  ;;  %v6483_v33 = vld [vmem:[%s8869_s1 + $0x5b0] ss:$8 sps:$4 sm:$0xff]  }
 0x557   :  { %5205 = vmatprep.subr.bf16.mxu0 %v6410_v34  ;;  %v6488_v34 = vld [vmem:[%s8869_s1 + $0x5c4] ss:$8 sps:$4 sm:$0xff]  }
 0x55a   :  { %5206 = vmatpush1.bf16.msra.mxu0 %v6408_v35  ;;  %v6486_v35 = vld [vmem:[%s8869_s1 + $0x5c0] ss:$8 sps:$4 sm:$0xff]  }
 0x55b   :  { %5207 = vmatprep.subr.bf16.mxu0 %v6413_v28  ;;  %v6491_v28 = vld [vmem:[%s8869_s1 + $0x5d4] ss:$8 sps:$4 sm:$0xff]  }
 0x55e   :  { %5208 = vmatpush1.bf16.msra.mxu0 %v6411_v37  ;;  %v6489_v37 = vld [vmem:[%s8869_s1 + $0x5d0] ss:$8 sps:$4 sm:$0xff]  }
 0x55f   :  { %5209 = vmatprep.subr.bf16.mxu0 %v6416_v39  ;;  %v6494_v39 = vld [vmem:[%s8869_s1 + $0x5e4] ss:$8 sps:$4 sm:$0xff]  }
 0x562   :  { %5210 = vmatpush1.bf16.msra.mxu0 %v6414_v41  ;;  %v6492_v41 = vld [vmem:[%s8869_s1 + $0x5e0] ss:$8 sps:$4 sm:$0xff]  }
 0x563   :  { %5211 = vmatprep.subr.bf16.mxu0 %v6419_v30  ;;  %v6497_v30 = vld [vmem:[%s8869_s1 + $0x5f4] ss:$8 sps:$4 sm:$0xff]  }
 0x566   :  { %5212 = vmatpush1.bf16.msra.mxu0 %v6417_v36  ;;  %v6495_v36 = vld [vmem:[%s8869_s1 + $0x5f0] ss:$8 sps:$4 sm:$0xff]  }
 0x567   :  { %5213 = vmatprep.subr.bf16.mxu0 %v6422_v42  ;;  %v5631_v42 = vcombine.low %v8750_v8, %v8750_v8 }
 0x56a   :  { %5214 = vmatpush1.bf16.msra.mxu0 %v6420_v43  ;;  %v5291_v43 = vld [vmem:[#allocation2 + $0x20] sm:$0x3] }
 0x56b   :  { %5215 = vmatprep.subr.bf16.mxu0 %v6425_v44  ;;  %v5312_v44 = vmul.f32 %v5291_v43, %v5291_v43 }
 0x56e   :  { %5216 = vmatpush1.bf16.msra.mxu0 %v6423_v45  ;;  %v5292_v45 = vld [vmem:[#allocation2 + $0x28] sm:$0x3] }
 0x56f   :  { %5217 = vmatprep.subr.bf16.mxu0 %v6428_v46  ;;  %v5313_v46 = vmul.f32 %v5292_v45, %v5292_v45 }
 0x572   :  { %5218 = vmatpush1.bf16.msra.mxu0 %v6426_v47  ;;  %v5320_v47 = vsel %vm5319_vm6, %v5312_v44, 0.0 }
 0x573   :  { %5219 = vmatprep.subr.bf16.mxu0 %v6431_v48  ;;  %v5293_v48 = vld [vmem:[#allocation2 + $0x30] sm:$0x3] }
 0x576   :  { %5220 = vmatpush1.bf16.msra.mxu0 %v6429_v49  ;;  %v5321_v49 = vadd.f32 %v5320_v47, %v8448_v63 }
 0x577   :  { %5221 = vmatprep.subr.bf16.mxu0 %v6434_v50  ;;  %v5314_v50 = vmul.f32 %v5293_v48, %v5293_v48 }
 0x579   :  { %v5324_v57 = vsel %vm5319_vm6, %v5314_v50, 0.0 }
 0x57a   :  { %5222 = vmatpush1.bf16.msra.mxu0 %v6432_v51  ;;  %v5322_v51 = vsel %vm5319_vm6, %v5313_v46, 0.0 }
 0x57b   :  { %5223 = vmatprep.subr.bf16.mxu0 %v6437_v38  ;;  %v5294_v38 = vld [vmem:[#allocation2 + $0x38] sm:$0x3] }
 0x57c   :  { %v5315_v55 = vmul.f32 %v5294_v38, %v5294_v38 }
 0x57e   :  { %5224 = vmatpush1.bf16.msra.mxu0 %v6435_v56  ;;  %v5326_v63 = vsel %vm5319_vm6, %v5315_v55, 0.0 }
 0x57f   :  { %5225 = vmatprep.subr.bf16.mxu0 %v6440_v52  ;;  %v5323_v52 = vadd.f32 %v5322_v51, %v5321_v49 }
 0x581   :  { %v5325_v61 = vadd.f32 %v5324_v57, %v5323_v52 }
 0x582   :  { %5226 = vmatpush1.bf16.msra.mxu0 %v6438_v53 }
 0x583   :  { %5227 = vmatprep.subr.bf16.mxu0 %v6443_v54  ;;  %v5327_v62 = vadd.f32 %v5326_v63, %v5325_v61 }
 0x586   :  { %5228 = vmatpush1.bf16.msra.mxu0 %v6441_v58 }
 0x587   :  { %5229 = vmatprep.subr.bf16.mxu0 %v6446_v60 }
 0x58a   :  { %5230 = vmatpush1.bf16.msra.mxu0 %v6444_v0 }
 0x58b   :  { %5231 = vmatprep.subr.bf16.mxu0 %v6449_v2 }
 0x58e   :  { %5232 = vmatpush1.bf16.msra.mxu0 %v6447_v6 }
 0x58f   :  { %5242 = vmatprep.subr.bf16.mxu0 %v6452_v7 }
 0x591   :  { %5234 = vmatmul.mubr.bf16.vlgmr.msra.gmra.mrb[4].mxu0 %v5629_v10 }
 0x592   :  { %5243 = vmatpush1.bf16.msra.mxu0 %v6450_v9  ;;  %5274 = vmatprep.mubr.bf16.mxu0 %v5632_v12 }
 0x593   :  { %5244 = vmatprep.subr.bf16.mxu0 %v6455_v11 }
 0x596   :  { %5245 = vmatpush1.bf16.msra.mxu0 %v6453_v24 }
 0x597   :  { %5246 = vmatprep.subr.bf16.mxu0 %v6458_v13 }
 0x59a   :  { %5247 = vmatpush1.bf16.msra.mxu0 %v6456_v14 }
 0x59b   :  { %5248 = vmatprep.subr.bf16.mxu0 %v6461_v15 }
 0x59e   :  { %5249 = vmatpush1.bf16.msra.mxu0 %v6459_v16 }
 0x59f   :  { %5250 = vmatprep.subr.bf16.mxu0 %v6464_v17 }
 0x5a2   :  { %5251 = vmatpush1.bf16.msra.mxu0 %v6462_v18 }
 0x5a3   :  { %5252 = vmatprep.subr.bf16.mxu0 %v6467_v19 }
 0x5a6   :  { %5253 = vmatpush1.bf16.msra.mxu0 %v6465_v20 }
 0x5a7   :  { %5254 = vmatprep.subr.bf16.mxu0 %v6470_v21 }
 0x5aa   :  { %5255 = vmatpush1.bf16.msra.mxu0 %v6468_v22 }
 0x5ab   :  { %5256 = vmatprep.subr.bf16.mxu0 %v6473_v23 }
 0x5ae   :  { %5257 = vmatpush1.bf16.msra.mxu0 %v6471_v25 }
 0x5af   :  { %5258 = vmatprep.subr.bf16.mxu0 %v6476_v26 }
 0x5b2   :  { %5259 = vmatpush1.bf16.msra.mxu0 %v6474_v1 }
 0x5b3   :  { %5260 = vmatprep.subr.bf16.mxu0 %v6479_v27 }
 0x5b6   :  { %5261 = vmatpush1.bf16.msra.mxu0 %v6477_v4 }
 0x5b7   :  { %5262 = vmatprep.subr.bf16.mxu0 %v6482_v29 }
 0x5ba   :  { %5263 = vmatpush1.bf16.msra.mxu0 %v6480_v31 }
 0x5bb   :  { %5264 = vmatprep.subr.bf16.mxu0 %v6485_v32 }
 0x5be   :  { %5265 = vmatpush1.bf16.msra.mxu0 %v6483_v33 }
 0x5bf   :  { %5266 = vmatprep.subr.bf16.mxu0 %v6488_v34 }
 0x5c2   :  { %5267 = vmatpush1.bf16.msra.mxu0 %v6486_v35 }
 0x5c3   :  { %5268 = vmatprep.subr.bf16.mxu0 %v6491_v28 }
 0x5c6   :  { %5269 = vmatpush1.bf16.msra.mxu0 %v6489_v37 }
 0x5c7   :  { %5270 = vmatprep.subr.bf16.mxu0 %v6494_v39 }
 0x5ca   :  { %5271 = vmatpush1.bf16.msra.mxu0 %v6492_v41 }
 0x5cb   :  { %5272 = vmatprep.subr.bf16.mxu0 %v6497_v30 }
 0x5ce   :  { %5273 = vmatpush1.bf16.msra.mxu0 %v6495_v36 }
 0x5d1   :  { %5275 = vmatmul.mubr.bf16.vlgmr.msra.gmra.mrb[4].mxu0 %v5631_v42 }
 0x6a4   :  { %v5276_v56 = vpop.f32.mrb[4].mxu0 }
 0x6a5   :  { %5283 = vst [vmem:[#allocation3] sm:$0xff] %v5276_v56  ;;  %v5278_v53 = vpop.f32.mrb[5].mxu0  ;;  %v5295_v54 = vmul.f32 %v5276_v56, %v5276_v56 }
 0x6a6   :  { %5284 = vst [vmem:[#allocation3 + $0x8] sm:$0xff] %v5278_v53  ;;  %v5280_v58 = vpop.f32.mrb[6].mxu0  ;;  %v5296_v40 = vmul.f32 %v5278_v53, %v5278_v53 }
 0x6a7   :  { %v5281_v59 = vpop.f32.mrb[7].mxu0 }
 0x6a8   :  { %v5297_v60 = vadd.f32 %v5296_v40, %v5295_v54 }
 0x6aa   :  { %5298 = vadd.xlane.f32.xlu0 %v5297_v60 }
 0x6ae   :  { %5328 = vadd.xlane.f32.xlu0 %v5327_v62 }
 0x737   :  { %v5299_v0 = vpop.xlane.xlu0 %5298 }
 0x738   :  { %v5300_v2 = vrot.slane %v5299_v0, 4 }
 0x73a   :  { %v5301_v3 = vadd.f32 %v5300_v2, %v5299_v0 }
 0x73b   :  { %v5329_v5 = vpop.xlane.xlu0 %5328 }
 0x73c   :  { %v5302_v6 = vrot.slane %v5301_v3, 2  ;;  %v5330_v7 = vrot.slane %v5329_v5, 4 }
 0x73e   :  { %v5331_v8 = vadd.f32 %v5330_v7, %v5329_v5  ;;  %v5303_v9 = vadd.f32 %v5302_v6, %v5301_v3 }
 0x740   :  { %v5332_v10 = vrot.slane %v5331_v8, 2  ;;  %v5304_v11 = vrot.slane %v5303_v9, 1 }
 0x742   :  { %v5333_v12 = vadd.f32 %v5332_v10, %v5331_v8  ;;  %v5305_v24 = vadd.f32 %v5304_v11, %v5303_v9 }
 0x744   :  { %5911 = vpush %v5305_v24  ;;  %v5334_v13 = vrot.slane %v5333_v12, 1 }
 0x746   :  { %v5335_v14 = vadd.f32 %v5334_v13, %v5333_v12 }
 0x748   :  { %5913 = vpush %v5335_v14 }
 0x775   :  { %s5912_s1 = spop %5911 }
 0x776   :  { %v5307_v17 = vstv %s5912_s1 }
 0x779   :  { %s5914_s2 = spop %5913 }
 0x77a   :  { %v5337_v15 = vstv %s5914_s2 }
 0x77b   :  { %6498 = vrcp.f32 %v5337_v15 }
 0x785   :  { %v6499_v16 = vpop.eup %6498 }
 0x786   :  { %v5339_v18 = vmul.f32 %v6499_v16, %v5307_v17 }
 0x788   :  { %6500 = vrsqrt.f32 %v5339_v18  ;;  %vm5342_vm7 = vcmp.eq.f32.partialorder %v5339_v18, inf  ;;  %v5345_v21 = vand.u32 2147483648, %v5339_v18  ;;  %vm5344_vm9 = vcmp.eq.f32.partialorder %v5339_v18, 0.0 }
 0x792   :  { %v6501_v19 = vpop.eup %6500 }
 0x793   :  { %v5341_v20 = vmul.f32 %v6501_v19, %v5339_v18 }
 0x795   :  { %v5343_v22 = vsel %vm5342_vm7, %v5339_v18, %v5341_v20 }
 0x796   :  { %v5346_v23 = vsel %vm5344_vm9, %v5345_v21, %v5343_v22 }
 0x797   :  { %5348 = vst.msk [vmem:[#allocation8] sm:$0x1] %vm5347_vm8, %v5346_v23 }
 0x798   :  { %6513 = shalt.err (!%p6510_p4)
}
 0x799   :  { %s6514_s25 = scalar_lea.hbm %s8871_s3, 16 }
 0x79a   :  { %p6515_p5 = scmp.ne.s32.totalorder %s8871_s3, %s6514_s25  ;;  %p6518_p6 = scmp.lt.u32.totalorder %s6514_s25, %s8871_s3 }
 0x79c   :  { %p6520_p7 = pnand %p6518_p6, %p6515_p5 }
 0x79e   :  { %6523 = shalt.err (!%p6520_p7)
}
 0x79f   :  { %5358 = dma.vmem_to_hbm [thread:$0]  %s5356_s20, 16, %s8871_s3, [#allocation9]  }
 0x7a0   :  { %6526 = dma.done.wait [#allocation9], 16  }
 0x7a1   :  { %6527 = vsyncadd [#allocation9], 4294967280 }
 0x7a2   :  { %5362 = vsyncpa [#allocation9], 1 }
 0x7a3   :  { %5363 = vsyncmov [#allocation7] }
 0x7a6   :  { %s5364_s4 = vpop.sfrf %5363 }
 0x7a7   :  { %p5825_p8 = scmp.ne.s32.totalorder %s5364_s4, 0 }
 0x7a9   :  { %5368 = shalt.err (%p5825_p8)  }

</bundles_post_ra>
